<compile_context>
chip_gen: v7x
topology: tpu7x:2x2x1
jax: 0.10.0
libtpu: 0.0.40
codegen_flags: <defaults>
</compile_context>

<pallas_src>
import jax
import jax.numpy as jnp
from jax.experimental import pallas as pl
from jax.experimental.pallas import tpu as pltpu

C_IN = 726
C_OUT = 2904

# TPU tile-friendly padded dims (sublane=8, lane=128).
N_P = 8            # batch (1) padded to one sublane group
K_P = 768          # 726  -> 6 * 128
M_P = 3072         # 2904 -> 24 * 128


def _pick_m_tiles():
    """1 grid step on single-TC chips (v5e/v6e); 2 parallel steps on v7x (2 TCs)."""
    kind = ""
    try:
        kind = jax.devices()[0].device_kind.lower()
    except Exception:
        pass
    return 2 if "v7" in kind else 1


M_TILES = _pick_m_tiles()
M_TILE = M_P // M_TILES   # 3072 (one step) or 1536 (two parallel steps)
# VMEM: double-buffered bf16 weight is at most 2 * 4.5 MiB = 9 MiB -> fits under
# even v5e's 16 MiB default scoped-VMEM limit; no vmem_limit override needed.


def _fused_kernel(x_ref, w_ref, b_ref, o_ref):
    # x_ref: (N_P, K_P) f32   w_ref: (K_P, M_TILE) bf16
    # b_ref: (1, M_TILE) f32  o_ref: (N_P, M_TILE) bf16
    x = jnp.maximum(x_ref[...], 0.0).astype(jnp.bfloat16)            # ReLU (VPU) + cast for MXU
    y = jnp.dot(x, w_ref[...], preferred_element_type=jnp.float32)   # 1x1 conv == matmul (MXU)
    y = y + b_ref[...]                                                # bias broadcast (f32)
    # Exact sigmoid: exp on the EUP, exact divide — epilogue is tiny & DMA-bound,
    # so exactness is free.
    sig = 1.0 / (1.0 + jnp.exp(-y))
    o_ref[...] = sig.astype(o_ref.dtype)


def prepare_params(weight, bias):
    """One-time weight prep (hoisted out of the per-call path):
    transpose to (C_in, C_out), zero-pad to (K_P, M_P), cast to bf16."""
    w2d = weight.reshape(C_OUT, C_IN).T.astype(jnp.bfloat16)
    w_pad = jnp.zeros((K_P, M_P), jnp.bfloat16).at[:C_IN, :C_OUT].set(w2d)
    b_pad = jnp.zeros((1, M_P), jnp.float32).at[0, :C_OUT].set(bias.astype(jnp.float32))
    return w_pad, b_pad


@jax.jit
def relu_conv1x1_sigmoid(x_nchw, w_pad, b_pad):
    """x_nchw: [N, C_in, 1, 1] f32; w_pad: [K_P, M_P] bf16; b_pad: [1, M_P] f32."""
    n = x_nchw.shape[0]
    assert n <= N_P, f"batch {n} > padded batch {N_P}"
    x2d = x_nchw.reshape(n, C_IN)
    if x2d.dtype != jnp.float32:
        x2d = x2d.astype(jnp.float32)
    # Zero-padding K is safe: relu(0) = 0 contributes nothing to the matmul.
    x_pad = jnp.pad(x2d, ((0, N_P - n), (0, K_P - C_IN)))

    out_pad = pl.pallas_call(
        _fused_kernel,
        out_shape=jax.ShapeDtypeStruct((N_P, M_P), jnp.bfloat16),
        grid_spec=pltpu.PrefetchScalarGridSpec(
            num_scalar_prefetch=0,
            grid=(M_TILES,),
            in_specs=[
                pl.BlockSpec((N_P, K_P), lambda j: (0, 0)),     # x: tiny, resident across grid
                pl.BlockSpec((K_P, M_TILE), lambda j: (0, j)),  # W: streamed one M-tile per step
                pl.BlockSpec((1, M_TILE), lambda j: (0, j)),    # bias tile
            ],
            out_specs=pl.BlockSpec((N_P, M_TILE), lambda j: (0, j)),
        ),
        compiler_params=pltpu.CompilerParams(
            # Independent M tiles: on v7x the 2-step grid splits the weight
            # stream across both TensorCores; on v5e/v6e the grid is 1 step.
            dimension_semantics=("parallel",),
        ),
    )(x_pad, w_pad, b_pad)

    return out_pad[:n, :C_OUT].reshape(n, C_OUT, 1, 1)


if __name__ == "__main__":
    key = jax.random.PRNGKey(0)
    kx, kw, kb = jax.random.split(key, 3)

    # Input matching the module: [1, 726, 1, 1]
    x = jax.random.normal(kx, (1, C_IN, 1, 1), dtype=jnp.float32)

    # Deterministic parameter init (PyTorch Conv2d default: U(-1/sqrt(fan_in), +))
    bound = 1.0 / jnp.sqrt(jnp.float32(C_IN))
    weight = jax.random.uniform(kw, (C_OUT, C_IN, 1, 1), jnp.float32,
                                minval=-bound, maxval=bound)
    bias = jax.random.uniform(kb, (C_OUT,), jnp.float32,
                              minval=-bound, maxval=bound)

    # One-time weight prep (model-load time), then the per-call kernel.
    w_pad, b_pad = prepare_params(weight, bias)
    out = relu_conv1x1_sigmoid(x, w_pad, b_pad)
    jax.block_until_ready(out)

    # Sanity check against a plain-JAX f32 reference (tolerance covers the bf16
    # weight stream and the bf16 output cast; sigmoid itself is exact).
    ref = jax.nn.sigmoid(
        jnp.einsum("oc,nc->no", weight.reshape(C_OUT, C_IN),
                   jnp.maximum(x.reshape(1, C_IN), 0.0)) + bias
    ).reshape(1, C_OUT, 1, 1)
    assert out.shape == (1, C_OUT, 1, 1)
    assert jnp.max(jnp.abs(out.astype(jnp.float32) - ref)) < 2e-2

    print("KERNEL_OK")
</pallas_src>

<mosaic_0001>
module attributes {stable_mosaic.version = 11 : i64} {
  func.func @_fused_kernel(%arg0: i32, %arg1: memref<8x768xf32, #tpu.memory_space<vmem>>, %arg2: memref<768x3072xbf16, #tpu.memory_space<vmem>>, %arg3: memref<1x3072xf32, #tpu.memory_space<vmem>>, %arg4: memref<8x3072xbf16, #tpu.memory_space<vmem>>) attributes {dimension_semantics = [#tpu.dimension_semantics<parallel>], iteration_bounds = array<i64: 1>, scalar_prefetch = 0 : i64, scratch_operands = 0 : i64, tpu.core_type = #tpu.core_type<tc>, window_params = [{pipeline_mode = #tpu.pipeline_mode<synchronous>, transform_indices = @transform_0, window_bounds = array<i64: 8, 768>}, {transform_indices = @transform_1, window_bounds = array<i64: 768, 3072>}, {transform_indices = @transform_2, window_bounds = array<i64: 1, 3072>}, {transform_indices = @transform_3, window_bounds = array<i64: 8, 3072>}]} {
    %c0 = arith.constant 0 : index
    %c0_0 = arith.constant 0 : index
    %0 = vector.load %arg1[%c0, %c0_0] : memref<8x768xf32, #tpu.memory_space<vmem>>, vector<8x768xf32>
    %cst = arith.constant 0.000000e+00 : f32
    %1 = vector.broadcast %cst : f32 to vector<8x768xf32>
    %2 = arith.maximumf %0, %1 : vector<8x768xf32>
    %3 = arith.truncf %2 : vector<8x768xf32> to vector<8x768xbf16>
    %c0_1 = arith.constant 0 : index
    %c0_2 = arith.constant 0 : index
    %4 = vector.load %arg2[%c0_1, %c0_2] : memref<768x3072xbf16, #tpu.memory_space<vmem>>, vector<768x3072xbf16>
    %cst_3 = arith.constant dense<0.000000e+00> : vector<8x3072xf32>
    %5 = tpu.matmul %3, %4, %cst_3 {dimension_numbers = #tpu.dot_dimension_numbers<[1], [0], [0], [1], [0, 0, 1, 1], [], []>} : vector<8x768xbf16>, vector<768x3072xbf16>, vector<8x3072xf32> -> vector<8x3072xf32>
    %c0_4 = arith.constant 0 : index
    %c0_5 = arith.constant 0 : index
    %6 = vector.load %arg3[%c0_4, %c0_5] : memref<1x3072xf32, #tpu.memory_space<vmem>>, vector<1x3072xf32>
    %7 = vector.broadcast %6 : vector<1x3072xf32> to vector<8x3072xf32>
    %8 = arith.addf %5, %7 : vector<8x3072xf32>
    %cst_6 = arith.constant 0.000000e+00 : f32
    %9 = vector.broadcast %cst_6 : f32 to vector<8x3072xf32>
    %10 = arith.subf %9, %8 : vector<8x3072xf32>
    %11 = math.exp %10 : vector<8x3072xf32>
    %cst_7 = arith.constant 1.000000e+00 : f32
    %12 = vector.broadcast %cst_7 : f32 to vector<8x3072xf32>
    %13 = arith.addf %12, %11 : vector<8x3072xf32>
    %cst_8 = arith.constant 1.000000e+00 : f32
    %14 = vector.broadcast %cst_8 : f32 to vector<8x3072xf32>
    %15 = arith.divf %14, %13 : vector<8x3072xf32>
    %16 = arith.truncf %15 : vector<8x3072xf32> to vector<8x3072xbf16>
    %c0_9 = arith.constant 0 : index
    %c0_10 = arith.constant 0 : index
    %17 = vector.load %arg4[%c0_9, %c0_10] : memref<8x3072xbf16, #tpu.memory_space<vmem>>, vector<8x3072xbf16>
    tpu.vector_store %arg4[%c0_9, %c0_10], %16 {strides = array<i32>} : memref<8x3072xbf16, #tpu.memory_space<vmem>>, vector<8x3072xbf16>,
    return
  }
  func.func @transform_0(%arg0: i32) -> (i32, i32) {
    %c0_i32 = arith.constant 0 : i32
    %c0_i32_0 = arith.constant 0 : i32
    %c0_i32_1 = arith.constant 0 : i32
    return %c0_i32, %c0_i32_0 : i32, i32
  }
  func.func @transform_1(%arg0: i32) -> (i32, i32) {
    %c0_i32 = arith.constant 0 : i32
    %c0_i32_0 = arith.constant 0 : i32
    return %c0_i32, %arg0 : i32, i32
  }
  func.func @transform_2(%arg0: i32) -> (i32, i32) {
    %c0_i32 = arith.constant 0 : i32
    %c0_i32_0 = arith.constant 0 : i32
    return %c0_i32, %arg0 : i32, i32
  }
  func.func @transform_3(%arg0: i32) -> (i32, i32) {
    %c0_i32 = arith.constant 0 : i32
    %c0_i32_0 = arith.constant 0 : i32
    return %c0_i32, %arg0 : i32, i32
  }
}

</mosaic_0001>

<bundles_post_ra>
// kernel: relu_conv1x1_sigmoid.1
= control target key start
LH: loop header
LB: loop body
LE: loop exit
PB: predicated region body
PF: predicated region fallthrough
CT: control target
= control target key end

     0   :  { %8 = vsyncpa [#allocation3], 0  ;;  %s10522_s0 = inlined_call_operand.vmem [shape: f32[8,768], index: 0, kind: input, shape index: {}]   ;;  %s10523_s1 = inlined_call_operand.hbm [shape: bf16[768,3072], index: 1, kind: input, shape index: {}]   ;;  %s10524_s2 = inlined_call_operand.hbm [shape: f32[1,3072], index: 2, kind: input, shape index: {}]   ;;  %s10525_s3 = inlined_call_operand.vmem [shape: bf16[8,3072], index: 3, kind: output, shape index: {}]  }
   0x1   :  { %9 = vsyncpa [#allocation5], 0  ;;  %s10276_s12 = smov [#allocation2]   ;;  %s10228_s16 = scalar_lea.hbm %s10523_s1, 147456 }
   0x2   :  { %s17_s13 = sshll.u32 %s10276_s12, 4  ;;  %p10229_p0 = scmp.ne.s32.totalorder %s10523_s1, %s10228_s16  ;;  %s18_s13 = int_to_ptr.vmem [resolvable:$true] %s17_s13 }
   0x3   :  { %p10232_p1 = scmp.lt.u32.totalorder %s10228_s16, %s10523_s1 }
   0x5   :  { %p10234_p2 = pnand %p10232_p1, %p10229_p0 }
   0x7   :  { %10237 = shalt.err (!%p10234_p2)
}
   0x8   :  { %s10238_s21 = scalar_lea.vmem %s18_s13, 147456  ;;  %p10243_p4 = scmp.lt.s32.totalorder %s18_s13, %s18_s13 }
   0x9   :  { %p10239_p3 = scmp.ne.s32.totalorder %s18_s13, %s10238_s21  ;;  %p10244_p5 = scmp.lt.s32.totalorder %s10238_s21, %s10238_s21 }
   0xb   :  { %p10245_p6 = por %p10244_p5, %p10243_p4 }
   0xd   :  { %p10246_p7 = pnand %p10245_p6, %p10239_p3 }
   0xf   :  { %10249 = shalt.err (!%p10246_p7)
}
  0x10   :  { %s10277_s22 = smov 1536   ;;  %s10278_s23 = smov 96  }
  0x11   :  { %23 = dma.hbm_to_vmem [thread:$0]  %s10523_s1, 147456, %s18_s13, [#allocation3], %s10277_s22, %s10277_s22, %s10278_s23  }
  0x12   :  { %s10279_s26 = smov [#allocation4]   ;;  %s10250_s30 = scalar_lea.hbm %s10524_s2, 384 }
  0x13   :  { %s30_s27 = sshll.u32 %s10279_s26, 4  ;;  %p10251_p8 = scmp.ne.s32.totalorder %s10524_s2, %s10250_s30  ;;  %s31_s27 = int_to_ptr.vmem [resolvable:$true] %s30_s27 }
  0x14   :  { %p10254_p9 = scmp.lt.u32.totalorder %s10250_s30, %s10524_s2 }
  0x16   :  { %p10256_p10 = pnand %p10254_p9, %p10251_p8 }
  0x18   :  { %10259 = shalt.err (!%p10256_p10)
}
  0x19   :  { %s10260_s8 = scalar_lea.vmem %s31_s27, 384  ;;  %p10265_p12 = scmp.lt.s32.totalorder %s31_s27, %s31_s27 }
  0x1a   :  { %p10261_p11 = scmp.ne.s32.totalorder %s31_s27, %s10260_s8  ;;  %p10266_p13 = scmp.lt.s32.totalorder %s10260_s8, %s10260_s8 }
  0x1c   :  { %p10267_p0 = por %p10266_p13, %p10265_p12 }
  0x1e   :  { %p10268_p1 = pnand %p10267_p0, %p10261_p11 }
  0x20   :  { %10271 = shalt.err (!%p10268_p1)
}
  0x21   :  { %33 = dma.hbm_to_vmem [thread:$0]  %s10524_s2, 384, %s31_s27, [#allocation5]  }
  0x22   :  { %10272 = dma.done.wait [#allocation3], 147456  }
  0x23   :  { %10273 = vsyncadd [#allocation3], 4294819840 }
  0x24   :  { %10274 = dma.done.wait [#allocation5], 384  }
  0x25   :  { %10275 = vsyncadd [#allocation5], 4294966912  ;;  %v58_v0 = vld [vmem:[#allocation2] sm:$0xff]  ;;  %v59_v2 = vld [vmem:[#allocation2 + $0x8] sm:$0xff] }
  0x26   :  { %v70_v1 = vld [vmem:[#allocation2 + $0x60] sm:$0xff]  ;;  %v71_v4 = vld [vmem:[#allocation2 + $0x68] sm:$0xff] }
  0x27   :  { %v8831_v3 = vcombine.high %v58_v0, %v70_v1  ;;  %v8830_v5 = vcombine.low %v58_v0, %v70_v1  ;;  %v82_v6 = vld [vmem:[#allocation2 + $0xc0] sm:$0xff]  ;;  %v8833_v8 = vcombine.high %v59_v2, %v71_v4  ;;  %v8832_v9 = vcombine.low %v59_v2, %v71_v4  ;;  %v83_v11 = vld [vmem:[#allocation2 + $0xc8] sm:$0xff] }
  0x28   :  { %v94_v7 = vld [vmem:[#allocation2 + $0x120] sm:$0xff]  ;;  %v95_v12 = vld [vmem:[#allocation2 + $0x128] sm:$0xff] }
  0x29   :  { %v8855_v10 = vcombine.high %v82_v6, %v94_v7  ;;  %v106_v13 = vld [vmem:[#allocation2 + $0x180] sm:$0xff]  ;;  %7096 = vmatprep.subr.bf16.mxu0 %v8831_v3  ;;  %v8857_v14 = vcombine.high %v83_v11, %v95_v12  ;;  %v107_v16 = vld [vmem:[#allocation2 + $0x188] sm:$0xff]  ;;  %7219 = vmatprep.subr.bf16.mxu1 %v8833_v8  ;;  %v8854_v18 = vcombine.low %v82_v6, %v94_v7 }
  0x2a   :  { %v118_v15 = vld [vmem:[#allocation2 + $0x1e0] sm:$0xff]  ;;  %v119_v17 = vld [vmem:[#allocation2 + $0x1e8] sm:$0xff]  ;;  %7097 = vmatpush1.bf16.msra.mxu0 %v8830_v5  ;;  %7220 = vmatpush1.bf16.msra.mxu1 %v8832_v9  ;;  %v8856_v19 = vcombine.low %v83_v11, %v95_v12 }
  0x2b   :  { %7098 = vmatprep.subr.bf16.mxu0 %v8855_v10  ;;  %v8879_v20 = vcombine.high %v106_v13, %v118_v15  ;;  %7221 = vmatprep.subr.bf16.mxu1 %v8857_v14  ;;  %v8881_v21 = vcombine.high %v107_v16, %v119_v17  ;;  %v130_v22 = vld [vmem:[#allocation2 + $0x240] sm:$0xff]  ;;  %v131_v24 = vld [vmem:[#allocation2 + $0x248] sm:$0xff]  ;;  %v8878_v26 = vcombine.low %v106_v13, %v118_v15 }
  0x2c   :  { %v142_v23 = vld [vmem:[#allocation2 + $0x2a0] sm:$0xff]  ;;  %v143_v25 = vld [vmem:[#allocation2 + $0x2a8] sm:$0xff]  ;;  %v8880_v27 = vcombine.low %v107_v16, %v119_v17 }
  0x2d   :  { %v8903_v28 = vcombine.high %v130_v22, %v142_v23  ;;  %v8905_v29 = vcombine.high %v131_v24, %v143_v25  ;;  %v154_v30 = vld [vmem:[#allocation2 + $0x300] sm:$0xff]  ;;  %v155_v32 = vld [vmem:[#allocation2 + $0x308] sm:$0xff]  ;;  %v8902_v34 = vcombine.low %v130_v22, %v142_v23  ;;  %v8904_v35 = vcombine.low %v131_v24, %v143_v25 }
  0x2e   :  { %7099 = vmatpush1.bf16.msra.mxu0 %v8854_v18  ;;  %7222 = vmatpush1.bf16.msra.mxu1 %v8856_v19  ;;  %v166_v31 = vld [vmem:[#allocation2 + $0x360] sm:$0xff]  ;;  %v167_v33 = vld [vmem:[#allocation2 + $0x368] sm:$0xff] }
  0x2f   :  { %7100 = vmatprep.subr.bf16.mxu0 %v8879_v20  ;;  %7223 = vmatprep.subr.bf16.mxu1 %v8881_v21  ;;  %v8927_v36 = vcombine.high %v154_v30, %v166_v31  ;;  %v8929_v37 = vcombine.high %v155_v32, %v167_v33  ;;  %v178_v38 = vld [vmem:[#allocation2 + $0x3c0] sm:$0xff]  ;;  %v179_v40 = vld [vmem:[#allocation2 + $0x3c8] sm:$0xff]  ;;  %v8926_v42 = vcombine.low %v154_v30, %v166_v31 }
  0x30   :  { %v190_v39 = vld [vmem:[#allocation2 + $0x420] sm:$0xff]  ;;  %v191_v41 = vld [vmem:[#allocation2 + $0x428] sm:$0xff]  ;;  %v8928_v43 = vcombine.low %v155_v32, %v167_v33 }
  0x31   :  { %v8951_v44 = vcombine.high %v178_v38, %v190_v39  ;;  %v8953_v45 = vcombine.high %v179_v40, %v191_v41  ;;  %v202_v46 = vld [vmem:[#allocation2 + $0x480] sm:$0xff]  ;;  %v203_v48 = vld [vmem:[#allocation2 + $0x488] sm:$0xff]  ;;  %v8950_v50 = vcombine.low %v178_v38, %v190_v39  ;;  %v8952_v51 = vcombine.low %v179_v40, %v191_v41 }
  0x32   :  { %7101 = vmatpush1.bf16.msra.mxu0 %v8878_v26  ;;  %7224 = vmatpush1.bf16.msra.mxu1 %v8880_v27  ;;  %v214_v47 = vld [vmem:[#allocation2 + $0x4e0] sm:$0xff]  ;;  %v215_v49 = vld [vmem:[#allocation2 + $0x4e8] sm:$0xff] }
  0x33   :  { %7102 = vmatprep.subr.bf16.mxu0 %v8903_v28  ;;  %7225 = vmatprep.subr.bf16.mxu1 %v8905_v29  ;;  %v8975_v52 = vcombine.high %v202_v46, %v214_v47  ;;  %v41_v53 = vld [vmem:[%s10522_s0 + $0x8] sm:$0xff]  ;;  %v8977_v54 = vcombine.high %v203_v48, %v215_v49  ;;  %v226_v55 = vld [vmem:[#allocation2 + $0x540] sm:$0xff]  ;;  %v8974_v60 = vcombine.low %v202_v46, %v214_v47 }
  0x34   :  { %v238_v56 = vld [vmem:[#allocation2 + $0x5a0] sm:$0xff]  ;;  %v47_v57 = vmax.f32 %v41_v53, 0.0  ;;  %v227_v58 = vld [vmem:[#allocation2 + $0x548] sm:$0xff]  ;;  %v8976_v62 = vcombine.low %v203_v48, %v215_v49 }
  0x35   :  { %v239_v59 = vld [vmem:[#allocation2 + $0x5a8] sm:$0xff]  ;;  %v8999_v63 = vcombine.high %v226_v55, %v238_v56  ;;  %v250_v1 = vld [vmem:[#allocation2 + $0x600] sm:$0xff]  ;;  %v8998_v5 = vcombine.low %v226_v55, %v238_v56 }
  0x36   :  { %7103 = vmatpush1.bf16.msra.mxu0 %v8902_v34  ;;  %7226 = vmatpush1.bf16.msra.mxu1 %v8904_v35  ;;  %v10327_v61 = vpack.c.bf16 %v47_v57, %v47_v57  ;;  %v9001_v0 = vcombine.high %v227_v58, %v239_v59  ;;  %v262_v2 = vld [vmem:[#allocation2 + $0x660] sm:$0xff]  ;;  %v251_v3 = vld [vmem:[#allocation2 + $0x608] sm:$0xff]  ;;  %v9000_v6 = vcombine.low %v227_v58, %v239_v59 }
  0x37   :  { %7104 = vmatprep.subr.bf16.mxu0 %v8927_v36  ;;  %7227 = vmatprep.subr.bf16.mxu1 %v8929_v37  ;;  %v263_v4 = vld [vmem:[#allocation2 + $0x668] sm:$0xff]  ;;  %v9023_v7 = vcombine.high %v250_v1, %v262_v2  ;;  %v274_v9 = vld [vmem:[#allocation2 + $0x6c0] sm:$0xff]  ;;  %v9022_v13 = vcombine.low %v250_v1, %v262_v2 }
  0x38   :  { %7128 = vmatprep.mubr.bf16.mxu0 %v10327_v61  ;;  %7251 = vmatprep.mubr.bf16.mxu1 %v10327_v61  ;;  %v9025_v8 = vcombine.high %v251_v3, %v263_v4  ;;  %v286_v10 = vld [vmem:[#allocation2 + $0x720] sm:$0xff]  ;;  %v275_v11 = vld [vmem:[#allocation2 + $0x6c8] sm:$0xff]  ;;  %v9024_v14 = vcombine.low %v251_v3, %v263_v4 }
  0x39   :  { %v287_v12 = vld [vmem:[#allocation2 + $0x728] sm:$0xff]  ;;  %v9047_v15 = vcombine.high %v274_v9, %v286_v10  ;;  %v298_v17 = vld [vmem:[#allocation2 + $0x780] sm:$0xff]  ;;  %v9046_v21 = vcombine.low %v274_v9, %v286_v10 }
  0x3a   :  { %7105 = vmatpush1.bf16.msra.mxu0 %v8926_v42  ;;  %7228 = vmatpush1.bf16.msra.mxu1 %v8928_v43  ;;  %v9049_v16 = vcombine.high %v275_v11, %v287_v12  ;;  %v310_v18 = vld [vmem:[#allocation2 + $0x7e0] sm:$0xff]  ;;  %v299_v19 = vld [vmem:[#allocation2 + $0x788] sm:$0xff]  ;;  %v9048_v22 = vcombine.low %v275_v11, %v287_v12 }
  0x3b   :  { %7106 = vmatprep.subr.bf16.mxu0 %v8951_v44  ;;  %7229 = vmatprep.subr.bf16.mxu1 %v8953_v45  ;;  %v311_v20 = vld [vmem:[#allocation2 + $0x7e8] sm:$0xff]  ;;  %v9071_v23 = vcombine.high %v298_v17, %v310_v18  ;;  %v322_v25 = vld [vmem:[#allocation2 + $0x840] sm:$0xff]  ;;  %v9070_v29 = vcombine.low %v298_v17, %v310_v18 }
  0x3c   :  { %v9073_v24 = vcombine.high %v299_v19, %v311_v20  ;;  %v334_v26 = vld [vmem:[#allocation2 + $0x8a0] sm:$0xff]  ;;  %v323_v27 = vld [vmem:[#allocation2 + $0x848] sm:$0xff]  ;;  %v9072_v30 = vcombine.low %v299_v19, %v311_v20 }
  0x3d   :  { %v335_v28 = vld [vmem:[#allocation2 + $0x8a8] sm:$0xff]  ;;  %v9095_v31 = vcombine.high %v322_v25, %v334_v26  ;;  %v346_v33 = vld [vmem:[#allocation2 + $0x900] sm:$0xff]  ;;  %v9094_v37 = vcombine.low %v322_v25, %v334_v26 }
  0x3e   :  { %7107 = vmatpush1.bf16.msra.mxu0 %v8950_v50  ;;  %7230 = vmatpush1.bf16.msra.mxu1 %v8952_v51  ;;  %v9097_v32 = vcombine.high %v323_v27, %v335_v28  ;;  %v358_v34 = vld [vmem:[#allocation2 + $0x960] sm:$0xff]  ;;  %v347_v35 = vld [vmem:[#allocation2 + $0x908] sm:$0xff]  ;;  %v9096_v38 = vcombine.low %v323_v27, %v335_v28 }
  0x3f   :  { %7108 = vmatprep.subr.bf16.mxu0 %v8975_v52  ;;  %7231 = vmatprep.subr.bf16.mxu1 %v8977_v54  ;;  %v359_v36 = vld [vmem:[#allocation2 + $0x968] sm:$0xff]  ;;  %v9119_v39 = vcombine.high %v346_v33, %v358_v34  ;;  %v370_v41 = vld [vmem:[#allocation2 + $0x9c0] sm:$0xff]  ;;  %v9118_v45 = vcombine.low %v346_v33, %v358_v34 }
  0x40   :  { %v9121_v40 = vcombine.high %v347_v35, %v359_v36  ;;  %v382_v42 = vld [vmem:[#allocation2 + $0xa20] sm:$0xff]  ;;  %v371_v43 = vld [vmem:[#allocation2 + $0x9c8] sm:$0xff]  ;;  %v9120_v46 = vcombine.low %v347_v35, %v359_v36 }
  0x41   :  { %v383_v44 = vld [vmem:[#allocation2 + $0xa28] sm:$0xff]  ;;  %v9143_v47 = vcombine.high %v370_v41, %v382_v42  ;;  %v394_v49 = vld [vmem:[#allocation2 + $0xa80] sm:$0xff]  ;;  %v9142_v53 = vcombine.low %v370_v41, %v382_v42 }
  0x42   :  { %7109 = vmatpush1.bf16.msra.mxu0 %v8974_v60  ;;  %7232 = vmatpush1.bf16.msra.mxu1 %v8976_v62  ;;  %v9145_v48 = vcombine.high %v371_v43, %v383_v44  ;;  %v406_v50 = vld [vmem:[#allocation2 + $0xae0] sm:$0xff]  ;;  %v395_v51 = vld [vmem:[#allocation2 + $0xa88] sm:$0xff]  ;;  %v9144_v54 = vcombine.low %v371_v43, %v383_v44 }
  0x43   :  { %7110 = vmatprep.subr.bf16.mxu0 %v8999_v63  ;;  %7233 = vmatprep.subr.bf16.mxu1 %v9001_v0  ;;  %v407_v52 = vld [vmem:[#allocation2 + $0xae8] sm:$0xff]  ;;  %v9167_v55 = vcombine.high %v394_v49, %v406_v50  ;;  %v418_v57 = vld [vmem:[#allocation2 + $0xb40] sm:$0xff]  ;;  %v9166_v62 = vcombine.low %v394_v49, %v406_v50 }
  0x44   :  { %v9169_v56 = vcombine.high %v395_v51, %v407_v52  ;;  %v430_v58 = vld [vmem:[#allocation2 + $0xba0] sm:$0xff]  ;;  %v419_v59 = vld [vmem:[#allocation2 + $0xb48] sm:$0xff]  ;;  %v9168_v0 = vcombine.low %v395_v51, %v407_v52 }
  0x45   :  { %v431_v60 = vld [vmem:[#allocation2 + $0xba8] sm:$0xff]  ;;  %v40_v63 = vld [vmem:[%s10522_s0] sm:$0xff]  ;;  %v9191_v1 = vcombine.high %v418_v57, %v430_v58  ;;  %v9190_v9 = vcombine.low %v418_v57, %v430_v58 }
  0x46   :  { %7111 = vmatpush1.bf16.msra.mxu0 %v8998_v5  ;;  %7234 = vmatpush1.bf16.msra.mxu1 %v9000_v6  ;;  %v9193_v2 = vcombine.high %v419_v59, %v431_v60  ;;  %v442_v3 = vld [vmem:[#allocation2 + $0xc00] sm:$0xff]  ;;  %v443_v5 = vld [vmem:[#allocation2 + $0xc08] sm:$0xff]  ;;  %v9192_v10 = vcombine.low %v419_v59, %v431_v60 }
  0x47   :  { %7112 = vmatprep.subr.bf16.mxu0 %v9023_v7  ;;  %7235 = vmatprep.subr.bf16.mxu1 %v9025_v8  ;;  %v454_v4 = vld [vmem:[#allocation2 + $0xc60] sm:$0xff]  ;;  %v455_v6 = vld [vmem:[#allocation2 + $0xc68] sm:$0xff]  ;;  %v46_v7 = vmax.f32 %v40_v63, 0.0  ;;  %v43_v8 = vld [vmem:[%s10522_s0 + $0x18] sm:$0xff] }
  0x48   :  { %v9215_v11 = vcombine.high %v442_v3, %v454_v4  ;;  %v9217_v12 = vcombine.high %v443_v5, %v455_v6  ;;  %v467_v17 = vld [vmem:[#allocation2 + $0xcc8] sm:$0xff]  ;;  %v9214_v19 = vcombine.low %v442_v3, %v454_v4  ;;  %v9216_v20 = vcombine.low %v443_v5, %v455_v6  ;;  %v526_v33 = vld [vmem:[#allocation2 + $0xea0] sm:$0xff] }
  0x49   :  { %v479_v18 = vld [vmem:[#allocation2 + $0xd28] sm:$0xff]  ;;  %v550_v41 = vld [vmem:[#allocation2 + $0xf60] sm:$0xff] }
  0x4a   :  { %7113 = vmatpush1.bf16.msra.mxu0 %v9022_v13  ;;  %7236 = vmatpush1.bf16.msra.mxu1 %v9024_v14  ;;  %v466_v13 = vld [vmem:[#allocation2 + $0xcc0] sm:$0xff]  ;;  %v491_v26 = vld [vmem:[#allocation2 + $0xd88] sm:$0xff] }
  0x4b   :  { %7114 = vmatprep.subr.bf16.mxu0 %v9047_v15  ;;  %7237 = vmatprep.subr.bf16.mxu1 %v9049_v16  ;;  %v478_v14 = vld [vmem:[#allocation2 + $0xd20] sm:$0xff]  ;;  %v49_v15 = vmax.f32 %v43_v8, 0.0  ;;  %v10337_v16 = vpack.c.bf16 %v46_v7, %v46_v7  ;;  %v503_v27 = vld [vmem:[#allocation2 + $0xde8] sm:$0xff] }
  0x4c   :  { %v9238_v28 = vcombine.low %v466_v13, %v478_v14  ;;  %v515_v34 = vld [vmem:[#allocation2 + $0xe48] sm:$0xff]  ;;  %v574_v49 = vld [vmem:[#allocation2 + $0x1020] sm:$0xff] }
  0x4d   :  { %v10339_v25 = vpack.c.bf16 %v49_v15, %v49_v15  ;;  %v527_v35 = vld [vmem:[#allocation2 + $0xea8] sm:$0xff]  ;;  %v598_v57 = vld [vmem:[#allocation2 + $0x10e0] sm:$0xff] }
  0x4e   :  { %7115 = vmatpush1.bf16.msra.mxu0 %v9046_v21  ;;  %7238 = vmatpush1.bf16.msra.mxu1 %v9048_v22  ;;  %v9239_v21 = vcombine.high %v466_v13, %v478_v14  ;;  %v9241_v22 = vcombine.high %v467_v17, %v479_v18  ;;  %v539_v42 = vld [vmem:[#allocation2 + $0xf08] sm:$0xff] }
  0x4f   :  { %7116 = vmatprep.subr.bf16.mxu0 %v9071_v23  ;;  %7239 = vmatprep.subr.bf16.mxu1 %v9073_v24  ;;  %v490_v23 = vld [vmem:[#allocation2 + $0xd80] sm:$0xff]  ;;  %v551_v43 = vld [vmem:[#allocation2 + $0xf68] sm:$0xff] }
  0x50   :  { %v502_v24 = vld [vmem:[#allocation2 + $0xde0] sm:$0xff]  ;;  %v563_v50 = vld [vmem:[#allocation2 + $0xfc8] sm:$0xff] }
  0x51   :  { %v9262_v36 = vcombine.low %v490_v23, %v502_v24  ;;  %v575_v51 = vld [vmem:[#allocation2 + $0x1028] sm:$0xff] }
  0x52   :  { %7117 = vmatpush1.bf16.msra.mxu0 %v9070_v29  ;;  %7240 = vmatpush1.bf16.msra.mxu1 %v9072_v30  ;;  %v9240_v29 = vcombine.low %v467_v17, %v479_v18  ;;  %v9263_v30 = vcombine.high %v490_v23, %v502_v24  ;;  %v587_v58 = vld [vmem:[#allocation2 + $0x1088] sm:$0xff]  ;;  %v658_v18 = vld [vmem:[#allocation2 + $0x12c0] sm:$0xff] }
  0x53   :  { %7118 = vmatprep.subr.bf16.mxu0 %v9095_v31  ;;  %7241 = vmatprep.subr.bf16.mxu1 %v9097_v32  ;;  %v9265_v31 = vcombine.high %v491_v26, %v503_v27  ;;  %v514_v32 = vld [vmem:[#allocation2 + $0xe40] sm:$0xff]  ;;  %v599_v59 = vld [vmem:[#allocation2 + $0x10e8] sm:$0xff] }
  0x54   :  { %v9286_v44 = vcombine.low %v514_v32, %v526_v33  ;;  %v611_v3 = vld [vmem:[#allocation2 + $0x1148] sm:$0xff]  ;;  %v9360_v6 = vcombine.low %v587_v58, %v599_v59 }
  0x55   :  { %v623_v4 = vld [vmem:[#allocation2 + $0x11a8] sm:$0xff] }
  0x56   :  { %7119 = vmatpush1.bf16.msra.mxu0 %v9094_v37  ;;  %7242 = vmatpush1.bf16.msra.mxu1 %v9096_v38  ;;  %v9264_v37 = vcombine.low %v491_v26, %v503_v27  ;;  %v9287_v38 = vcombine.high %v514_v32, %v526_v33  ;;  %v9385_v8 = vcombine.high %v611_v3, %v623_v4  ;;  %v682_v27 = vld [vmem:[#allocation2 + $0x1380] sm:$0xff] }
  0x57   :  { %7120 = vmatprep.subr.bf16.mxu0 %v9119_v39  ;;  %7243 = vmatprep.subr.bf16.mxu1 %v9121_v40  ;;  %v9289_v39 = vcombine.high %v515_v34, %v527_v35  ;;  %v538_v40 = vld [vmem:[#allocation2 + $0xf00] sm:$0xff]  ;;  %v9384_v14 = vcombine.low %v611_v3, %v623_v4 }
  0x58   :  { %v9310_v52 = vcombine.low %v538_v40, %v550_v41  ;;  %v802_v4 = vld [vmem:[#allocation2 + $0x1740] sm:$0xff] }
  0x5a   :  { %7121 = vmatpush1.bf16.msra.mxu0 %v9118_v45  ;;  %7244 = vmatpush1.bf16.msra.mxu1 %v9120_v46  ;;  %v9288_v45 = vcombine.low %v515_v34, %v527_v35  ;;  %v9311_v46 = vcombine.high %v538_v40, %v550_v41  ;;  %v706_v35 = vld [vmem:[#allocation2 + $0x1440] sm:$0xff] }
  0x5b   :  { %7122 = vmatprep.subr.bf16.mxu0 %v9143_v47  ;;  %7245 = vmatprep.subr.bf16.mxu1 %v9145_v48  ;;  %v9313_v47 = vcombine.high %v539_v42, %v551_v43  ;;  %v562_v48 = vld [vmem:[#allocation2 + $0xfc0] sm:$0xff] }
  0x5c   :  { %v9334_v60 = vcombine.low %v562_v48, %v574_v49 }
  0x5e   :  { %7123 = vmatpush1.bf16.msra.mxu0 %v9142_v53  ;;  %7246 = vmatpush1.bf16.msra.mxu1 %v9144_v54  ;;  %v9312_v53 = vcombine.low %v539_v42, %v551_v43  ;;  %v9335_v54 = vcombine.high %v562_v48, %v574_v49  ;;  %v730_v43 = vld [vmem:[#allocation2 + $0x1500] sm:$0xff] }
  0x5f   :  { %7124 = vmatprep.subr.bf16.mxu0 %v9167_v55  ;;  %7247 = vmatprep.subr.bf16.mxu1 %v9169_v56  ;;  %v9337_v55 = vcombine.high %v563_v50, %v575_v51  ;;  %v586_v56 = vld [vmem:[#allocation2 + $0x1080] sm:$0xff] }
  0x60   :  { %v9359_v63 = vcombine.high %v586_v56, %v598_v57  ;;  %v9358_v5 = vcombine.low %v586_v56, %v598_v57 }
  0x62   :  { %7125 = vmatpush1.bf16.msra.mxu0 %v9166_v62  ;;  %7248 = vmatpush1.bf16.msra.mxu1 %v9168_v0  ;;  %v9336_v62 = vcombine.low %v563_v50, %v575_v51  ;;  %v9361_v0 = vcombine.high %v587_v58, %v599_v59  ;;  %v754_v51 = vld [vmem:[#allocation2 + $0x15c0] sm:$0xff] }
  0x63   :  { %7126 = vmatprep.subr.bf16.mxu0 %v9191_v1  ;;  %7249 = vmatprep.subr.bf16.mxu1 %v9193_v2  ;;  %v610_v1 = vld [vmem:[#allocation2 + $0x1140] sm:$0xff] }
  0x64   :  { %v622_v2 = vld [vmem:[#allocation2 + $0x11a0] sm:$0xff] }
  0x65   :  { %v9383_v7 = vcombine.high %v610_v1, %v622_v2  ;;  %v9382_v13 = vcombine.low %v610_v1, %v622_v2  ;;  %v778_v59 = vld [vmem:[#allocation2 + $0x1680] sm:$0xff] }
  0x66   :  { %7127 = vmatpush1.bf16.msra.mxu0 %v9190_v9  ;;  %7250 = vmatpush1.bf16.msra.mxu1 %v9192_v10  ;;  %v634_v9 = vld [vmem:[#allocation2 + $0x1200] sm:$0xff] }
  0x67   :  { %7137 = vmatprep.subr.bf16.mxu0 %v9215_v11  ;;  %7260 = vmatprep.subr.bf16.mxu1 %v9217_v12  ;;  %v646_v10 = vld [vmem:[#allocation2 + $0x1260] sm:$0xff]  ;;  %v635_v11 = vld [vmem:[#allocation2 + $0x1208] sm:$0xff] }
  0x68   :  { %v647_v12 = vld [vmem:[#allocation2 + $0x1268] sm:$0xff]  ;;  %v9407_v15 = vcombine.high %v634_v9, %v646_v10 }
  0x69   :  { %7129 = vmatmul.mubr.bf16.vlgmr.msra.gmra.mrb[0].mxu0 %v10337_v16  ;;  %7252 = vmatmul.mubr.bf16.vlgmr.msra.gmra.mrb[0].mxu1 %v10337_v16  ;;  %v9409_v17 = vcombine.high %v635_v11, %v647_v12  ;;  %v9408_v23 = vcombine.low %v635_v11, %v647_v12 }
  0x6a   :  { %7138 = vmatpush1.bf16.msra.mxu0 %v9214_v19  ;;  %7261 = vmatpush1.bf16.msra.mxu1 %v9216_v20  ;;  %v670_v19 = vld [vmem:[#allocation2 + $0x1320] sm:$0xff]  ;;  %v659_v20 = vld [vmem:[#allocation2 + $0x12c8] sm:$0xff] }
  0x6b   :  { %7139 = vmatprep.subr.bf16.mxu0 %v9239_v21  ;;  %7262 = vmatprep.subr.bf16.mxu1 %v9241_v22  ;;  %v671_v21 = vld [vmem:[#allocation2 + $0x1328] sm:$0xff]  ;;  %v9406_v22 = vcombine.low %v634_v9, %v646_v10  ;;  %v9431_v24 = vcombine.high %v658_v18, %v670_v19  ;;  %v42_v9 = vld [vmem:[%s10522_s0 + $0x10] sm:$0xff] }
  0x6c   :  { %7169 = vmatprep.mubr.bf16.mxu0 %v10339_v25  ;;  %7292 = vmatprep.mubr.bf16.mxu1 %v10339_v25  ;;  %v9433_v26 = vcombine.high %v659_v20, %v671_v21  ;;  %v9432_v32 = vcombine.low %v659_v20, %v671_v21 }
  0x6e   :  { %7140 = vmatpush1.bf16.msra.mxu0 %v9238_v28  ;;  %7263 = vmatpush1.bf16.msra.mxu1 %v9240_v29  ;;  %v694_v28 = vld [vmem:[#allocation2 + $0x13e0] sm:$0xff]  ;;  %v683_v29 = vld [vmem:[#allocation2 + $0x1388] sm:$0xff] }
  0x6f   :  { %7141 = vmatprep.subr.bf16.mxu0 %v9263_v30  ;;  %7264 = vmatprep.subr.bf16.mxu1 %v9265_v31  ;;  %v695_v30 = vld [vmem:[#allocation2 + $0x13e8] sm:$0xff]  ;;  %v9430_v31 = vcombine.low %v658_v18, %v670_v19  ;;  %v9455_v33 = vcombine.high %v682_v27, %v694_v28  ;;  %v48_v18 = vmax.f32 %v42_v9, 0.0 }
  0x70   :  { %v9457_v34 = vcombine.high %v683_v29, %v695_v30  ;;  %v9456_v40 = vcombine.low %v683_v29, %v695_v30  ;;  %v45_v19 = vld [vmem:[%s10522_s0 + $0x28] sm:$0xff] }
  0x71   :  { %v851_v29 = vld [vmem:[#allocation2 + $0x18c8] sm:$0xff] }
  0x72   :  { %7142 = vmatpush1.bf16.msra.mxu0 %v9262_v36  ;;  %7265 = vmatpush1.bf16.msra.mxu1 %v9264_v37  ;;  %v718_v36 = vld [vmem:[#allocation2 + $0x14a0] sm:$0xff]  ;;  %v707_v37 = vld [vmem:[#allocation2 + $0x1448] sm:$0xff] }
  0x73   :  { %7143 = vmatprep.subr.bf16.mxu0 %v9287_v38  ;;  %7266 = vmatprep.subr.bf16.mxu1 %v9289_v39  ;;  %v719_v38 = vld [vmem:[#allocation2 + $0x14a8] sm:$0xff]  ;;  %v9454_v39 = vcombine.low %v682_v27, %v694_v28  ;;  %v9479_v41 = vcombine.high %v706_v35, %v718_v36  ;;  %v51_v27 = vmax.f32 %v45_v19, 0.0  ;;  %v10351_v28 = vpack.c.bf16 %v48_v18, %v48_v18 }
  0x74   :  { %v9481_v42 = vcombine.high %v707_v37, %v719_v38  ;;  %v9480_v48 = vcombine.low %v707_v37, %v719_v38  ;;  %v863_v30 = vld [vmem:[#allocation2 + $0x1928] sm:$0xff] }
  0x75   :  { %v10353_v37 = vpack.c.bf16 %v51_v27, %v51_v27  ;;  %v875_v38 = vld [vmem:[#allocation2 + $0x1988] sm:$0xff] }
  0x76   :  { %7144 = vmatpush1.bf16.msra.mxu0 %v9286_v44  ;;  %7267 = vmatpush1.bf16.msra.mxu1 %v9288_v45  ;;  %v742_v44 = vld [vmem:[#allocation2 + $0x1560] sm:$0xff]  ;;  %v731_v45 = vld [vmem:[#allocation2 + $0x1508] sm:$0xff] }
  0x77   :  { %7145 = vmatprep.subr.bf16.mxu0 %v9311_v46  ;;  %7268 = vmatprep.subr.bf16.mxu1 %v9313_v47  ;;  %v743_v46 = vld [vmem:[#allocation2 + $0x1568] sm:$0xff]  ;;  %v9478_v47 = vcombine.low %v706_v35, %v718_v36  ;;  %v9503_v49 = vcombine.high %v730_v43, %v742_v44  ;;  %v874_v35 = vld [vmem:[#allocation2 + $0x1980] sm:$0xff] }
  0x78   :  { %v9505_v50 = vcombine.high %v731_v45, %v743_v46  ;;  %v9504_v56 = vcombine.low %v731_v45, %v743_v46  ;;  %v886_v36 = vld [vmem:[#allocation2 + $0x19e0] sm:$0xff]  ;;  %v899_v46 = vld [vmem:[#allocation2 + $0x1a48] sm:$0xff] }
  0x79   :  { %v910_v45 = vld [vmem:[#allocation2 + $0x1aa0] sm:$0xff] }
  0x7a   :  { %7146 = vmatpush1.bf16.msra.mxu0 %v9310_v52  ;;  %7269 = vmatpush1.bf16.msra.mxu1 %v9312_v53  ;;  %v766_v52 = vld [vmem:[#allocation2 + $0x1620] sm:$0xff]  ;;  %v755_v53 = vld [vmem:[#allocation2 + $0x15c8] sm:$0xff] }
  0x7b   :  { %7147 = vmatprep.subr.bf16.mxu0 %v9335_v54  ;;  %7270 = vmatprep.subr.bf16.mxu1 %v9337_v55  ;;  %v767_v54 = vld [vmem:[#allocation2 + $0x1628] sm:$0xff]  ;;  %v9502_v55 = vcombine.low %v730_v43, %v742_v44  ;;  %v9527_v57 = vcombine.high %v754_v51, %v766_v52  ;;  %v898_v44 = vld [vmem:[#allocation2 + $0x1a40] sm:$0xff] }
  0x7c   :  { %v9529_v58 = vcombine.high %v755_v53, %v767_v54  ;;  %v9528_v1 = vcombine.low %v755_v53, %v767_v54  ;;  %v934_v53 = vld [vmem:[#allocation2 + $0x1b60] sm:$0xff]  ;;  %v923_v54 = vld [vmem:[#allocation2 + $0x1b08] sm:$0xff] }
  0x7e   :  { %7148 = vmatpush1.bf16.msra.mxu0 %v9334_v60  ;;  %7271 = vmatpush1.bf16.msra.mxu1 %v9336_v62  ;;  %v790_v60 = vld [vmem:[#allocation2 + $0x16e0] sm:$0xff]  ;;  %v779_v62 = vld [vmem:[#allocation2 + $0x1688] sm:$0xff] }
  0x7f   :  { %7149 = vmatprep.subr.bf16.mxu0 %v9359_v63  ;;  %7272 = vmatprep.subr.bf16.mxu1 %v9361_v0  ;;  %v791_v63 = vld [vmem:[#allocation2 + $0x16e8] sm:$0xff]  ;;  %v9526_v0 = vcombine.low %v754_v51, %v766_v52  ;;  %v9551_v2 = vcombine.high %v778_v59, %v790_v60  ;;  %v922_v52 = vld [vmem:[#allocation2 + $0x1b00] sm:$0xff] }
  0x80   :  { %v9553_v3 = vcombine.high %v779_v62, %v791_v63  ;;  %v9552_v10 = vcombine.low %v779_v62, %v791_v63  ;;  %v958_v62 = vld [vmem:[#allocation2 + $0x1c20] sm:$0xff]  ;;  %v947_v63 = vld [vmem:[#allocation2 + $0x1bc8] sm:$0xff] }
  0x82   :  { %7150 = vmatpush1.bf16.msra.mxu0 %v9358_v5  ;;  %7273 = vmatpush1.bf16.msra.mxu1 %v9360_v6  ;;  %v814_v5 = vld [vmem:[#allocation2 + $0x17a0] sm:$0xff]  ;;  %v803_v6 = vld [vmem:[#allocation2 + $0x1748] sm:$0xff] }
  0x83   :  { %7151 = vmatprep.subr.bf16.mxu0 %v9383_v7  ;;  %7274 = vmatprep.subr.bf16.mxu1 %v9385_v8  ;;  %v815_v7 = vld [vmem:[#allocation2 + $0x17a8] sm:$0xff]  ;;  %v9550_v8 = vcombine.low %v778_v59, %v790_v60  ;;  %v9575_v11 = vcombine.high %v802_v4, %v814_v5  ;;  %v9574_v20 = vcombine.low %v802_v4, %v814_v5  ;;  %v946_v60 = vld [vmem:[#allocation2 + $0x1bc0] sm:$0xff] }
  0x84   :  { %v9577_v12 = vcombine.high %v803_v6, %v815_v7  ;;  %v9576_v21 = vcombine.low %v803_v6, %v815_v7  ;;  %v970_v5 = vld [vmem:[#allocation2 + $0x1c80] sm:$0xff]  ;;  %v971_v7 = vld [vmem:[#allocation2 + $0x1c88] sm:$0xff]  ;;  %v9718_v9 = vcombine.low %v946_v60, %v958_v62 }
  0x85   :  { %v982_v6 = vld [vmem:[#allocation2 + $0x1ce0] sm:$0xff] }
  0x86   :  { %7152 = vmatpush1.bf16.msra.mxu0 %v9382_v13  ;;  %7275 = vmatpush1.bf16.msra.mxu1 %v9384_v14  ;;  %v826_v13 = vld [vmem:[#allocation2 + $0x1800] sm:$0xff]  ;;  %v9742_v18 = vcombine.low %v970_v5, %v982_v6 }
  0x87   :  { %7153 = vmatprep.subr.bf16.mxu0 %v9407_v15  ;;  %7276 = vmatprep.subr.bf16.mxu1 %v9409_v17  ;;  %v838_v14 = vld [vmem:[#allocation2 + $0x1860] sm:$0xff]  ;;  %v827_v15 = vld [vmem:[#allocation2 + $0x1808] sm:$0xff] }
  0x88   :  { %v839_v17 = vld [vmem:[#allocation2 + $0x1868] sm:$0xff] }
  0x8a   :  { %7154 = vmatpush1.bf16.msra.mxu0 %v9406_v22  ;;  %7277 = vmatpush1.bf16.msra.mxu1 %v9408_v23  ;;  %v9599_v22 = vcombine.high %v826_v13, %v838_v14  ;;  %v9601_v23 = vcombine.high %v827_v15, %v839_v17 }
  0x8b   :  { %7155 = vmatprep.subr.bf16.mxu0 %v9431_v24  ;;  %7278 = vmatprep.subr.bf16.mxu1 %v9433_v26  ;;  %v850_v24 = vld [vmem:[#allocation2 + $0x18c0] sm:$0xff] }
  0x8c   :  { %v862_v26 = vld [vmem:[#allocation2 + $0x1920] sm:$0xff] }
  0x8e   :  { %7156 = vmatpush1.bf16.msra.mxu0 %v9430_v31  ;;  %7279 = vmatpush1.bf16.msra.mxu1 %v9432_v32  ;;  %v9598_v31 = vcombine.low %v826_v13, %v838_v14  ;;  %v9600_v32 = vcombine.low %v827_v15, %v839_v17  ;;  %v994_v13 = vld [vmem:[#allocation2 + $0x1d40] sm:$0xff]  ;;  %v995_v15 = vld [vmem:[#allocation2 + $0x1d48] sm:$0xff] }
  0x8f   :  { %7157 = vmatprep.subr.bf16.mxu0 %v9455_v33  ;;  %7280 = vmatprep.subr.bf16.mxu1 %v9457_v34  ;;  %v9623_v33 = vcombine.high %v850_v24, %v862_v26  ;;  %v9625_v34 = vcombine.high %v851_v29, %v863_v30  ;;  %v1006_v14 = vld [vmem:[#allocation2 + $0x1da0] sm:$0xff]  ;;  %v1007_v17 = vld [vmem:[#allocation2 + $0x1da8] sm:$0xff] }
  0x90   :  { %v9766_v27 = vcombine.low %v994_v13, %v1006_v14 }
  0x92   :  { %7158 = vmatpush1.bf16.msra.mxu0 %v9454_v39  ;;  %7281 = vmatpush1.bf16.msra.mxu1 %v9456_v40  ;;  %v887_v39 = vld [vmem:[#allocation2 + $0x19e8] sm:$0xff]  ;;  %v9622_v40 = vcombine.low %v850_v24, %v862_v26 }
  0x93   :  { %7159 = vmatprep.subr.bf16.mxu0 %v9479_v41  ;;  %7282 = vmatprep.subr.bf16.mxu1 %v9481_v42  ;;  %v9624_v41 = vcombine.low %v851_v29, %v863_v30  ;;  %v9647_v42 = vcombine.high %v874_v35, %v886_v36  ;;  %v9649_v43 = vcombine.high %v875_v38, %v887_v39  ;;  %v1019_v24 = vld [vmem:[#allocation2 + $0x1e08] sm:$0xff] }
  0x94   :  { %v1031_v26 = vld [vmem:[#allocation2 + $0x1e68] sm:$0xff]  ;;  %v9768_v29 = vcombine.low %v995_v15, %v1007_v17 }
  0x96   :  { %7160 = vmatpush1.bf16.msra.mxu0 %v9478_v47  ;;  %7283 = vmatpush1.bf16.msra.mxu1 %v9480_v48  ;;  %v911_v47 = vld [vmem:[#allocation2 + $0x1aa8] sm:$0xff]  ;;  %v9646_v48 = vcombine.low %v874_v35, %v886_v36 }
  0x97   :  { %7161 = vmatprep.subr.bf16.mxu0 %v9503_v49  ;;  %7284 = vmatprep.subr.bf16.mxu1 %v9505_v50  ;;  %v9648_v49 = vcombine.low %v875_v38, %v887_v39  ;;  %v9671_v50 = vcombine.high %v898_v44, %v910_v45  ;;  %v9673_v51 = vcombine.high %v899_v46, %v911_v47  ;;  %v1055_v35 = vld [vmem:[#allocation2 + $0x1f28] sm:$0xff] }
  0x98   :  { %v9792_v38 = vcombine.low %v1019_v24, %v1031_v26 }
  0x9a   :  { %7162 = vmatpush1.bf16.msra.mxu0 %v9502_v55  ;;  %7285 = vmatpush1.bf16.msra.mxu1 %v9504_v56  ;;  %v935_v55 = vld [vmem:[#allocation2 + $0x1b68] sm:$0xff]  ;;  %v9670_v56 = vcombine.low %v898_v44, %v910_v45 }
  0x9b   :  { %7163 = vmatprep.subr.bf16.mxu0 %v9527_v57  ;;  %7286 = vmatprep.subr.bf16.mxu1 %v9529_v58  ;;  %v9672_v57 = vcombine.low %v899_v46, %v911_v47  ;;  %v9695_v58 = vcombine.high %v922_v52, %v934_v53  ;;  %v9697_v59 = vcombine.high %v923_v54, %v935_v55  ;;  %v1079_v44 = vld [vmem:[#allocation2 + $0x1fe8] sm:$0xff] }
  0x9e   :  { %7164 = vmatpush1.bf16.msra.mxu0 %v9526_v0  ;;  %7287 = vmatpush1.bf16.msra.mxu1 %v9528_v1  ;;  %v959_v0 = vld [vmem:[#allocation2 + $0x1c28] sm:$0xff]  ;;  %v9694_v1 = vcombine.low %v922_v52, %v934_v53 }
  0x9f   :  { %7165 = vmatprep.subr.bf16.mxu0 %v9551_v2  ;;  %7288 = vmatprep.subr.bf16.mxu1 %v9553_v3  ;;  %v9696_v2 = vcombine.low %v923_v54, %v935_v55  ;;  %v9719_v3 = vcombine.high %v946_v60, %v958_v62  ;;  %v9721_v4 = vcombine.high %v947_v63, %v959_v0  ;;  %v1103_v52 = vld [vmem:[#allocation2 + $0x20a8] sm:$0xff] }
  0xa0   :  { %v1127_v60 = vld [vmem:[#allocation2 + $0x2168] sm:$0xff] }
  0xa2   :  { %7166 = vmatpush1.bf16.msra.mxu0 %v9550_v8  ;;  %7289 = vmatpush1.bf16.msra.mxu1 %v9552_v10  ;;  %v983_v8 = vld [vmem:[#allocation2 + $0x1ce8] sm:$0xff]  ;;  %v9720_v10 = vcombine.low %v947_v63, %v959_v0 }
  0xa3   :  { %7167 = vmatprep.subr.bf16.mxu0 %v9575_v11  ;;  %7290 = vmatprep.subr.bf16.mxu1 %v9577_v12  ;;  %v9743_v11 = vcombine.high %v970_v5, %v982_v6  ;;  %v9745_v12 = vcombine.high %v971_v7, %v983_v8  ;;  %v9744_v19 = vcombine.low %v971_v7, %v983_v8  ;;  %v1151_v5 = vld [vmem:[#allocation2 + $0x2228] sm:$0xff] }
  0xa6   :  { %7168 = vmatpush1.bf16.msra.mxu0 %v9574_v20  ;;  %7291 = vmatpush1.bf16.msra.mxu1 %v9576_v21  ;;  %v9767_v20 = vcombine.high %v994_v13, %v1006_v14  ;;  %v9769_v21 = vcombine.high %v995_v15, %v1007_v17  ;;  %v1175_v13 = vld [vmem:[#allocation2 + $0x22e8] sm:$0xff] }
  0xa7   :  { %7178 = vmatprep.subr.bf16.mxu0 %v9599_v22  ;;  %7301 = vmatprep.subr.bf16.mxu1 %v9601_v23  ;;  %v1018_v22 = vld [vmem:[#allocation2 + $0x1e00] sm:$0xff] }
  0xa8   :  { %v1030_v23 = vld [vmem:[#allocation2 + $0x1e60] sm:$0xff] }
  0xa9   :  { %7170 = vmatmul.mubr.bf16.vlgmr.msra.gmra.mrb[0].mxu0 %v10351_v28  ;;  %7293 = vmatmul.mubr.bf16.vlgmr.msra.gmra.mrb[0].mxu1 %v10351_v28  ;;  %v9791_v30 = vcombine.high %v1018_v22, %v1030_v23  ;;  %v9790_v36 = vcombine.low %v1018_v22, %v1030_v23  ;;  %v1199_v22 = vld [vmem:[#allocation2 + $0x23a8] sm:$0xff] }
  0xaa   :  { %7179 = vmatpush1.bf16.msra.mxu0 %v9598_v31  ;;  %7302 = vmatpush1.bf16.msra.mxu1 %v9600_v32  ;;  %v9793_v31 = vcombine.high %v1019_v24, %v1031_v26  ;;  %v1042_v32 = vld [vmem:[#allocation2 + $0x1ec0] sm:$0xff] }
  0xab   :  { %7180 = vmatprep.subr.bf16.mxu0 %v9623_v33  ;;  %7303 = vmatprep.subr.bf16.mxu1 %v9625_v34  ;;  %v1054_v33 = vld [vmem:[#allocation2 + $0x1f20] sm:$0xff]  ;;  %v1043_v34 = vld [vmem:[#allocation2 + $0x1ec8] sm:$0xff] }
  0xac   :  { %7210 = vmatprep.mubr.bf16.mxu0 %v10353_v37  ;;  %7333 = vmatprep.mubr.bf16.mxu1 %v10353_v37  ;;  %v9815_v39 = vcombine.high %v1042_v32, %v1054_v33  ;;  %v9814_v45 = vcombine.low %v1042_v32, %v1054_v33  ;;  %v9816_v46 = vcombine.low %v1043_v34, %v1055_v35  ;;  %v44_v24 = vld [vmem:[%s10522_s0 + $0x20] sm:$0xff]  ;;  %v61_v33 = vld [vmem:[#allocation2 + $0x18] sm:$0xff] }
  0xad   :  { %v50_v32 = vmax.f32 %v44_v24, 0.0 }
  0xae   :  { %7181 = vmatpush1.bf16.msra.mxu0 %v9622_v40  ;;  %7304 = vmatpush1.bf16.msra.mxu1 %v9624_v41  ;;  %v9817_v40 = vcombine.high %v1043_v34, %v1055_v35  ;;  %v1066_v41 = vld [vmem:[#allocation2 + $0x1f80] sm:$0xff]  ;;  %v73_v34 = vld [vmem:[#allocation2 + $0x78] sm:$0xff] }
  0xaf   :  { %7182 = vmatprep.subr.bf16.mxu0 %v9647_v42  ;;  %7305 = vmatprep.subr.bf16.mxu1 %v9649_v43  ;;  %v1078_v42 = vld [vmem:[#allocation2 + $0x1fe0] sm:$0xff]  ;;  %v1067_v43 = vld [vmem:[#allocation2 + $0x1f88] sm:$0xff] }
  0xb0   :  { %v9839_v47 = vcombine.high %v1066_v41, %v1078_v42  ;;  %v9838_v53 = vcombine.low %v1066_v41, %v1078_v42  ;;  %v9840_v54 = vcombine.low %v1067_v43, %v1079_v44  ;;  %v96_v41 = vld [vmem:[#allocation2 + $0x130] sm:$0xff]  ;;  %v10362_v42 = vpack.c.bf16 %v50_v32, %v50_v32  ;;  %v241_v32 = vld [vmem:[#allocation2 + $0x5b8] sm:$0xff] }
  0xb2   :  { %7183 = vmatpush1.bf16.msra.mxu0 %v9646_v48  ;;  %7306 = vmatpush1.bf16.msra.mxu1 %v9648_v49  ;;  %v9841_v48 = vcombine.high %v1067_v43, %v1079_v44  ;;  %v1090_v49 = vld [vmem:[#allocation2 + $0x2040] sm:$0xff]  ;;  %v85_v43 = vld [vmem:[#allocation2 + $0xd8] sm:$0xff] }
  0xb3   :  { %7184 = vmatprep.subr.bf16.mxu0 %v9671_v50  ;;  %7307 = vmatprep.subr.bf16.mxu1 %v9673_v51  ;;  %v1102_v50 = vld [vmem:[#allocation2 + $0x20a0] sm:$0xff]  ;;  %v1091_v51 = vld [vmem:[#allocation2 + $0x2048] sm:$0xff]  ;;  %v97_v44 = vld [vmem:[#allocation2 + $0x138] sm:$0xff] }
  0xb4   :  { %v9863_v55 = vcombine.high %v1090_v49, %v1102_v50  ;;  %v9862_v62 = vcombine.low %v1090_v49, %v1102_v50  ;;  %v9864_v63 = vcombine.low %v1091_v51, %v1103_v52  ;;  %v108_v49 = vld [vmem:[#allocation2 + $0x190] sm:$0xff] }
  0xb5   :  { %v120_v50 = vld [vmem:[#allocation2 + $0x1f0] sm:$0xff] }
  0xb6   :  { %7185 = vmatpush1.bf16.msra.mxu0 %v9670_v56  ;;  %7308 = vmatpush1.bf16.msra.mxu1 %v9672_v57  ;;  %v9865_v56 = vcombine.high %v1091_v51, %v1103_v52  ;;  %v1114_v57 = vld [vmem:[#allocation2 + $0x2100] sm:$0xff]  ;;  %v109_v51 = vld [vmem:[#allocation2 + $0x198] sm:$0xff] }
  0xb7   :  { %7186 = vmatprep.subr.bf16.mxu0 %v9695_v58  ;;  %7309 = vmatprep.subr.bf16.mxu1 %v9697_v59  ;;  %v1126_v58 = vld [vmem:[#allocation2 + $0x2160] sm:$0xff]  ;;  %v1115_v59 = vld [vmem:[#allocation2 + $0x2108] sm:$0xff]  ;;  %v121_v52 = vld [vmem:[#allocation2 + $0x1f8] sm:$0xff] }
  0xb8   :  { %v9887_v0 = vcombine.high %v1114_v57, %v1126_v58  ;;  %v9886_v6 = vcombine.low %v1114_v57, %v1126_v58  ;;  %v9888_v7 = vcombine.low %v1115_v59, %v1127_v60  ;;  %v132_v57 = vld [vmem:[#allocation2 + $0x250] sm:$0xff] }
  0xb9   :  { %v144_v58 = vld [vmem:[#allocation2 + $0x2b0] sm:$0xff] }
  0xba   :  { %7187 = vmatpush1.bf16.msra.mxu0 %v9694_v1  ;;  %7310 = vmatpush1.bf16.msra.mxu1 %v9696_v2  ;;  %v9889_v1 = vcombine.high %v1115_v59, %v1127_v60  ;;  %v1138_v2 = vld [vmem:[#allocation2 + $0x21c0] sm:$0xff]  ;;  %v133_v59 = vld [vmem:[#allocation2 + $0x258] sm:$0xff] }
  0xbb   :  { %7188 = vmatprep.subr.bf16.mxu0 %v9719_v3  ;;  %7311 = vmatprep.subr.bf16.mxu1 %v9721_v4  ;;  %v1150_v3 = vld [vmem:[#allocation2 + $0x2220] sm:$0xff]  ;;  %v1139_v4 = vld [vmem:[#allocation2 + $0x21c8] sm:$0xff]  ;;  %v145_v60 = vld [vmem:[#allocation2 + $0x2b8] sm:$0xff] }
  0xbc   :  { %v9911_v8 = vcombine.high %v1138_v2, %v1150_v3  ;;  %v9910_v14 = vcombine.low %v1138_v2, %v1150_v3  ;;  %v9912_v15 = vcombine.low %v1139_v4, %v1151_v5  ;;  %v156_v2 = vld [vmem:[#allocation2 + $0x310] sm:$0xff] }
  0xbd   :  { %v168_v3 = vld [vmem:[#allocation2 + $0x370] sm:$0xff] }
  0xbe   :  { %7189 = vmatpush1.bf16.msra.mxu0 %v9718_v9  ;;  %7312 = vmatpush1.bf16.msra.mxu1 %v9720_v10  ;;  %v9913_v9 = vcombine.high %v1139_v4, %v1151_v5  ;;  %v1162_v10 = vld [vmem:[#allocation2 + $0x2280] sm:$0xff]  ;;  %v157_v4 = vld [vmem:[#allocation2 + $0x318] sm:$0xff] }
  0xbf   :  { %7190 = vmatprep.subr.bf16.mxu0 %v9743_v11  ;;  %7313 = vmatprep.subr.bf16.mxu1 %v9745_v12  ;;  %v1174_v11 = vld [vmem:[#allocation2 + $0x22e0] sm:$0xff]  ;;  %v1163_v12 = vld [vmem:[#allocation2 + $0x2288] sm:$0xff]  ;;  %v169_v5 = vld [vmem:[#allocation2 + $0x378] sm:$0xff] }
  0xc0   :  { %v9935_v17 = vcombine.high %v1162_v10, %v1174_v11  ;;  %v9934_v23 = vcombine.low %v1162_v10, %v1174_v11  ;;  %v9936_v26 = vcombine.low %v1163_v12, %v1175_v13  ;;  %v180_v10 = vld [vmem:[#allocation2 + $0x3d0] sm:$0xff] }
  0xc1   :  { %v192_v11 = vld [vmem:[#allocation2 + $0x430] sm:$0xff] }
  0xc2   :  { %7191 = vmatpush1.bf16.msra.mxu0 %v9742_v18  ;;  %7314 = vmatpush1.bf16.msra.mxu1 %v9744_v19  ;;  %v9937_v18 = vcombine.high %v1163_v12, %v1175_v13  ;;  %v1186_v19 = vld [vmem:[#allocation2 + $0x2340] sm:$0xff]  ;;  %v181_v12 = vld [vmem:[#allocation2 + $0x3d8] sm:$0xff] }
  0xc3   :  { %7192 = vmatprep.subr.bf16.mxu0 %v9767_v20  ;;  %7315 = vmatprep.subr.bf16.mxu1 %v9769_v21  ;;  %v1198_v20 = vld [vmem:[#allocation2 + $0x23a0] sm:$0xff]  ;;  %v1187_v21 = vld [vmem:[#allocation2 + $0x2348] sm:$0xff]  ;;  %v193_v13 = vld [vmem:[#allocation2 + $0x438] sm:$0xff] }
  0xc4   :  { %v9958_v35 = vcombine.low %v1186_v19, %v1198_v20  ;;  %v8956_v24 = vcombine.low %v181_v12, %v193_v13 }
  0xc6   :  { %7193 = vmatpush1.bf16.msra.mxu0 %v9766_v27  ;;  %7316 = vmatpush1.bf16.msra.mxu1 %v9768_v29  ;;  %v9959_v27 = vcombine.high %v1186_v19, %v1198_v20  ;;  %v9961_v29 = vcombine.high %v1187_v21, %v1199_v22  ;;  %v204_v19 = vld [vmem:[#allocation2 + $0x490] sm:$0xff] }
  0xc7   :  { %7194 = vmatprep.subr.bf16.mxu0 %v9791_v30  ;;  %7317 = vmatprep.subr.bf16.mxu1 %v9793_v31  ;;  %v60_v30 = vld [vmem:[#allocation2 + $0x10] sm:$0xff] }
  0xc8   :  { %v72_v31 = vld [vmem:[#allocation2 + $0x70] sm:$0xff] }
  0xc9   :  { %v216_v20 = vld [vmem:[#allocation2 + $0x4f0] sm:$0xff] }
  0xca   :  { %7195 = vmatpush1.bf16.msra.mxu0 %v9790_v36  ;;  %7318 = vmatpush1.bf16.msra.mxu1 %v9792_v38  ;;  %v9960_v36 = vcombine.low %v1187_v21, %v1199_v22  ;;  %v8835_v38 = vcombine.high %v60_v30, %v72_v31  ;;  %v205_v21 = vld [vmem:[#allocation2 + $0x498] sm:$0xff] }
  0xcb   :  { %7196 = vmatprep.subr.bf16.mxu0 %v9815_v39  ;;  %7319 = vmatprep.subr.bf16.mxu1 %v9817_v40  ;;  %v8837_v39 = vcombine.high %v61_v33, %v73_v34  ;;  %v84_v40 = vld [vmem:[#allocation2 + $0xd0] sm:$0xff]  ;;  %v217_v22 = vld [vmem:[#allocation2 + $0x4f8] sm:$0xff] }
  0xce   :  { %7197 = vmatpush1.bf16.msra.mxu0 %v9814_v45  ;;  %7320 = vmatpush1.bf16.msra.mxu1 %v9816_v46  ;;  %v8834_v45 = vcombine.low %v60_v30, %v72_v31  ;;  %v8836_v46 = vcombine.low %v61_v33, %v73_v34  ;;  %v240_v30 = vld [vmem:[#allocation2 + $0x5b0] sm:$0xff]  ;;  %v229_v31 = vld [vmem:[#allocation2 + $0x558] sm:$0xff]  ;;  %v8978_v33 = vcombine.low %v204_v19, %v216_v20 }
  0xcf   :  { %7198 = vmatprep.subr.bf16.mxu0 %v9839_v47  ;;  %7321 = vmatprep.subr.bf16.mxu1 %v9841_v48  ;;  %v8859_v47 = vcombine.high %v84_v40, %v96_v41  ;;  %v8861_v48 = vcombine.high %v85_v43, %v97_v44  ;;  %v8980_v34 = vcombine.low %v205_v21, %v217_v22 }
  0xd2   :  { %7199 = vmatpush1.bf16.msra.mxu0 %v9838_v53  ;;  %7322 = vmatpush1.bf16.msra.mxu1 %v9840_v54  ;;  %v8858_v53 = vcombine.low %v84_v40, %v96_v41  ;;  %v8860_v54 = vcombine.low %v85_v43, %v97_v44  ;;  %v253_v40 = vld [vmem:[#allocation2 + $0x618] sm:$0xff]  ;;  %v9004_v44 = vcombine.low %v229_v31, %v241_v32 }
  0xd3   :  { %7200 = vmatprep.subr.bf16.mxu0 %v9863_v55  ;;  %7323 = vmatprep.subr.bf16.mxu1 %v9865_v56  ;;  %v8883_v55 = vcombine.high %v108_v49, %v120_v50  ;;  %v8885_v56 = vcombine.high %v109_v51, %v121_v52  ;;  %v265_v41 = vld [vmem:[#allocation2 + $0x678] sm:$0xff] }
  0xd6   :  { %7201 = vmatpush1.bf16.msra.mxu0 %v9862_v62  ;;  %7324 = vmatpush1.bf16.msra.mxu1 %v9864_v63  ;;  %v8882_v62 = vcombine.low %v108_v49, %v120_v50  ;;  %v8884_v63 = vcombine.low %v109_v51, %v121_v52  ;;  %v277_v49 = vld [vmem:[#allocation2 + $0x6d8] sm:$0xff]  ;;  %v9028_v52 = vcombine.low %v253_v40, %v265_v41 }
  0xd7   :  { %7202 = vmatprep.subr.bf16.mxu0 %v9887_v0  ;;  %7325 = vmatprep.subr.bf16.mxu1 %v9889_v1  ;;  %v8907_v0 = vcombine.high %v132_v57, %v144_v58  ;;  %v8909_v1 = vcombine.high %v133_v59, %v145_v60  ;;  %v289_v50 = vld [vmem:[#allocation2 + $0x738] sm:$0xff] }
  0xda   :  { %7203 = vmatpush1.bf16.msra.mxu0 %v9886_v6  ;;  %7326 = vmatpush1.bf16.msra.mxu1 %v9888_v7  ;;  %v8906_v6 = vcombine.low %v132_v57, %v144_v58  ;;  %v8908_v7 = vcombine.low %v133_v59, %v145_v60  ;;  %v301_v57 = vld [vmem:[#allocation2 + $0x798] sm:$0xff]  ;;  %v9052_v60 = vcombine.low %v277_v49, %v289_v50 }
  0xdb   :  { %7204 = vmatprep.subr.bf16.mxu0 %v9911_v8  ;;  %7327 = vmatprep.subr.bf16.mxu1 %v9913_v9  ;;  %v8931_v8 = vcombine.high %v156_v2, %v168_v3  ;;  %v8933_v9 = vcombine.high %v157_v4, %v169_v5  ;;  %v313_v58 = vld [vmem:[#allocation2 + $0x7f8] sm:$0xff] }
  0xde   :  { %7205 = vmatpush1.bf16.msra.mxu0 %v9910_v14  ;;  %7328 = vmatpush1.bf16.msra.mxu1 %v9912_v15  ;;  %v8930_v14 = vcombine.low %v156_v2, %v168_v3  ;;  %v8932_v15 = vcombine.low %v157_v4, %v169_v5  ;;  %v325_v2 = vld [vmem:[#allocation2 + $0x858] sm:$0xff]  ;;  %v9076_v5 = vcombine.low %v301_v57, %v313_v58 }
  0xdf   :  { %7206 = vmatprep.subr.bf16.mxu0 %v9935_v17  ;;  %7329 = vmatprep.subr.bf16.mxu1 %v9937_v18  ;;  %v8955_v17 = vcombine.high %v180_v10, %v192_v11  ;;  %v8957_v18 = vcombine.high %v181_v12, %v193_v13  ;;  %v337_v3 = vld [vmem:[#allocation2 + $0x8b8] sm:$0xff] }
  0xe0   :  { %v9100_v13 = vcombine.low %v325_v2, %v337_v3 }
  0xe2   :  { %7207 = vmatpush1.bf16.msra.mxu0 %v9934_v23  ;;  %7330 = vmatpush1.bf16.msra.mxu1 %v9936_v26  ;;  %v8954_v23 = vcombine.low %v180_v10, %v192_v11  ;;  %v8979_v26 = vcombine.high %v204_v19, %v216_v20  ;;  %v349_v10 = vld [vmem:[#allocation2 + $0x918] sm:$0xff] }
  0xe3   :  { %7208 = vmatprep.subr.bf16.mxu0 %v9959_v27  ;;  %7331 = vmatprep.subr.bf16.mxu1 %v9961_v29  ;;  %v8981_v27 = vcombine.high %v205_v21, %v217_v22  ;;  %v228_v29 = vld [vmem:[#allocation2 + $0x550] sm:$0xff]  ;;  %v361_v11 = vld [vmem:[#allocation2 + $0x978] sm:$0xff] }
  0xe4   :  { %v9002_v43 = vcombine.low %v228_v29, %v240_v30  ;;  %v373_v19 = vld [vmem:[#allocation2 + $0x9d8] sm:$0xff]  ;;  %v9124_v22 = vcombine.low %v349_v10, %v361_v11 }
  0xe5   :  { %v385_v20 = vld [vmem:[#allocation2 + $0xa38] sm:$0xff] }
  0xe6   :  { %7209 = vmatpush1.bf16.msra.mxu0 %v9958_v35  ;;  %7332 = vmatpush1.bf16.msra.mxu1 %v9960_v36  ;;  %v9003_v35 = vcombine.high %v228_v29, %v240_v30  ;;  %v9005_v36 = vcombine.high %v229_v31, %v241_v32  ;;  %v397_v29 = vld [vmem:[#allocation2 + $0xa98] sm:$0xff]  ;;  %v9148_v32 = vcombine.low %v373_v19, %v385_v20 }
  0xe7   :  { %7342 = vmatprep.subr.bf16.mxu0 %v8835_v38  ;;  %7465 = vmatprep.subr.bf16.mxu1 %v8837_v39  ;;  %v252_v38 = vld [vmem:[#allocation2 + $0x610] sm:$0xff]  ;;  %v409_v30 = vld [vmem:[#allocation2 + $0xaf8] sm:$0xff] }
  0xe8   :  { %v264_v39 = vld [vmem:[#allocation2 + $0x670] sm:$0xff] }
  0xe9   :  { %7211 = vmatmul.mubr.bf16.vlgmr.msra.gmra.mrb[0].mxu0 %v10362_v42  ;;  %7334 = vmatmul.mubr.bf16.vlgmr.msra.gmra.mrb[0].mxu1 %v10362_v42  ;;  %v9026_v51 = vcombine.low %v252_v38, %v264_v39 }
  0xea   :  { %7343 = vmatpush1.bf16.msra.mxu0 %v8834_v45  ;;  %7466 = vmatpush1.bf16.msra.mxu1 %v8836_v46  ;;  %v9027_v45 = vcombine.high %v252_v38, %v264_v39  ;;  %v9029_v46 = vcombine.high %v253_v40, %v265_v41  ;;  %v421_v38 = vld [vmem:[#allocation2 + $0xb58] sm:$0xff]  ;;  %v9172_v41 = vcombine.low %v397_v29, %v409_v30 }
  0xeb   :  { %7344 = vmatprep.subr.bf16.mxu0 %v8859_v47  ;;  %7467 = vmatprep.subr.bf16.mxu1 %v8861_v48  ;;  %v276_v47 = vld [vmem:[#allocation2 + $0x6d0] sm:$0xff]  ;;  %v433_v39 = vld [vmem:[#allocation2 + $0xbb8] sm:$0xff] }
  0xec   :  { %7374 = vmatprep.mubr.bf16.mxu0 %v10327_v61  ;;  %7497 = vmatprep.mubr.bf16.mxu1 %v10327_v61  ;;  %v288_v48 = vld [vmem:[#allocation2 + $0x730] sm:$0xff] }
  0xed   :  { %v9050_v59 = vcombine.low %v276_v47, %v288_v48 }
  0xee   :  { %7345 = vmatpush1.bf16.msra.mxu0 %v8858_v53  ;;  %7468 = vmatpush1.bf16.msra.mxu1 %v8860_v54  ;;  %v9051_v53 = vcombine.high %v276_v47, %v288_v48  ;;  %v9053_v54 = vcombine.high %v277_v49, %v289_v50  ;;  %v445_v47 = vld [vmem:[#allocation2 + $0xc18] sm:$0xff]  ;;  %v9196_v50 = vcombine.low %v421_v38, %v433_v39 }
  0xef   :  { %7346 = vmatprep.subr.bf16.mxu0 %v8883_v55  ;;  %7469 = vmatprep.subr.bf16.mxu1 %v8885_v56  ;;  %v300_v55 = vld [vmem:[#allocation2 + $0x790] sm:$0xff]  ;;  %v457_v48 = vld [vmem:[#allocation2 + $0xc78] sm:$0xff] }
  0xf0   :  { %v312_v56 = vld [vmem:[#allocation2 + $0x7f0] sm:$0xff] }
  0xf1   :  { %v9074_v4 = vcombine.low %v300_v55, %v312_v56 }
  0xf2   :  { %7347 = vmatpush1.bf16.msra.mxu0 %v8882_v62  ;;  %7470 = vmatpush1.bf16.msra.mxu1 %v8884_v63  ;;  %v9075_v62 = vcombine.high %v300_v55, %v312_v56  ;;  %v9077_v63 = vcombine.high %v301_v57, %v313_v58  ;;  %v469_v55 = vld [vmem:[#allocation2 + $0xcd8] sm:$0xff]  ;;  %v9220_v58 = vcombine.low %v445_v47, %v457_v48 }
  0xf3   :  { %7348 = vmatprep.subr.bf16.mxu0 %v8907_v0  ;;  %7471 = vmatprep.subr.bf16.mxu1 %v8909_v1  ;;  %v324_v0 = vld [vmem:[#allocation2 + $0x850] sm:$0xff]  ;;  %v481_v56 = vld [vmem:[#allocation2 + $0xd38] sm:$0xff] }
  0xf4   :  { %v336_v1 = vld [vmem:[#allocation2 + $0x8b0] sm:$0xff] }
  0xf5   :  { %v9098_v12 = vcombine.low %v324_v0, %v336_v1 }
  0xf6   :  { %7349 = vmatpush1.bf16.msra.mxu0 %v8906_v6  ;;  %7472 = vmatpush1.bf16.msra.mxu1 %v8908_v7  ;;  %v9099_v6 = vcombine.high %v324_v0, %v336_v1  ;;  %v9101_v7 = vcombine.high %v325_v2, %v337_v3  ;;  %v493_v0 = vld [vmem:[#allocation2 + $0xd98] sm:$0xff]  ;;  %v9244_v3 = vcombine.low %v469_v55, %v481_v56 }
  0xf7   :  { %7350 = vmatprep.subr.bf16.mxu0 %v8931_v8  ;;  %7473 = vmatprep.subr.bf16.mxu1 %v8933_v9  ;;  %v348_v8 = vld [vmem:[#allocation2 + $0x910] sm:$0xff]  ;;  %v505_v1 = vld [vmem:[#allocation2 + $0xdf8] sm:$0xff] }
  0xf8   :  { %v360_v9 = vld [vmem:[#allocation2 + $0x970] sm:$0xff] }
  0xf9   :  { %v9122_v21 = vcombine.low %v348_v8, %v360_v9 }
  0xfa   :  { %7351 = vmatpush1.bf16.msra.mxu0 %v8930_v14  ;;  %7474 = vmatpush1.bf16.msra.mxu1 %v8932_v15  ;;  %v9123_v14 = vcombine.high %v348_v8, %v360_v9  ;;  %v9125_v15 = vcombine.high %v349_v10, %v361_v11  ;;  %v517_v8 = vld [vmem:[#allocation2 + $0xe58] sm:$0xff]  ;;  %v9268_v11 = vcombine.low %v493_v0, %v505_v1 }
  0xfb   :  { %7352 = vmatprep.subr.bf16.mxu0 %v8955_v17  ;;  %7475 = vmatprep.subr.bf16.mxu1 %v8957_v18  ;;  %v372_v17 = vld [vmem:[#allocation2 + $0x9d0] sm:$0xff]  ;;  %v529_v9 = vld [vmem:[#allocation2 + $0xeb8] sm:$0xff] }
  0xfc   :  { %v384_v18 = vld [vmem:[#allocation2 + $0xa30] sm:$0xff] }
  0xfd   :  { %v9146_v31 = vcombine.low %v372_v17, %v384_v18 }
  0xfe   :  { %7353 = vmatpush1.bf16.msra.mxu0 %v8954_v23  ;;  %7476 = vmatpush1.bf16.msra.mxu1 %v8956_v24  ;;  %v9147_v23 = vcombine.high %v372_v17, %v384_v18  ;;  %v9149_v24 = vcombine.high %v373_v19, %v385_v20  ;;  %v541_v17 = vld [vmem:[#allocation2 + $0xf18] sm:$0xff]  ;;  %v9292_v20 = vcombine.low %v517_v8, %v529_v9 }
  0xff   :  { %7354 = vmatprep.subr.bf16.mxu0 %v8979_v26  ;;  %7477 = vmatprep.subr.bf16.mxu1 %v8981_v27  ;;  %v396_v26 = vld [vmem:[#allocation2 + $0xa90] sm:$0xff]  ;;  %v553_v18 = vld [vmem:[#allocation2 + $0xf78] sm:$0xff] }
 0x100   :  { %v408_v27 = vld [vmem:[#allocation2 + $0xaf0] sm:$0xff] }
 0x101   :  { %v9170_v40 = vcombine.low %v396_v26, %v408_v27 }
 0x102   :  { %7355 = vmatpush1.bf16.msra.mxu0 %v8978_v33  ;;  %7478 = vmatpush1.bf16.msra.mxu1 %v8980_v34  ;;  %v9171_v33 = vcombine.high %v396_v26, %v408_v27  ;;  %v9173_v34 = vcombine.high %v397_v29, %v409_v30  ;;  %v565_v26 = vld [vmem:[#allocation2 + $0xfd8] sm:$0xff]  ;;  %v9316_v30 = vcombine.low %v541_v17, %v553_v18 }
 0x103   :  { %7356 = vmatprep.subr.bf16.mxu0 %v9003_v35  ;;  %7479 = vmatprep.subr.bf16.mxu1 %v9005_v36  ;;  %v420_v35 = vld [vmem:[#allocation2 + $0xb50] sm:$0xff]  ;;  %v577_v27 = vld [vmem:[#allocation2 + $0x1038] sm:$0xff] }
 0x104   :  { %v432_v36 = vld [vmem:[#allocation2 + $0xbb0] sm:$0xff] }
 0x105   :  { %v9194_v49 = vcombine.low %v420_v35, %v432_v36 }
 0x106   :  { %7357 = vmatpush1.bf16.msra.mxu0 %v9002_v43  ;;  %7480 = vmatpush1.bf16.msra.mxu1 %v9004_v44  ;;  %v9195_v43 = vcombine.high %v420_v35, %v432_v36  ;;  %v9197_v44 = vcombine.high %v421_v38, %v433_v39  ;;  %v589_v35 = vld [vmem:[#allocation2 + $0x1098] sm:$0xff]  ;;  %v9340_v39 = vcombine.low %v565_v26, %v577_v27 }
 0x107   :  { %7358 = vmatprep.subr.bf16.mxu0 %v9027_v45  ;;  %7481 = vmatprep.subr.bf16.mxu1 %v9029_v46  ;;  %v444_v45 = vld [vmem:[#allocation2 + $0xc10] sm:$0xff]  ;;  %v601_v36 = vld [vmem:[#allocation2 + $0x10f8] sm:$0xff] }
 0x108   :  { %v456_v46 = vld [vmem:[#allocation2 + $0xc70] sm:$0xff] }
 0x109   :  { %v9218_v57 = vcombine.low %v444_v45, %v456_v46 }
 0x10a   :  { %7359 = vmatpush1.bf16.msra.mxu0 %v9026_v51  ;;  %7482 = vmatpush1.bf16.msra.mxu1 %v9028_v52  ;;  %v9219_v51 = vcombine.high %v444_v45, %v456_v46  ;;  %v9221_v52 = vcombine.high %v445_v47, %v457_v48  ;;  %v613_v45 = vld [vmem:[#allocation2 + $0x1158] sm:$0xff]  ;;  %v9364_v48 = vcombine.low %v589_v35, %v601_v36 }
 0x10b   :  { %7360 = vmatprep.subr.bf16.mxu0 %v9051_v53  ;;  %7483 = vmatprep.subr.bf16.mxu1 %v9053_v54  ;;  %v468_v53 = vld [vmem:[#allocation2 + $0xcd0] sm:$0xff]  ;;  %v625_v46 = vld [vmem:[#allocation2 + $0x11b8] sm:$0xff] }
 0x10c   :  { %v480_v54 = vld [vmem:[#allocation2 + $0xd30] sm:$0xff] }
 0x10d   :  { %v9242_v2 = vcombine.low %v468_v53, %v480_v54 }
 0x10e   :  { %7361 = vmatpush1.bf16.msra.mxu0 %v9050_v59  ;;  %7484 = vmatpush1.bf16.msra.mxu1 %v9052_v60  ;;  %v9243_v59 = vcombine.high %v468_v53, %v480_v54  ;;  %v9245_v60 = vcombine.high %v469_v55, %v481_v56  ;;  %v637_v53 = vld [vmem:[#allocation2 + $0x1218] sm:$0xff]  ;;  %v9388_v56 = vcombine.low %v613_v45, %v625_v46 }
 0x10f   :  { %7362 = vmatprep.subr.bf16.mxu0 %v9075_v62  ;;  %7485 = vmatprep.subr.bf16.mxu1 %v9077_v63  ;;  %v492_v62 = vld [vmem:[#allocation2 + $0xd90] sm:$0xff]  ;;  %v649_v54 = vld [vmem:[#allocation2 + $0x1278] sm:$0xff] }
 0x110   :  { %v504_v63 = vld [vmem:[#allocation2 + $0xdf0] sm:$0xff] }
 0x111   :  { %v9266_v10 = vcombine.low %v492_v62, %v504_v63 }
 0x112   :  { %7363 = vmatpush1.bf16.msra.mxu0 %v9074_v4  ;;  %7486 = vmatpush1.bf16.msra.mxu1 %v9076_v5  ;;  %v9267_v4 = vcombine.high %v492_v62, %v504_v63  ;;  %v9269_v5 = vcombine.high %v493_v0, %v505_v1  ;;  %v661_v62 = vld [vmem:[#allocation2 + $0x12d8] sm:$0xff]  ;;  %v9412_v1 = vcombine.low %v637_v53, %v649_v54 }
 0x113   :  { %7364 = vmatprep.subr.bf16.mxu0 %v9099_v6  ;;  %7487 = vmatprep.subr.bf16.mxu1 %v9101_v7  ;;  %v516_v6 = vld [vmem:[#allocation2 + $0xe50] sm:$0xff]  ;;  %v673_v63 = vld [vmem:[#allocation2 + $0x1338] sm:$0xff] }
 0x114   :  { %v528_v7 = vld [vmem:[#allocation2 + $0xeb0] sm:$0xff] }
 0x115   :  { %v9290_v19 = vcombine.low %v516_v6, %v528_v7 }
 0x116   :  { %7365 = vmatpush1.bf16.msra.mxu0 %v9098_v12  ;;  %7488 = vmatpush1.bf16.msra.mxu1 %v9100_v13  ;;  %v9291_v12 = vcombine.high %v516_v6, %v528_v7  ;;  %v9293_v13 = vcombine.high %v517_v8, %v529_v9  ;;  %v685_v6 = vld [vmem:[#allocation2 + $0x1398] sm:$0xff]  ;;  %v9436_v9 = vcombine.low %v661_v62, %v673_v63 }
 0x117   :  { %7366 = vmatprep.subr.bf16.mxu0 %v9123_v14  ;;  %7489 = vmatprep.subr.bf16.mxu1 %v9125_v15  ;;  %v540_v14 = vld [vmem:[#allocation2 + $0xf10] sm:$0xff]  ;;  %v697_v7 = vld [vmem:[#allocation2 + $0x13f8] sm:$0xff] }
 0x118   :  { %v552_v15 = vld [vmem:[#allocation2 + $0xf70] sm:$0xff] }
 0x119   :  { %v9314_v29 = vcombine.low %v540_v14, %v552_v15 }
 0x11a   :  { %7367 = vmatpush1.bf16.msra.mxu0 %v9122_v21  ;;  %7490 = vmatpush1.bf16.msra.mxu1 %v9124_v22  ;;  %v9315_v21 = vcombine.high %v540_v14, %v552_v15  ;;  %v9317_v22 = vcombine.high %v541_v17, %v553_v18  ;;  %v709_v14 = vld [vmem:[#allocation2 + $0x1458] sm:$0xff]  ;;  %v9460_v18 = vcombine.low %v685_v6, %v697_v7 }
 0x11b   :  { %7368 = vmatprep.subr.bf16.mxu0 %v9147_v23  ;;  %7491 = vmatprep.subr.bf16.mxu1 %v9149_v24  ;;  %v564_v23 = vld [vmem:[#allocation2 + $0xfd0] sm:$0xff]  ;;  %v721_v15 = vld [vmem:[#allocation2 + $0x14b8] sm:$0xff] }
 0x11c   :  { %v576_v24 = vld [vmem:[#allocation2 + $0x1030] sm:$0xff] }
 0x11d   :  { %v9338_v38 = vcombine.low %v564_v23, %v576_v24 }
 0x11e   :  { %7369 = vmatpush1.bf16.msra.mxu0 %v9146_v31  ;;  %7492 = vmatpush1.bf16.msra.mxu1 %v9148_v32  ;;  %v9339_v31 = vcombine.high %v564_v23, %v576_v24  ;;  %v9341_v32 = vcombine.high %v565_v26, %v577_v27  ;;  %v733_v23 = vld [vmem:[#allocation2 + $0x1518] sm:$0xff]  ;;  %v9484_v27 = vcombine.low %v709_v14, %v721_v15 }
 0x11f   :  { %7370 = vmatprep.subr.bf16.mxu0 %v9171_v33  ;;  %7493 = vmatprep.subr.bf16.mxu1 %v9173_v34  ;;  %v588_v33 = vld [vmem:[#allocation2 + $0x1090] sm:$0xff]  ;;  %v745_v24 = vld [vmem:[#allocation2 + $0x1578] sm:$0xff] }
 0x120   :  { %v600_v34 = vld [vmem:[#allocation2 + $0x10f0] sm:$0xff] }
 0x121   :  { %v9362_v47 = vcombine.low %v588_v33, %v600_v34 }
 0x122   :  { %7371 = vmatpush1.bf16.msra.mxu0 %v9170_v40  ;;  %7494 = vmatpush1.bf16.msra.mxu1 %v9172_v41  ;;  %v9363_v40 = vcombine.high %v588_v33, %v600_v34  ;;  %v9365_v41 = vcombine.high %v589_v35, %v601_v36  ;;  %v757_v33 = vld [vmem:[#allocation2 + $0x15d8] sm:$0xff]  ;;  %v9508_v36 = vcombine.low %v733_v23, %v745_v24 }
 0x123   :  { %7372 = vmatprep.subr.bf16.mxu0 %v9195_v43  ;;  %7495 = vmatprep.subr.bf16.mxu1 %v9197_v44  ;;  %v612_v43 = vld [vmem:[#allocation2 + $0x1150] sm:$0xff]  ;;  %v769_v34 = vld [vmem:[#allocation2 + $0x1638] sm:$0xff] }
 0x124   :  { %v624_v44 = vld [vmem:[#allocation2 + $0x11b0] sm:$0xff] }
 0x125   :  { %v9386_v55 = vcombine.low %v612_v43, %v624_v44 }
 0x126   :  { %7373 = vmatpush1.bf16.msra.mxu0 %v9194_v49  ;;  %7496 = vmatpush1.bf16.msra.mxu1 %v9196_v50  ;;  %v9387_v49 = vcombine.high %v612_v43, %v624_v44  ;;  %v9389_v50 = vcombine.high %v613_v45, %v625_v46  ;;  %v781_v43 = vld [vmem:[#allocation2 + $0x1698] sm:$0xff]  ;;  %v9532_v46 = vcombine.low %v757_v33, %v769_v34 }
 0x127   :  { %7383 = vmatprep.subr.bf16.mxu0 %v9219_v51  ;;  %7506 = vmatprep.subr.bf16.mxu1 %v9221_v52  ;;  %v636_v51 = vld [vmem:[#allocation2 + $0x1210] sm:$0xff]  ;;  %v793_v44 = vld [vmem:[#allocation2 + $0x16f8] sm:$0xff] }
 0x128   :  { %v648_v52 = vld [vmem:[#allocation2 + $0x1270] sm:$0xff] }
 0x129   :  { %7375 = vmatmul.mubr.bf16.vlgmr.msra.gmra.mrb[4].mxu0 %v10337_v16  ;;  %7498 = vmatmul.mubr.bf16.vlgmr.msra.gmra.mrb[4].mxu1 %v10337_v16  ;;  %v9410_v0 = vcombine.low %v636_v51, %v648_v52 }
 0x12a   :  { %7384 = vmatpush1.bf16.msra.mxu0 %v9218_v57  ;;  %7507 = vmatpush1.bf16.msra.mxu1 %v9220_v58  ;;  %v9411_v57 = vcombine.high %v636_v51, %v648_v52  ;;  %v9413_v58 = vcombine.high %v637_v53, %v649_v54  ;;  %v805_v51 = vld [vmem:[#allocation2 + $0x1758] sm:$0xff]  ;;  %v9556_v54 = vcombine.low %v781_v43, %v793_v44 }
 0x12b   :  { %7385 = vmatprep.subr.bf16.mxu0 %v9243_v59  ;;  %7508 = vmatprep.subr.bf16.mxu1 %v9245_v60  ;;  %v660_v59 = vld [vmem:[#allocation2 + $0x12d0] sm:$0xff]  ;;  %v817_v52 = vld [vmem:[#allocation2 + $0x17b8] sm:$0xff] }
 0x12c   :  { %7415 = vmatprep.mubr.bf16.mxu0 %v10339_v25  ;;  %7538 = vmatprep.mubr.bf16.mxu1 %v10339_v25  ;;  %v672_v60 = vld [vmem:[#allocation2 + $0x1330] sm:$0xff] }
 0x12d   :  { %v9434_v8 = vcombine.low %v660_v59, %v672_v60 }
 0x12e   :  { %7386 = vmatpush1.bf16.msra.mxu0 %v9242_v2  ;;  %7509 = vmatpush1.bf16.msra.mxu1 %v9244_v3  ;;  %v9435_v2 = vcombine.high %v660_v59, %v672_v60  ;;  %v9437_v3 = vcombine.high %v661_v62, %v673_v63  ;;  %v829_v59 = vld [vmem:[#allocation2 + $0x1818] sm:$0xff]  ;;  %v9580_v63 = vcombine.low %v805_v51, %v817_v52 }
 0x12f   :  { %7387 = vmatprep.subr.bf16.mxu0 %v9267_v4  ;;  %7510 = vmatprep.subr.bf16.mxu1 %v9269_v5  ;;  %v684_v4 = vld [vmem:[#allocation2 + $0x1390] sm:$0xff]  ;;  %v841_v60 = vld [vmem:[#allocation2 + $0x1878] sm:$0xff] }
 0x130   :  { %v696_v5 = vld [vmem:[#allocation2 + $0x13f0] sm:$0xff] }
 0x131   :  { %v9458_v17 = vcombine.low %v684_v4, %v696_v5 }
 0x132   :  { %7388 = vmatpush1.bf16.msra.mxu0 %v9266_v10  ;;  %7511 = vmatpush1.bf16.msra.mxu1 %v9268_v11  ;;  %v9459_v10 = vcombine.high %v684_v4, %v696_v5  ;;  %v9461_v11 = vcombine.high %v685_v6, %v697_v7  ;;  %v853_v4 = vld [vmem:[#allocation2 + $0x18d8] sm:$0xff]  ;;  %v9604_v7 = vcombine.low %v829_v59, %v841_v60 }
 0x133   :  { %7389 = vmatprep.subr.bf16.mxu0 %v9291_v12  ;;  %7512 = vmatprep.subr.bf16.mxu1 %v9293_v13  ;;  %v708_v12 = vld [vmem:[#allocation2 + $0x1450] sm:$0xff]  ;;  %v865_v5 = vld [vmem:[#allocation2 + $0x1938] sm:$0xff] }
 0x134   :  { %v720_v13 = vld [vmem:[#allocation2 + $0x14b0] sm:$0xff] }
 0x135   :  { %v9482_v26 = vcombine.low %v708_v12, %v720_v13 }
 0x136   :  { %7390 = vmatpush1.bf16.msra.mxu0 %v9290_v19  ;;  %7513 = vmatpush1.bf16.msra.mxu1 %v9292_v20  ;;  %v9483_v19 = vcombine.high %v708_v12, %v720_v13  ;;  %v9485_v20 = vcombine.high %v709_v14, %v721_v15  ;;  %v877_v12 = vld [vmem:[#allocation2 + $0x1998] sm:$0xff]  ;;  %v9628_v15 = vcombine.low %v853_v4, %v865_v5 }
 0x137   :  { %7391 = vmatprep.subr.bf16.mxu0 %v9315_v21  ;;  %7514 = vmatprep.subr.bf16.mxu1 %v9317_v22  ;;  %v732_v21 = vld [vmem:[#allocation2 + $0x1510] sm:$0xff]  ;;  %v889_v13 = vld [vmem:[#allocation2 + $0x19f8] sm:$0xff] }
 0x138   :  { %v744_v22 = vld [vmem:[#allocation2 + $0x1570] sm:$0xff] }
 0x139   :  { %v9506_v35 = vcombine.low %v732_v21, %v744_v22 }
 0x13a   :  { %7392 = vmatpush1.bf16.msra.mxu0 %v9314_v29  ;;  %7515 = vmatpush1.bf16.msra.mxu1 %v9316_v30  ;;  %v9507_v29 = vcombine.high %v732_v21, %v744_v22  ;;  %v9509_v30 = vcombine.high %v733_v23, %v745_v24  ;;  %v901_v21 = vld [vmem:[#allocation2 + $0x1a58] sm:$0xff]  ;;  %v9652_v24 = vcombine.low %v877_v12, %v889_v13 }
 0x13b   :  { %7393 = vmatprep.subr.bf16.mxu0 %v9339_v31  ;;  %7516 = vmatprep.subr.bf16.mxu1 %v9341_v32  ;;  %v756_v31 = vld [vmem:[#allocation2 + $0x15d0] sm:$0xff]  ;;  %v913_v22 = vld [vmem:[#allocation2 + $0x1ab8] sm:$0xff] }
 0x13c   :  { %v768_v32 = vld [vmem:[#allocation2 + $0x1630] sm:$0xff] }
 0x13d   :  { %v9530_v45 = vcombine.low %v756_v31, %v768_v32 }
 0x13e   :  { %7394 = vmatpush1.bf16.msra.mxu0 %v9338_v38  ;;  %7517 = vmatpush1.bf16.msra.mxu1 %v9340_v39  ;;  %v9531_v38 = vcombine.high %v756_v31, %v768_v32  ;;  %v9533_v39 = vcombine.high %v757_v33, %v769_v34  ;;  %v925_v31 = vld [vmem:[#allocation2 + $0x1b18] sm:$0xff]  ;;  %v9676_v34 = vcombine.low %v901_v21, %v913_v22 }
 0x13f   :  { %7395 = vmatprep.subr.bf16.mxu0 %v9363_v40  ;;  %7518 = vmatprep.subr.bf16.mxu1 %v9365_v41  ;;  %v780_v40 = vld [vmem:[#allocation2 + $0x1690] sm:$0xff]  ;;  %v937_v32 = vld [vmem:[#allocation2 + $0x1b78] sm:$0xff] }
 0x140   :  { %v792_v41 = vld [vmem:[#allocation2 + $0x16f0] sm:$0xff] }
 0x141   :  { %v9554_v53 = vcombine.low %v780_v40, %v792_v41 }
 0x142   :  { %7396 = vmatpush1.bf16.msra.mxu0 %v9362_v47  ;;  %7519 = vmatpush1.bf16.msra.mxu1 %v9364_v48  ;;  %v9555_v47 = vcombine.high %v780_v40, %v792_v41  ;;  %v9557_v48 = vcombine.high %v781_v43, %v793_v44  ;;  %v949_v40 = vld [vmem:[#allocation2 + $0x1bd8] sm:$0xff]  ;;  %v9700_v44 = vcombine.low %v925_v31, %v937_v32 }
 0x143   :  { %7397 = vmatprep.subr.bf16.mxu0 %v9387_v49  ;;  %7520 = vmatprep.subr.bf16.mxu1 %v9389_v50  ;;  %v804_v49 = vld [vmem:[#allocation2 + $0x1750] sm:$0xff]  ;;  %v961_v41 = vld [vmem:[#allocation2 + $0x1c38] sm:$0xff] }
 0x144   :  { %v816_v50 = vld [vmem:[#allocation2 + $0x17b0] sm:$0xff] }
 0x145   :  { %v9578_v62 = vcombine.low %v804_v49, %v816_v50 }
 0x146   :  { %7398 = vmatpush1.bf16.msra.mxu0 %v9386_v55  ;;  %7521 = vmatpush1.bf16.msra.mxu1 %v9388_v56  ;;  %v9579_v55 = vcombine.high %v804_v49, %v816_v50  ;;  %v9581_v56 = vcombine.high %v805_v51, %v817_v52  ;;  %v973_v49 = vld [vmem:[#allocation2 + $0x1c98] sm:$0xff]  ;;  %v9724_v52 = vcombine.low %v949_v40, %v961_v41 }
 0x147   :  { %7399 = vmatprep.subr.bf16.mxu0 %v9411_v57  ;;  %7522 = vmatprep.subr.bf16.mxu1 %v9413_v58  ;;  %v828_v57 = vld [vmem:[#allocation2 + $0x1810] sm:$0xff]  ;;  %v985_v50 = vld [vmem:[#allocation2 + $0x1cf8] sm:$0xff] }
 0x148   :  { %v840_v58 = vld [vmem:[#allocation2 + $0x1870] sm:$0xff] }
 0x149   :  { %v9602_v6 = vcombine.low %v828_v57, %v840_v58 }
 0x14a   :  { %7400 = vmatpush1.bf16.msra.mxu0 %v9410_v0  ;;  %7523 = vmatpush1.bf16.msra.mxu1 %v9412_v1  ;;  %v9603_v0 = vcombine.high %v828_v57, %v840_v58  ;;  %v9605_v1 = vcombine.high %v829_v59, %v841_v60  ;;  %v997_v57 = vld [vmem:[#allocation2 + $0x1d58] sm:$0xff]  ;;  %v9748_v60 = vcombine.low %v973_v49, %v985_v50 }
 0x14b   :  { %7401 = vmatprep.subr.bf16.mxu0 %v9435_v2  ;;  %7524 = vmatprep.subr.bf16.mxu1 %v9437_v3  ;;  %v852_v2 = vld [vmem:[#allocation2 + $0x18d0] sm:$0xff]  ;;  %v1009_v58 = vld [vmem:[#allocation2 + $0x1db8] sm:$0xff] }
 0x14c   :  { %v864_v3 = vld [vmem:[#allocation2 + $0x1930] sm:$0xff] }
 0x14d   :  { %v9626_v14 = vcombine.low %v852_v2, %v864_v3 }
 0x14e   :  { %7402 = vmatpush1.bf16.msra.mxu0 %v9434_v8  ;;  %7525 = vmatpush1.bf16.msra.mxu1 %v9436_v9  ;;  %v9627_v8 = vcombine.high %v852_v2, %v864_v3  ;;  %v9629_v9 = vcombine.high %v853_v4, %v865_v5  ;;  %v1021_v2 = vld [vmem:[#allocation2 + $0x1e18] sm:$0xff]  ;;  %v9772_v5 = vcombine.low %v997_v57, %v1009_v58 }
 0x14f   :  { %7403 = vmatprep.subr.bf16.mxu0 %v9459_v10  ;;  %7526 = vmatprep.subr.bf16.mxu1 %v9461_v11  ;;  %v876_v10 = vld [vmem:[#allocation2 + $0x1990] sm:$0xff]  ;;  %v1033_v3 = vld [vmem:[#allocation2 + $0x1e78] sm:$0xff] }
 0x150   :  { %v888_v11 = vld [vmem:[#allocation2 + $0x19f0] sm:$0xff] }
 0x151   :  { %v9650_v23 = vcombine.low %v876_v10, %v888_v11 }
 0x152   :  { %7404 = vmatpush1.bf16.msra.mxu0 %v9458_v17  ;;  %7527 = vmatpush1.bf16.msra.mxu1 %v9460_v18  ;;  %v9651_v17 = vcombine.high %v876_v10, %v888_v11  ;;  %v9653_v18 = vcombine.high %v877_v12, %v889_v13  ;;  %v1045_v10 = vld [vmem:[#allocation2 + $0x1ed8] sm:$0xff]  ;;  %v9796_v13 = vcombine.low %v1021_v2, %v1033_v3 }
 0x153   :  { %7405 = vmatprep.subr.bf16.mxu0 %v9483_v19  ;;  %7528 = vmatprep.subr.bf16.mxu1 %v9485_v20  ;;  %v900_v19 = vld [vmem:[#allocation2 + $0x1a50] sm:$0xff]  ;;  %v1057_v11 = vld [vmem:[#allocation2 + $0x1f38] sm:$0xff] }
 0x154   :  { %v912_v20 = vld [vmem:[#allocation2 + $0x1ab0] sm:$0xff] }
 0x155   :  { %v9674_v33 = vcombine.low %v900_v19, %v912_v20 }
 0x156   :  { %7406 = vmatpush1.bf16.msra.mxu0 %v9482_v26  ;;  %7529 = vmatpush1.bf16.msra.mxu1 %v9484_v27  ;;  %v9675_v26 = vcombine.high %v900_v19, %v912_v20  ;;  %v9677_v27 = vcombine.high %v901_v21, %v913_v22  ;;  %v1069_v19 = vld [vmem:[#allocation2 + $0x1f98] sm:$0xff]  ;;  %v9820_v22 = vcombine.low %v1045_v10, %v1057_v11 }
 0x157   :  { %7407 = vmatprep.subr.bf16.mxu0 %v9507_v29  ;;  %7530 = vmatprep.subr.bf16.mxu1 %v9509_v30  ;;  %v924_v29 = vld [vmem:[#allocation2 + $0x1b10] sm:$0xff]  ;;  %v1081_v20 = vld [vmem:[#allocation2 + $0x1ff8] sm:$0xff] }
 0x158   :  { %v936_v30 = vld [vmem:[#allocation2 + $0x1b70] sm:$0xff] }
 0x159   :  { %v9698_v43 = vcombine.low %v924_v29, %v936_v30 }
 0x15a   :  { %7408 = vmatpush1.bf16.msra.mxu0 %v9506_v35  ;;  %7531 = vmatpush1.bf16.msra.mxu1 %v9508_v36  ;;  %v9699_v35 = vcombine.high %v924_v29, %v936_v30  ;;  %v9701_v36 = vcombine.high %v925_v31, %v937_v32  ;;  %v1093_v29 = vld [vmem:[#allocation2 + $0x2058] sm:$0xff]  ;;  %v9844_v32 = vcombine.low %v1069_v19, %v1081_v20 }
 0x15b   :  { %7409 = vmatprep.subr.bf16.mxu0 %v9531_v38  ;;  %7532 = vmatprep.subr.bf16.mxu1 %v9533_v39  ;;  %v948_v38 = vld [vmem:[#allocation2 + $0x1bd0] sm:$0xff]  ;;  %v1105_v30 = vld [vmem:[#allocation2 + $0x20b8] sm:$0xff] }
 0x15c   :  { %v960_v39 = vld [vmem:[#allocation2 + $0x1c30] sm:$0xff] }
 0x15d   :  { %v9722_v51 = vcombine.low %v948_v38, %v960_v39 }
 0x15e   :  { %7410 = vmatpush1.bf16.msra.mxu0 %v9530_v45  ;;  %7533 = vmatpush1.bf16.msra.mxu1 %v9532_v46  ;;  %v9723_v45 = vcombine.high %v948_v38, %v960_v39  ;;  %v9725_v46 = vcombine.high %v949_v40, %v961_v41  ;;  %v1117_v38 = vld [vmem:[#allocation2 + $0x2118] sm:$0xff]  ;;  %v9868_v41 = vcombine.low %v1093_v29, %v1105_v30 }
 0x15f   :  { %7411 = vmatprep.subr.bf16.mxu0 %v9555_v47  ;;  %7534 = vmatprep.subr.bf16.mxu1 %v9557_v48  ;;  %v972_v47 = vld [vmem:[#allocation2 + $0x1c90] sm:$0xff]  ;;  %v1129_v39 = vld [vmem:[#allocation2 + $0x2178] sm:$0xff] }
 0x160   :  { %v984_v48 = vld [vmem:[#allocation2 + $0x1cf0] sm:$0xff] }
 0x161   :  { %v9746_v59 = vcombine.low %v972_v47, %v984_v48 }
 0x162   :  { %7412 = vmatpush1.bf16.msra.mxu0 %v9554_v53  ;;  %7535 = vmatpush1.bf16.msra.mxu1 %v9556_v54  ;;  %v9747_v53 = vcombine.high %v972_v47, %v984_v48  ;;  %v9749_v54 = vcombine.high %v973_v49, %v985_v50  ;;  %v1141_v47 = vld [vmem:[#allocation2 + $0x21d8] sm:$0xff]  ;;  %v9892_v50 = vcombine.low %v1117_v38, %v1129_v39 }
 0x163   :  { %7413 = vmatprep.subr.bf16.mxu0 %v9579_v55  ;;  %7536 = vmatprep.subr.bf16.mxu1 %v9581_v56  ;;  %v996_v55 = vld [vmem:[#allocation2 + $0x1d50] sm:$0xff]  ;;  %v1153_v48 = vld [vmem:[#allocation2 + $0x2238] sm:$0xff] }
 0x164   :  { %v1008_v56 = vld [vmem:[#allocation2 + $0x1db0] sm:$0xff] }
 0x165   :  { %v9770_v4 = vcombine.low %v996_v55, %v1008_v56 }
 0x166   :  { %7414 = vmatpush1.bf16.msra.mxu0 %v9578_v62  ;;  %7537 = vmatpush1.bf16.msra.mxu1 %v9580_v63  ;;  %v9771_v62 = vcombine.high %v996_v55, %v1008_v56  ;;  %v9773_v63 = vcombine.high %v997_v57, %v1009_v58  ;;  %v1165_v55 = vld [vmem:[#allocation2 + $0x2298] sm:$0xff]  ;;  %v9916_v58 = vcombine.low %v1141_v47, %v1153_v48 }
 0x167   :  { %7424 = vmatprep.subr.bf16.mxu0 %v9603_v0  ;;  %7547 = vmatprep.subr.bf16.mxu1 %v9605_v1  ;;  %v1020_v0 = vld [vmem:[#allocation2 + $0x1e10] sm:$0xff]  ;;  %v1177_v56 = vld [vmem:[#allocation2 + $0x22f8] sm:$0xff] }
 0x168   :  { %v1032_v1 = vld [vmem:[#allocation2 + $0x1e70] sm:$0xff] }
 0x169   :  { %7416 = vmatmul.mubr.bf16.vlgmr.msra.gmra.mrb[4].mxu0 %v10351_v28  ;;  %7539 = vmatmul.mubr.bf16.vlgmr.msra.gmra.mrb[4].mxu1 %v10351_v28  ;;  %v9794_v12 = vcombine.low %v1020_v0, %v1032_v1 }
 0x16a   :  { %7425 = vmatpush1.bf16.msra.mxu0 %v9602_v6  ;;  %7548 = vmatpush1.bf16.msra.mxu1 %v9604_v7  ;;  %v9795_v6 = vcombine.high %v1020_v0, %v1032_v1  ;;  %v9797_v7 = vcombine.high %v1021_v2, %v1033_v3  ;;  %v1189_v0 = vld [vmem:[#allocation2 + $0x2358] sm:$0xff]  ;;  %v9940_v3 = vcombine.low %v1165_v55, %v1177_v56 }
 0x16b   :  { %7426 = vmatprep.subr.bf16.mxu0 %v9627_v8  ;;  %7549 = vmatprep.subr.bf16.mxu1 %v9629_v9  ;;  %v1044_v8 = vld [vmem:[#allocation2 + $0x1ed0] sm:$0xff]  ;;  %v1201_v1 = vld [vmem:[#allocation2 + $0x23b8] sm:$0xff] }
 0x16c   :  { %7456 = vmatprep.mubr.bf16.mxu0 %v10353_v37  ;;  %7579 = vmatprep.mubr.bf16.mxu1 %v10353_v37  ;;  %v1056_v9 = vld [vmem:[#allocation2 + $0x1f30] sm:$0xff] }
 0x16d   :  { %v9818_v21 = vcombine.low %v1044_v8, %v1056_v9 }
 0x16e   :  { %7427 = vmatpush1.bf16.msra.mxu0 %v9626_v14  ;;  %7550 = vmatpush1.bf16.msra.mxu1 %v9628_v15  ;;  %v9819_v14 = vcombine.high %v1044_v8, %v1056_v9  ;;  %v9821_v15 = vcombine.high %v1045_v10, %v1057_v11  ;;  %v63_v8 = vld [vmem:[#allocation2 + $0x28] sm:$0xff]  ;;  %v9964_v11 = vcombine.low %v1189_v0, %v1201_v1 }
 0x16f   :  { %7428 = vmatprep.subr.bf16.mxu0 %v9651_v17  ;;  %7551 = vmatprep.subr.bf16.mxu1 %v9653_v18  ;;  %v1068_v17 = vld [vmem:[#allocation2 + $0x1f90] sm:$0xff]  ;;  %v75_v9 = vld [vmem:[#allocation2 + $0x88] sm:$0xff] }
 0x170   :  { %v1080_v18 = vld [vmem:[#allocation2 + $0x1ff0] sm:$0xff] }
 0x171   :  { %v9842_v31 = vcombine.low %v1068_v17, %v1080_v18 }
 0x172   :  { %7429 = vmatpush1.bf16.msra.mxu0 %v9650_v23  ;;  %7552 = vmatpush1.bf16.msra.mxu1 %v9652_v24  ;;  %v9843_v23 = vcombine.high %v1068_v17, %v1080_v18  ;;  %v9845_v24 = vcombine.high %v1069_v19, %v1081_v20  ;;  %v87_v17 = vld [vmem:[#allocation2 + $0xe8] sm:$0xff]  ;;  %v8840_v20 = vcombine.low %v63_v8, %v75_v9 }
 0x173   :  { %7430 = vmatprep.subr.bf16.mxu0 %v9675_v26  ;;  %7553 = vmatprep.subr.bf16.mxu1 %v9677_v27  ;;  %v1092_v26 = vld [vmem:[#allocation2 + $0x2050] sm:$0xff]  ;;  %v99_v18 = vld [vmem:[#allocation2 + $0x148] sm:$0xff] }
 0x174   :  { %v1104_v27 = vld [vmem:[#allocation2 + $0x20b0] sm:$0xff] }
 0x175   :  { %v9866_v40 = vcombine.low %v1092_v26, %v1104_v27 }
 0x176   :  { %7431 = vmatpush1.bf16.msra.mxu0 %v9674_v33  ;;  %7554 = vmatpush1.bf16.msra.mxu1 %v9676_v34  ;;  %v9867_v33 = vcombine.high %v1092_v26, %v1104_v27  ;;  %v9869_v34 = vcombine.high %v1093_v29, %v1105_v30  ;;  %v111_v26 = vld [vmem:[#allocation2 + $0x1a8] sm:$0xff]  ;;  %v8864_v30 = vcombine.low %v87_v17, %v99_v18 }
 0x177   :  { %7432 = vmatprep.subr.bf16.mxu0 %v9699_v35  ;;  %7555 = vmatprep.subr.bf16.mxu1 %v9701_v36  ;;  %v1116_v35 = vld [vmem:[#allocation2 + $0x2110] sm:$0xff]  ;;  %v123_v27 = vld [vmem:[#allocation2 + $0x208] sm:$0xff] }
 0x178   :  { %v1128_v36 = vld [vmem:[#allocation2 + $0x2170] sm:$0xff] }
 0x179   :  { %v9890_v49 = vcombine.low %v1116_v35, %v1128_v36 }
 0x17a   :  { %7433 = vmatpush1.bf16.msra.mxu0 %v9698_v43  ;;  %7556 = vmatpush1.bf16.msra.mxu1 %v9700_v44  ;;  %v9891_v43 = vcombine.high %v1116_v35, %v1128_v36  ;;  %v9893_v44 = vcombine.high %v1117_v38, %v1129_v39  ;;  %v135_v35 = vld [vmem:[#allocation2 + $0x268] sm:$0xff]  ;;  %v1216_v38 = vlaneseq }
 0x17b   :  { %7434 = vmatprep.subr.bf16.mxu0 %v9723_v45  ;;  %7557 = vmatprep.subr.bf16.mxu1 %v9725_v46  ;;  %v1140_v45 = vld [vmem:[#allocation2 + $0x21d0] sm:$0xff]  ;;  %v147_v36 = vld [vmem:[#allocation2 + $0x2c8] sm:$0xff] }
 0x17c   :  { %v1152_v46 = vld [vmem:[#allocation2 + $0x2230] sm:$0xff] }
 0x17d   :  { %v9914_v57 = vcombine.low %v1140_v45, %v1152_v46 }
 0x17e   :  { %7435 = vmatpush1.bf16.msra.mxu0 %v9722_v51  ;;  %7558 = vmatpush1.bf16.msra.mxu1 %v9724_v52  ;;  %v9915_v51 = vcombine.high %v1140_v45, %v1152_v46  ;;  %v9917_v52 = vcombine.high %v1141_v47, %v1153_v48  ;;  %v170_v45 = vld [vmem:[#allocation2 + $0x380] sm:$0xff]  ;;  %v159_v46 = vld [vmem:[#allocation2 + $0x328] sm:$0xff]  ;;  %v10380_v48 = vshrl.u32 %v1216_v38, 7 }
 0x17f   :  { %7436 = vmatprep.subr.bf16.mxu0 %v9747_v53  ;;  %7559 = vmatprep.subr.bf16.mxu1 %v9749_v54  ;;  %v1164_v53 = vld [vmem:[#allocation2 + $0x2290] sm:$0xff]  ;;  %v171_v47 = vld [vmem:[#allocation2 + $0x388] sm:$0xff] }
 0x180   :  { %v1176_v54 = vld [vmem:[#allocation2 + $0x22f0] sm:$0xff] }
 0x181   :  { %v9938_v2 = vcombine.low %v1164_v53, %v1176_v54 }
 0x182   :  { %7437 = vmatpush1.bf16.msra.mxu0 %v9746_v59  ;;  %7560 = vmatpush1.bf16.msra.mxu1 %v9748_v60  ;;  %v9939_v59 = vcombine.high %v1164_v53, %v1176_v54  ;;  %v9941_v60 = vcombine.high %v1165_v55, %v1177_v56  ;;  %v182_v53 = vld [vmem:[#allocation2 + $0x3e0] sm:$0xff]  ;;  %v10383_v55 = vsub.s32 0, %v10380_v48  ;;  %v183_v56 = vld [vmem:[#allocation2 + $0x3e8] sm:$0xff] }
 0x183   :  { %7438 = vmatprep.subr.bf16.mxu0 %v9771_v62  ;;  %7561 = vmatprep.subr.bf16.mxu1 %v9773_v63  ;;  %v1188_v62 = vld [vmem:[#allocation2 + $0x2350] sm:$0xff]  ;;  %v194_v54 = vld [vmem:[#allocation2 + $0x440] sm:$0xff] }
 0x184   :  { %v1200_v63 = vld [vmem:[#allocation2 + $0x23b0] sm:$0xff] }
 0x185   :  { %v9962_v10 = vcombine.low %v1188_v62, %v1200_v63 }
 0x186   :  { %7439 = vmatpush1.bf16.msra.mxu0 %v9770_v4  ;;  %7562 = vmatpush1.bf16.msra.mxu1 %v9772_v5  ;;  %v9963_v4 = vcombine.high %v1188_v62, %v1200_v63  ;;  %v9965_v5 = vcombine.high %v1189_v0, %v1201_v1  ;;  %v10389_v62 = vsub.s32 1, %v10380_v48  ;;  %v8936_v63 = vcombine.low %v159_v46, %v171_v47 }
 0x187   :  { %7440 = vmatprep.subr.bf16.mxu0 %v9795_v6  ;;  %7563 = vmatprep.subr.bf16.mxu1 %v9797_v7  ;;  %v62_v6 = vld [vmem:[#allocation2 + $0x20] sm:$0xff]  ;;  %v10392_v0 = vsub.s32 3, %v10380_v48  ;;  %v8959_v1 = vcombine.high %v182_v53, %v194_v54 }
 0x188   :  { %v74_v7 = vld [vmem:[#allocation2 + $0x80] sm:$0xff] }
 0x189   :  { %v8838_v19 = vcombine.low %v62_v6, %v74_v7 }
 0x18a   :  { %7441 = vmatpush1.bf16.msra.mxu0 %v9794_v12  ;;  %7564 = vmatpush1.bf16.msra.mxu1 %v9796_v13  ;;  %v8839_v12 = vcombine.high %v62_v6, %v74_v7  ;;  %v8841_v13 = vcombine.high %v63_v8, %v75_v9  ;;  %v207_v6 = vld [vmem:[#allocation2 + $0x4a8] sm:$0xff] }
 0x18b   :  { %7442 = vmatprep.subr.bf16.mxu0 %v9819_v14  ;;  %7565 = vmatprep.subr.bf16.mxu1 %v9821_v15  ;;  %v86_v14 = vld [vmem:[#allocation2 + $0xe0] sm:$0xff]  ;;  %v219_v7 = vld [vmem:[#allocation2 + $0x508] sm:$0xff] }
 0x18c   :  { %v98_v15 = vld [vmem:[#allocation2 + $0x140] sm:$0xff] }
 0x18d   :  { %v8862_v29 = vcombine.low %v86_v14, %v98_v15 }
 0x18e   :  { %7443 = vmatpush1.bf16.msra.mxu0 %v9818_v21  ;;  %7566 = vmatpush1.bf16.msra.mxu1 %v9820_v22  ;;  %v8863_v21 = vcombine.high %v86_v14, %v98_v15  ;;  %v8865_v22 = vcombine.high %v87_v17, %v99_v18  ;;  %v8985_v15 = vcombine.high %v207_v6, %v219_v7  ;;  %v230_v17 = vld [vmem:[#allocation2 + $0x560] sm:$0xff] }
 0x18f   :  { %7444 = vmatprep.subr.bf16.mxu0 %v9843_v23  ;;  %7567 = vmatprep.subr.bf16.mxu1 %v9845_v24  ;;  %v110_v23 = vld [vmem:[#allocation2 + $0x1a0] sm:$0xff] }
 0x190   :  { %v122_v24 = vld [vmem:[#allocation2 + $0x200] sm:$0xff] }
 0x191   :  { %v8886_v39 = vcombine.low %v110_v23, %v122_v24  ;;  %v242_v18 = vld [vmem:[#allocation2 + $0x5c0] sm:$0xff] }
 0x192   :  { %7445 = vmatpush1.bf16.msra.mxu0 %v9842_v31  ;;  %7568 = vmatpush1.bf16.msra.mxu1 %v9844_v32  ;;  %v8887_v31 = vcombine.high %v110_v23, %v122_v24  ;;  %v8889_v32 = vcombine.high %v111_v26, %v123_v27  ;;  %v243_v23 = vld [vmem:[#allocation2 + $0x5c8] sm:$0xff] }
 0x193   :  { %7446 = vmatprep.subr.bf16.mxu0 %v9867_v33  ;;  %7569 = vmatprep.subr.bf16.mxu1 %v9869_v34  ;;  %v134_v33 = vld [vmem:[#allocation2 + $0x260] sm:$0xff] }
 0x194   :  { %v146_v34 = vld [vmem:[#allocation2 + $0x2c0] sm:$0xff] }
 0x196   :  { %7447 = vmatpush1.bf16.msra.mxu0 %v9866_v40  ;;  %7570 = vmatpush1.bf16.msra.mxu1 %v9868_v41  ;;  %v8888_v40 = vcombine.low %v111_v26, %v123_v27  ;;  %v8911_v41 = vcombine.high %v134_v33, %v146_v34 }
 0x197   :  { %7448 = vmatprep.subr.bf16.mxu0 %v9891_v43  ;;  %7571 = vmatprep.subr.bf16.mxu1 %v9893_v44  ;;  %v8913_v43 = vcombine.high %v135_v35, %v147_v36  ;;  %v158_v44 = vld [vmem:[#allocation2 + $0x320] sm:$0xff] }
 0x19a   :  { %7449 = vmatpush1.bf16.msra.mxu0 %v9890_v49  ;;  %7572 = vmatpush1.bf16.msra.mxu1 %v9892_v50  ;;  %v8910_v49 = vcombine.low %v134_v33, %v146_v34  ;;  %v8912_v50 = vcombine.low %v135_v35, %v147_v36  ;;  %v8984_v35 = vcombine.low %v207_v6, %v219_v7  ;;  %v302_v6 = vld [vmem:[#allocation2 + $0x7a0] sm:$0xff] }
 0x19b   :  { %7450 = vmatprep.subr.bf16.mxu0 %v9915_v51  ;;  %7573 = vmatprep.subr.bf16.mxu1 %v9917_v52  ;;  %v8935_v51 = vcombine.high %v158_v44, %v170_v45  ;;  %v8937_v52 = vcombine.high %v159_v46, %v171_v47  ;;  %v9007_v36 = vcombine.high %v230_v17, %v242_v18  ;;  %v255_v47 = vld [vmem:[#allocation2 + $0x628] sm:$0xff]  ;;  %v314_v7 = vld [vmem:[#allocation2 + $0x800] sm:$0xff] }
 0x19e   :  { %7451 = vmatpush1.bf16.msra.mxu0 %v9914_v57  ;;  %7574 = vmatpush1.bf16.msra.mxu1 %v9916_v58  ;;  %v195_v57 = vld [vmem:[#allocation2 + $0x448] sm:$0xff]  ;;  %v8934_v58 = vcombine.low %v158_v44, %v170_v45  ;;  %v266_v44 = vld [vmem:[#allocation2 + $0x680] sm:$0xff] }
 0x19f   :  { %7452 = vmatprep.subr.bf16.mxu0 %v9939_v59  ;;  %7575 = vmatprep.subr.bf16.mxu1 %v9941_v60  ;;  %v1210_v59 = vld [vmem:[#allocation4] sm:$0xff]  ;;  %v10386_v60 = vsub.s32 2, %v10380_v48 }
 0x1a0   :  { %v1223_v9 = vrot.slane %v1210_v59, %v10389_v62 }
 0x1a1   :  { %v1227_v8 = vrot.slane %v1210_v59, %v10386_v60 }
 0x1a2   :  { %7453 = vmatpush1.bf16.msra.mxu0 %v9938_v2  ;;  %7576 = vmatpush1.bf16.msra.mxu1 %v9940_v3  ;;  %v8961_v2 = vcombine.high %v183_v56, %v195_v57  ;;  %v206_v3 = vld [vmem:[#allocation2 + $0x4a0] sm:$0xff] }
 0x1a3   :  { %7454 = vmatprep.subr.bf16.mxu0 %v9963_v4  ;;  %7577 = vmatprep.subr.bf16.mxu1 %v9965_v5  ;;  %v218_v4 = vld [vmem:[#allocation2 + $0x500] sm:$0xff]  ;;  %v1219_v5 = vrot.slane %v1210_v59, %v10383_v55 }
 0x1a6   :  { %7455 = vmatpush1.bf16.msra.mxu0 %v9962_v10  ;;  %7578 = vmatpush1.bf16.msra.mxu1 %v9964_v11  ;;  %v8958_v10 = vcombine.low %v182_v53, %v194_v54  ;;  %v1231_v11 = vrot.slane %v1210_v59, %v10392_v0  ;;  %v290_v59 = vld [vmem:[#allocation2 + $0x740] sm:$0xff] }
 0x1a7   :  { %7588 = vmatprep.subr.bf16.mxu0 %v8839_v12  ;;  %7711 = vmatprep.subr.bf16.mxu1 %v8841_v13  ;;  %v8960_v12 = vcombine.low %v183_v56, %v195_v57  ;;  %v8983_v13 = vcombine.high %v206_v3, %v218_v4 }
 0x1a9   :  { %7457 = vmatmul.mubr.bf16.vlgmr.msra.gmra.mrb[4].mxu0 %v10362_v42  ;;  %7580 = vmatmul.mubr.bf16.vlgmr.msra.gmra.mrb[4].mxu1 %v10362_v42 }
 0x1aa   :  { %7589 = vmatpush1.bf16.msra.mxu0 %v8838_v19  ;;  %7712 = vmatpush1.bf16.msra.mxu1 %v8840_v20 }
 0x1ab   :  { %7590 = vmatprep.subr.bf16.mxu0 %v8863_v21  ;;  %7713 = vmatprep.subr.bf16.mxu1 %v8865_v22  ;;  %v231_v22 = vld [vmem:[#allocation2 + $0x568] sm:$0xff] }
 0x1ac   :  { %7620 = vmatprep.mubr.bf16.mxu0 %v10327_v61  ;;  %7743 = vmatprep.mubr.bf16.mxu1 %v10327_v61  ;;  %v9008_v54 = vcombine.low %v231_v22, %v243_v23 }
 0x1ae   :  { %7591 = vmatpush1.bf16.msra.mxu0 %v8862_v29  ;;  %7714 = vmatpush1.bf16.msra.mxu1 %v8864_v30  ;;  %v8982_v30 = vcombine.low %v206_v3, %v218_v4 }
 0x1af   :  { %7592 = vmatprep.subr.bf16.mxu0 %v8887_v31  ;;  %7715 = vmatprep.subr.bf16.mxu1 %v8889_v32 }
 0x1b2   :  { %7593 = vmatpush1.bf16.msra.mxu0 %v8886_v39  ;;  %7716 = vmatpush1.bf16.msra.mxu1 %v8888_v40 }
 0x1b3   :  { %7594 = vmatprep.subr.bf16.mxu0 %v8911_v41  ;;  %7717 = vmatprep.subr.bf16.mxu1 %v8913_v43  ;;  %v9009_v41 = vcombine.high %v231_v22, %v243_v23  ;;  %v254_v43 = vld [vmem:[#allocation2 + $0x620] sm:$0xff]  ;;  %v9078_v22 = vcombine.low %v302_v6, %v314_v7 }
 0x1b4   :  { %v9031_v56 = vcombine.high %v254_v43, %v266_v44 }
 0x1b6   :  { %7595 = vmatpush1.bf16.msra.mxu0 %v8910_v49  ;;  %7718 = vmatpush1.bf16.msra.mxu1 %v8912_v50  ;;  %v267_v49 = vld [vmem:[#allocation2 + $0x688] sm:$0xff] }
 0x1b7   :  { %7596 = vmatprep.subr.bf16.mxu0 %v8935_v51  ;;  %7719 = vmatprep.subr.bf16.mxu1 %v8937_v52  ;;  %v9006_v52 = vcombine.low %v230_v17, %v242_v18  ;;  %v9033_v57 = vcombine.high %v255_v47, %v267_v49  ;;  %v9032_v3 = vcombine.low %v255_v47, %v267_v49  ;;  %v327_v18 = vld [vmem:[#allocation2 + $0x868] sm:$0xff] }
 0x1ba   :  { %7597 = vmatpush1.bf16.msra.mxu0 %v8934_v58  ;;  %7720 = vmatpush1.bf16.msra.mxu1 %v8936_v63  ;;  %v278_v58 = vld [vmem:[#allocation2 + $0x6e0] sm:$0xff]  ;;  %v279_v63 = vld [vmem:[#allocation2 + $0x6e8] sm:$0xff] }
 0x1bb   :  { %7598 = vmatprep.subr.bf16.mxu0 %v8959_v1  ;;  %7721 = vmatprep.subr.bf16.mxu1 %v8961_v2  ;;  %v291_v1 = vld [vmem:[#allocation2 + $0x748] sm:$0xff]  ;;  %v9030_v2 = vcombine.low %v254_v43, %v266_v44  ;;  %v9055_v4 = vcombine.high %v278_v58, %v290_v59  ;;  %v374_v43 = vld [vmem:[#allocation2 + $0x9e0] sm:$0xff] }
 0x1bc   :  { %v7212_v14 = vpop.f32.mrb[0].mxu0  ;;  %v7335_v20 = vpop.f32.mrb[0].mxu1  ;;  %v386_v44 = vld [vmem:[#allocation2 + $0xa40] sm:$0xff] }
 0x1bd   :  { %v10006_v19 = vadd.f32 %v7212_v14, %v1219_v5  ;;  %v7214_v21 = vpop.f32.mrb[1].mxu0  ;;  %v10008_v24 = vadd.f32 %v7335_v20, %v1227_v8  ;;  %v7337_v27 = vpop.f32.mrb[1].mxu1  ;;  %v9057_v5 = vcombine.high %v279_v63, %v291_v1  ;;  %v303_v8 = vld [vmem:[#allocation2 + $0x7a8] sm:$0xff]  ;;  %v326_v14 = vld [vmem:[#allocation2 + $0x860] sm:$0xff] }
 0x1be   :  { %v10007_v26 = vadd.f32 %v7214_v21, %v1223_v9  ;;  %v7216_v29 = vpop.f32.mrb[2].mxu0  ;;  %7599 = vmatpush1.bf16.msra.mxu0 %v8958_v10  ;;  %v10009_v32 = vadd.f32 %v7337_v27, %v1231_v11  ;;  %v7339_v33 = vpop.f32.mrb[2].mxu1  ;;  %7722 = vmatpush1.bf16.msra.mxu1 %v8960_v12  ;;  %v315_v9 = vld [vmem:[#allocation2 + $0x808] sm:$0xff]  ;;  %v9054_v10 = vcombine.low %v278_v58, %v290_v59 }
 0x1bf   :  { %v8572_v31 = vsub.f32 0.0, %v10006_v19  ;;  %v7217_v34 = vpop.f32.mrb[3].mxu0  ;;  %7600 = vmatprep.subr.bf16.mxu0 %v8983_v13  ;;  %v8574_v38 = vsub.f32 0.0, %v10008_v24  ;;  %v7340_v40 = vpop.f32.mrb[3].mxu1  ;;  %7723 = vmatprep.subr.bf16.mxu1 %v8985_v15  ;;  %v9056_v11 = vcombine.low %v279_v63, %v291_v1  ;;  %v9079_v12 = vcombine.high %v302_v6, %v314_v7  ;;  %v338_v15 = vld [vmem:[#allocation2 + $0x8c0] sm:$0xff]  ;;  %v339_v19 = vld [vmem:[#allocation2 + $0x8c8] sm:$0xff] }
 0x1c0   :  { %v8573_v39 = vsub.f32 0.0, %v10007_v26  ;;  %v8575_v46 = vsub.f32 0.0, %v10009_v32  ;;  %v9081_v13 = vcombine.high %v303_v8, %v315_v9  ;;  %v9080_v26 = vcombine.low %v303_v8, %v315_v9  ;;  %v350_v32 = vld [vmem:[#allocation2 + $0x920] sm:$0xff]  ;;  %v423_v8 = vld [vmem:[#allocation2 + $0xb68] sm:$0xff] }
 0x1c1   :  { %v8596_v45 = vmul.f32 1.442695, %v8572_v31  ;;  %v8600_v50 = vmul.f32 1.442695, %v8574_v38  ;;  %v9103_v27 = vcombine.high %v326_v14, %v338_v15  ;;  %v9105_v31 = vcombine.high %v327_v18, %v339_v19  ;;  %v362_v33 = vld [vmem:[#allocation2 + $0x980] sm:$0xff]  ;;  %v435_v9 = vld [vmem:[#allocation2 + $0xbc8] sm:$0xff] }
 0x1c2   :  { %v8598_v51 = vmul.f32 1.442695, %v8573_v39  ;;  %7601 = vmatpush1.bf16.msra.mxu0 %v8982_v30  ;;  %v8602_v53 = vmul.f32 1.442695, %v8575_v46  ;;  %7724 = vmatpush1.bf16.msra.mxu1 %v8984_v35  ;;  %v351_v35 = vld [vmem:[#allocation2 + $0x928] sm:$0xff]  ;;  %v9102_v38 = vcombine.low %v326_v14, %v338_v15  ;;  %v9104_v39 = vcombine.low %v327_v18, %v339_v19  ;;  %v446_v15 = vld [vmem:[#allocation2 + $0xc20] sm:$0xff] }
 0x1c3   :  { %10130 = vpow2.f32 %v8596_v45  ;;  %7602 = vmatprep.subr.bf16.mxu0 %v9007_v36  ;;  %7725 = vmatprep.subr.bf16.mxu1 %v9009_v41  ;;  %v363_v36 = vld [vmem:[#allocation2 + $0x988] sm:$0xff]  ;;  %v9127_v40 = vcombine.high %v350_v32, %v362_v33  ;;  %v9126_v47 = vcombine.low %v350_v32, %v362_v33  ;;  %v9150_v58 = vcombine.low %v374_v43, %v386_v44 }
 0x1c4   :  { %10132 = vpow2.f32 %v8600_v50  ;;  %v9129_v41 = vcombine.high %v351_v35, %v363_v36  ;;  %v375_v45 = vld [vmem:[#allocation2 + $0x9e8] sm:$0xff]  ;;  %v9128_v49 = vcombine.low %v351_v35, %v363_v36  ;;  %v9151_v50 = vcombine.high %v374_v43, %v386_v44  ;;  %v506_v35 = vld [vmem:[#allocation2 + $0xe00] sm:$0xff] }
 0x1c5   :  { %10134 = vpow2.f32 %v8598_v51  ;;  %v387_v46 = vld [vmem:[#allocation2 + $0xa48] sm:$0xff]  ;;  %v9201_v14 = vcombine.high %v423_v8, %v435_v9  ;;  %v518_v44 = vld [vmem:[#allocation2 + $0xe60] sm:$0xff] }
 0x1c6   :  { %10136 = vpow2.f32 %v8602_v53  ;;  %7603 = vmatpush1.bf16.msra.mxu0 %v9006_v52  ;;  %7726 = vmatpush1.bf16.msra.mxu1 %v9008_v54  ;;  %v9153_v51 = vcombine.high %v375_v45, %v387_v46  ;;  %v398_v52 = vld [vmem:[#allocation2 + $0xaa0] sm:$0xff]  ;;  %v399_v54 = vld [vmem:[#allocation2 + $0xaa8] sm:$0xff]  ;;  %v9152_v63 = vcombine.low %v375_v45, %v387_v46 }
 0x1c7   :  { %7604 = vmatprep.subr.bf16.mxu0 %v9031_v56  ;;  %7727 = vmatprep.subr.bf16.mxu1 %v9033_v57  ;;  %v410_v53 = vld [vmem:[#allocation2 + $0xb00] sm:$0xff]  ;;  %v411_v56 = vld [vmem:[#allocation2 + $0xb08] sm:$0xff] }
 0x1c8   :  { %v9175_v1 = vcombine.high %v398_v52, %v410_v53  ;;  %v447_v18 = vld [vmem:[#allocation2 + $0xc28] sm:$0xff]  ;;  %v530_v45 = vld [vmem:[#allocation2 + $0xec0] sm:$0xff] }
 0x1c9   :  { %v459_v19 = vld [vmem:[#allocation2 + $0xc88] sm:$0xff] }
 0x1ca   :  { %7605 = vmatpush1.bf16.msra.mxu0 %v9030_v2  ;;  %7728 = vmatpush1.bf16.msra.mxu1 %v9032_v3  ;;  %v9177_v3 = vcombine.high %v399_v54, %v411_v56  ;;  %v495_v36 = vld [vmem:[#allocation2 + $0xda8] sm:$0xff] }
 0x1cb   :  { %7606 = vmatprep.subr.bf16.mxu0 %v9055_v4  ;;  %7729 = vmatprep.subr.bf16.mxu1 %v9057_v5  ;;  %v422_v4 = vld [vmem:[#allocation2 + $0xb60] sm:$0xff]  ;;  %v519_v46 = vld [vmem:[#allocation2 + $0xe68] sm:$0xff] }
 0x1cc   :  { %v434_v5 = vld [vmem:[#allocation2 + $0xbc0] sm:$0xff] }
 0x1cd   :  { %v10131_v17 = vpop.eup %10130 }
 0x1ce   :  { %v10133_v20 = vpop.eup %10132  ;;  %v8644_v21 = vadd.f32 1.0, %v10131_v17  ;;  %7607 = vmatpush1.bf16.msra.mxu0 %v9054_v10  ;;  %7730 = vmatpush1.bf16.msra.mxu1 %v9056_v11  ;;  %v9174_v11 = vcombine.low %v398_v52, %v410_v53  ;;  %v458_v17 = vld [vmem:[#allocation2 + $0xc80] sm:$0xff] }
 0x1cf   :  { %v10135_v23 = vpop.eup %10134  ;;  %v8646_v24 = vadd.f32 1.0, %v10133_v20  ;;  %7608 = vmatprep.subr.bf16.mxu0 %v9079_v12  ;;  %7731 = vmatprep.subr.bf16.mxu1 %v9081_v13  ;;  %v9176_v12 = vcombine.low %v399_v54, %v411_v56  ;;  %v9199_v13 = vcombine.high %v422_v4, %v434_v5  ;;  %v9198_v20 = vcombine.low %v422_v4, %v434_v5  ;;  %v542_v53 = vld [vmem:[#allocation2 + $0xf20] sm:$0xff]  ;;  %v543_v56 = vld [vmem:[#allocation2 + $0xf28] sm:$0xff] }
 0x1d0   :  { %v10137_v29 = vpop.eup %10136  ;;  %10138 = vrcp.f32 %v8644_v21  ;;  %v8645_v30 = vadd.f32 1.0, %v10135_v23  ;;  %v9200_v21 = vcombine.low %v423_v8, %v435_v9  ;;  %v9225_v23 = vcombine.high %v447_v18, %v459_v19  ;;  %v554_v54 = vld [vmem:[#allocation2 + $0xf80] sm:$0xff]  ;;  %v567_v4 = vld [vmem:[#allocation2 + $0xfe8] sm:$0xff] }
 0x1d1   :  { %10140 = vrcp.f32 %v8646_v24  ;;  %v8647_v34 = vadd.f32 1.0, %v10137_v29  ;;  %v470_v24 = vld [vmem:[#allocation2 + $0xce0] sm:$0xff]  ;;  %v483_v29 = vld [vmem:[#allocation2 + $0xd48] sm:$0xff] }
 0x1d2   :  { %10142 = vrcp.f32 %v8645_v30  ;;  %7609 = vmatpush1.bf16.msra.mxu0 %v9078_v22  ;;  %7732 = vmatpush1.bf16.msra.mxu1 %v9080_v26  ;;  %v9223_v22 = vcombine.high %v446_v15, %v458_v17  ;;  %v482_v26 = vld [vmem:[#allocation2 + $0xd40] sm:$0xff]  ;;  %v9222_v30 = vcombine.low %v446_v15, %v458_v17  ;;  %v579_v5 = vld [vmem:[#allocation2 + $0x1048] sm:$0xff] }
 0x1d3   :  { %10144 = vrcp.f32 %v8647_v34  ;;  %7610 = vmatprep.subr.bf16.mxu0 %v9103_v27  ;;  %7733 = vmatprep.subr.bf16.mxu1 %v9105_v31  ;;  %v471_v27 = vld [vmem:[#allocation2 + $0xce8] sm:$0xff]  ;;  %v9224_v31 = vcombine.low %v447_v18, %v459_v19  ;;  %v9247_v32 = vcombine.high %v470_v24, %v482_v26  ;;  %v494_v34 = vld [vmem:[#allocation2 + $0xda0] sm:$0xff]  ;;  %v9345_v9 = vcombine.high %v567_v4, %v579_v5 }
 0x1d4   :  { %v9249_v33 = vcombine.high %v471_v27, %v483_v29  ;;  %v9344_v15 = vcombine.low %v567_v4, %v579_v5  ;;  %v614_v19 = vld [vmem:[#allocation2 + $0x1160] sm:$0xff] }
 0x1d5   :  { %v734_v5 = vld [vmem:[#allocation2 + $0x1520] sm:$0xff] }
 0x1d6   :  { %7611 = vmatpush1.bf16.msra.mxu0 %v9102_v38  ;;  %7734 = vmatpush1.bf16.msra.mxu1 %v9104_v39  ;;  %v507_v38 = vld [vmem:[#allocation2 + $0xe08] sm:$0xff]  ;;  %v9246_v39 = vcombine.low %v470_v24, %v482_v26 }
 0x1d7   :  { %7612 = vmatprep.subr.bf16.mxu0 %v9127_v40  ;;  %7735 = vmatprep.subr.bf16.mxu1 %v9129_v41  ;;  %v9248_v40 = vcombine.low %v471_v27, %v483_v29  ;;  %v9271_v41 = vcombine.high %v494_v34, %v506_v35  ;;  %v9273_v43 = vcombine.high %v495_v36, %v507_v38  ;;  %v638_v29 = vld [vmem:[#allocation2 + $0x1220] sm:$0xff] }
 0x1da   :  { %v10139_v57 = vpop.eup %10138  ;;  %7613 = vmatpush1.bf16.msra.mxu0 %v9126_v47  ;;  %7736 = vmatpush1.bf16.msra.mxu1 %v9128_v49  ;;  %v531_v47 = vld [vmem:[#allocation2 + $0xec8] sm:$0xff]  ;;  %v9270_v49 = vcombine.low %v494_v34, %v506_v35 }
 0x1db   :  { %v10141_v59 = vpop.eup %10140  ;;  %7614 = vmatprep.subr.bf16.mxu0 %v9151_v50  ;;  %7737 = vmatprep.subr.bf16.mxu1 %v9153_v51  ;;  %v9272_v50 = vcombine.low %v495_v36, %v507_v38  ;;  %v9295_v51 = vcombine.high %v518_v44, %v530_v45  ;;  %v9297_v52 = vcombine.high %v519_v46, %v531_v47  ;;  %v662_v38 = vld [vmem:[#allocation2 + $0x12e0] sm:$0xff] }
 0x1dc   :  { %v10143_v2 = vpop.eup %10142 }
 0x1dd   :  { %v10145_v6 = vpop.eup %10144  ;;  %v9994_v7 = vpack.c.bf16 %v10143_v2, %v10139_v57  ;;  %v555_v57 = vld [vmem:[#allocation2 + $0xf88] sm:$0xff]  ;;  %v566_v2 = vld [vmem:[#allocation2 + $0xfe0] sm:$0xff] }
 0x1de   :  { %v9995_v10 = vpack.c.bf16 %v10145_v6, %v10141_v59  ;;  %7615 = vmatpush1.bf16.msra.mxu0 %v9150_v58  ;;  %7738 = vmatpush1.bf16.msra.mxu1 %v9152_v63  ;;  %v9294_v58 = vcombine.low %v518_v44, %v530_v45  ;;  %v9296_v59 = vcombine.low %v519_v46, %v531_v47  ;;  %v686_v47 = vld [vmem:[#allocation2 + $0x13a0] sm:$0xff] }
 0x1df   :  { %8812 = vst [vmem:[%s10525_s3] sm:$0xff] %v9994_v7  ;;  %7616 = vmatprep.subr.bf16.mxu0 %v9175_v1  ;;  %7739 = vmatprep.subr.bf16.mxu1 %v9177_v3  ;;  %v9319_v63 = vcombine.high %v542_v53, %v554_v54  ;;  %v9321_v1 = vcombine.high %v543_v56, %v555_v57  ;;  %v578_v3 = vld [vmem:[#allocation2 + $0x1040] sm:$0xff] }
 0x1e0   :  { %8813 = vst [vmem:[%s10525_s3 + $0x8] sm:$0xff] %v9995_v10  ;;  %v9318_v6 = vcombine.low %v542_v53, %v554_v54  ;;  %v9320_v7 = vcombine.low %v543_v56, %v555_v57  ;;  %v9343_v8 = vcombine.high %v566_v2, %v578_v3  ;;  %v590_v10 = vld [vmem:[#allocation2 + $0x10a0] sm:$0xff] }
 0x1e1   :  { %v710_v57 = vld [vmem:[#allocation2 + $0x1460] sm:$0xff] }
 0x1e2   :  { %7617 = vmatpush1.bf16.msra.mxu0 %v9174_v11  ;;  %7740 = vmatpush1.bf16.msra.mxu1 %v9176_v12  ;;  %v602_v11 = vld [vmem:[#allocation2 + $0x1100] sm:$0xff]  ;;  %v591_v12 = vld [vmem:[#allocation2 + $0x10a8] sm:$0xff] }
 0x1e3   :  { %7618 = vmatprep.subr.bf16.mxu0 %v9199_v13  ;;  %7741 = vmatprep.subr.bf16.mxu1 %v9201_v14  ;;  %v603_v13 = vld [vmem:[#allocation2 + $0x1108] sm:$0xff]  ;;  %v9342_v14 = vcombine.low %v566_v2, %v578_v3  ;;  %v9367_v17 = vcombine.high %v590_v10, %v602_v11 }
 0x1e4   :  { %v9369_v18 = vcombine.high %v591_v12, %v603_v13  ;;  %v9368_v24 = vcombine.low %v591_v12, %v603_v13  ;;  %v758_v13 = vld [vmem:[#allocation2 + $0x15e0] sm:$0xff] }
 0x1e6   :  { %7619 = vmatpush1.bf16.msra.mxu0 %v9198_v20  ;;  %7742 = vmatpush1.bf16.msra.mxu1 %v9200_v21  ;;  %v626_v20 = vld [vmem:[#allocation2 + $0x11c0] sm:$0xff]  ;;  %v615_v21 = vld [vmem:[#allocation2 + $0x1168] sm:$0xff] }
 0x1e7   :  { %7629 = vmatprep.subr.bf16.mxu0 %v9223_v22  ;;  %7752 = vmatprep.subr.bf16.mxu1 %v9225_v23  ;;  %v627_v22 = vld [vmem:[#allocation2 + $0x11c8] sm:$0xff]  ;;  %v9366_v23 = vcombine.low %v590_v10, %v602_v11  ;;  %v9391_v26 = vcombine.high %v614_v19, %v626_v20 }
 0x1e8   :  { %v9393_v27 = vcombine.high %v615_v21, %v627_v22  ;;  %v9392_v34 = vcombine.low %v615_v21, %v627_v22  ;;  %v782_v22 = vld [vmem:[#allocation2 + $0x16a0] sm:$0xff] }
 0x1e9   :  { %7621 = vmatmul.mubr.bf16.vlgmr.msra.gmra.mrb[8].mxu0 %v10337_v16  ;;  %7744 = vmatmul.mubr.bf16.vlgmr.msra.gmra.mrb[8].mxu1 %v10337_v16 }
 0x1ea   :  { %7630 = vmatpush1.bf16.msra.mxu0 %v9222_v30  ;;  %7753 = vmatpush1.bf16.msra.mxu1 %v9224_v31  ;;  %v650_v30 = vld [vmem:[#allocation2 + $0x1280] sm:$0xff]  ;;  %v639_v31 = vld [vmem:[#allocation2 + $0x1228] sm:$0xff] }
 0x1eb   :  { %7631 = vmatprep.subr.bf16.mxu0 %v9247_v32  ;;  %7754 = vmatprep.subr.bf16.mxu1 %v9249_v33  ;;  %v651_v32 = vld [vmem:[#allocation2 + $0x1288] sm:$0xff]  ;;  %v9390_v33 = vcombine.low %v614_v19, %v626_v20  ;;  %v9415_v35 = vcombine.high %v638_v29, %v650_v30 }
 0x1ec   :  { %7661 = vmatprep.mubr.bf16.mxu0 %v10339_v25  ;;  %7784 = vmatprep.mubr.bf16.mxu1 %v10339_v25  ;;  %v9417_v36 = vcombine.high %v639_v31, %v651_v32  ;;  %v9416_v44 = vcombine.low %v639_v31, %v651_v32  ;;  %v806_v32 = vld [vmem:[#allocation2 + $0x1760] sm:$0xff] }
 0x1ee   :  { %7632 = vmatpush1.bf16.msra.mxu0 %v9246_v39  ;;  %7755 = vmatpush1.bf16.msra.mxu1 %v9248_v40  ;;  %v674_v39 = vld [vmem:[#allocation2 + $0x1340] sm:$0xff]  ;;  %v663_v40 = vld [vmem:[#allocation2 + $0x12e8] sm:$0xff] }
 0x1ef   :  { %7633 = vmatprep.subr.bf16.mxu0 %v9271_v41  ;;  %7756 = vmatprep.subr.bf16.mxu1 %v9273_v43  ;;  %v675_v41 = vld [vmem:[#allocation2 + $0x1348] sm:$0xff]  ;;  %v9414_v43 = vcombine.low %v638_v29, %v650_v30  ;;  %v9439_v45 = vcombine.high %v662_v38, %v674_v39 }
 0x1f0   :  { %v9441_v46 = vcombine.high %v663_v40, %v675_v41  ;;  %v9440_v53 = vcombine.low %v663_v40, %v675_v41  ;;  %v830_v41 = vld [vmem:[#allocation2 + $0x1820] sm:$0xff] }
 0x1f2   :  { %7634 = vmatpush1.bf16.msra.mxu0 %v9270_v49  ;;  %7757 = vmatpush1.bf16.msra.mxu1 %v9272_v50  ;;  %v698_v49 = vld [vmem:[#allocation2 + $0x1400] sm:$0xff]  ;;  %v687_v50 = vld [vmem:[#allocation2 + $0x13a8] sm:$0xff] }
 0x1f3   :  { %7635 = vmatprep.subr.bf16.mxu0 %v9295_v51  ;;  %7758 = vmatprep.subr.bf16.mxu1 %v9297_v52  ;;  %v699_v51 = vld [vmem:[#allocation2 + $0x1408] sm:$0xff]  ;;  %v9438_v52 = vcombine.low %v662_v38, %v674_v39  ;;  %v9463_v54 = vcombine.high %v686_v47, %v698_v49 }
 0x1f4   :  { %v9465_v56 = vcombine.high %v687_v50, %v699_v51  ;;  %v9464_v2 = vcombine.low %v687_v50, %v699_v51  ;;  %v854_v51 = vld [vmem:[#allocation2 + $0x18e0] sm:$0xff] }
 0x1f6   :  { %7636 = vmatpush1.bf16.msra.mxu0 %v9294_v58  ;;  %7759 = vmatpush1.bf16.msra.mxu1 %v9296_v59  ;;  %v722_v58 = vld [vmem:[#allocation2 + $0x14c0] sm:$0xff]  ;;  %v711_v59 = vld [vmem:[#allocation2 + $0x1468] sm:$0xff] }
 0x1f7   :  { %7637 = vmatprep.subr.bf16.mxu0 %v9319_v63  ;;  %7760 = vmatprep.subr.bf16.mxu1 %v9321_v1  ;;  %v723_v63 = vld [vmem:[#allocation2 + $0x14c8] sm:$0xff]  ;;  %v9462_v1 = vcombine.low %v686_v47, %v698_v49  ;;  %v9487_v3 = vcombine.high %v710_v57, %v722_v58 }
 0x1f8   :  { %v9489_v4 = vcombine.high %v711_v59, %v723_v63  ;;  %v9488_v10 = vcombine.low %v711_v59, %v723_v63  ;;  %v878_v63 = vld [vmem:[#allocation2 + $0x19a0] sm:$0xff] }
 0x1fa   :  { %7638 = vmatpush1.bf16.msra.mxu0 %v9318_v6  ;;  %7761 = vmatpush1.bf16.msra.mxu1 %v9320_v7  ;;  %v746_v6 = vld [vmem:[#allocation2 + $0x1580] sm:$0xff]  ;;  %v735_v7 = vld [vmem:[#allocation2 + $0x1528] sm:$0xff] }
 0x1fb   :  { %7639 = vmatprep.subr.bf16.mxu0 %v9343_v8  ;;  %7762 = vmatprep.subr.bf16.mxu1 %v9345_v9  ;;  %v747_v8 = vld [vmem:[#allocation2 + $0x1588] sm:$0xff]  ;;  %v9486_v9 = vcombine.low %v710_v57, %v722_v58  ;;  %v9511_v11 = vcombine.high %v734_v5, %v746_v6 }
 0x1fc   :  { %v9513_v12 = vcombine.high %v735_v7, %v747_v8  ;;  %v9512_v19 = vcombine.low %v735_v7, %v747_v8  ;;  %v902_v8 = vld [vmem:[#allocation2 + $0x1a60] sm:$0xff] }
 0x1fe   :  { %7640 = vmatpush1.bf16.msra.mxu0 %v9342_v14  ;;  %7763 = vmatpush1.bf16.msra.mxu1 %v9344_v15  ;;  %v770_v14 = vld [vmem:[#allocation2 + $0x1640] sm:$0xff]  ;;  %v759_v15 = vld [vmem:[#allocation2 + $0x15e8] sm:$0xff] }
 0x1ff   :  { %7641 = vmatprep.subr.bf16.mxu0 %v9367_v17  ;;  %7764 = vmatprep.subr.bf16.mxu1 %v9369_v18  ;;  %v771_v17 = vld [vmem:[#allocation2 + $0x1648] sm:$0xff]  ;;  %v9510_v18 = vcombine.low %v734_v5, %v746_v6  ;;  %v9535_v20 = vcombine.high %v758_v13, %v770_v14 }
 0x200   :  { %v9537_v21 = vcombine.high %v759_v15, %v771_v17  ;;  %v9536_v29 = vcombine.low %v759_v15, %v771_v17  ;;  %v926_v17 = vld [vmem:[#allocation2 + $0x1b20] sm:$0xff] }
 0x202   :  { %7642 = vmatpush1.bf16.msra.mxu0 %v9366_v23  ;;  %7765 = vmatpush1.bf16.msra.mxu1 %v9368_v24  ;;  %v794_v23 = vld [vmem:[#allocation2 + $0x1700] sm:$0xff]  ;;  %v783_v24 = vld [vmem:[#allocation2 + $0x16a8] sm:$0xff] }
 0x203   :  { %7643 = vmatprep.subr.bf16.mxu0 %v9391_v26  ;;  %7766 = vmatprep.subr.bf16.mxu1 %v9393_v27  ;;  %v795_v26 = vld [vmem:[#allocation2 + $0x1708] sm:$0xff]  ;;  %v9534_v27 = vcombine.low %v758_v13, %v770_v14  ;;  %v9559_v30 = vcombine.high %v782_v22, %v794_v23 }
 0x204   :  { %v9561_v31 = vcombine.high %v783_v24, %v795_v26  ;;  %v9560_v38 = vcombine.low %v783_v24, %v795_v26  ;;  %v950_v26 = vld [vmem:[#allocation2 + $0x1be0] sm:$0xff] }
 0x206   :  { %7644 = vmatpush1.bf16.msra.mxu0 %v9390_v33  ;;  %7767 = vmatpush1.bf16.msra.mxu1 %v9392_v34  ;;  %v818_v33 = vld [vmem:[#allocation2 + $0x17c0] sm:$0xff]  ;;  %v807_v34 = vld [vmem:[#allocation2 + $0x1768] sm:$0xff] }
 0x207   :  { %7645 = vmatprep.subr.bf16.mxu0 %v9415_v35  ;;  %7768 = vmatprep.subr.bf16.mxu1 %v9417_v36  ;;  %v819_v35 = vld [vmem:[#allocation2 + $0x17c8] sm:$0xff]  ;;  %v9558_v36 = vcombine.low %v782_v22, %v794_v23  ;;  %v9583_v39 = vcombine.high %v806_v32, %v818_v33 }
 0x208   :  { %v9585_v40 = vcombine.high %v807_v34, %v819_v35  ;;  %v9584_v47 = vcombine.low %v807_v34, %v819_v35  ;;  %v974_v35 = vld [vmem:[#allocation2 + $0x1ca0] sm:$0xff] }
 0x20a   :  { %7646 = vmatpush1.bf16.msra.mxu0 %v9414_v43  ;;  %7769 = vmatpush1.bf16.msra.mxu1 %v9416_v44  ;;  %v842_v43 = vld [vmem:[#allocation2 + $0x1880] sm:$0xff]  ;;  %v831_v44 = vld [vmem:[#allocation2 + $0x1828] sm:$0xff] }
 0x20b   :  { %7647 = vmatprep.subr.bf16.mxu0 %v9439_v45  ;;  %7770 = vmatprep.subr.bf16.mxu1 %v9441_v46  ;;  %v843_v45 = vld [vmem:[#allocation2 + $0x1888] sm:$0xff]  ;;  %v9582_v46 = vcombine.low %v806_v32, %v818_v33  ;;  %v9607_v49 = vcombine.high %v830_v41, %v842_v43 }
 0x20c   :  { %v9609_v50 = vcombine.high %v831_v44, %v843_v45  ;;  %v9608_v57 = vcombine.low %v831_v44, %v843_v45  ;;  %v998_v45 = vld [vmem:[#allocation2 + $0x1d60] sm:$0xff] }
 0x20e   :  { %7648 = vmatpush1.bf16.msra.mxu0 %v9438_v52  ;;  %7771 = vmatpush1.bf16.msra.mxu1 %v9440_v53  ;;  %v866_v52 = vld [vmem:[#allocation2 + $0x1940] sm:$0xff]  ;;  %v855_v53 = vld [vmem:[#allocation2 + $0x18e8] sm:$0xff] }
 0x20f   :  { %7649 = vmatprep.subr.bf16.mxu0 %v9463_v54  ;;  %7772 = vmatprep.subr.bf16.mxu1 %v9465_v56  ;;  %v867_v54 = vld [vmem:[#allocation2 + $0x1948] sm:$0xff]  ;;  %v9606_v56 = vcombine.low %v830_v41, %v842_v43  ;;  %v9631_v58 = vcombine.high %v854_v51, %v866_v52 }
 0x210   :  { %v9633_v59 = vcombine.high %v855_v53, %v867_v54  ;;  %v9632_v5 = vcombine.low %v855_v53, %v867_v54  ;;  %v1022_v54 = vld [vmem:[#allocation2 + $0x1e20] sm:$0xff] }
 0x212   :  { %7650 = vmatpush1.bf16.msra.mxu0 %v9462_v1  ;;  %7773 = vmatpush1.bf16.msra.mxu1 %v9464_v2  ;;  %v890_v1 = vld [vmem:[#allocation2 + $0x1a00] sm:$0xff]  ;;  %v879_v2 = vld [vmem:[#allocation2 + $0x19a8] sm:$0xff] }
 0x213   :  { %7651 = vmatprep.subr.bf16.mxu0 %v9487_v3  ;;  %7774 = vmatprep.subr.bf16.mxu1 %v9489_v4  ;;  %v891_v3 = vld [vmem:[#allocation2 + $0x1a08] sm:$0xff]  ;;  %v9630_v4 = vcombine.low %v854_v51, %v866_v52  ;;  %v9655_v6 = vcombine.high %v878_v63, %v890_v1 }
 0x214   :  { %v9657_v7 = vcombine.high %v879_v2, %v891_v3  ;;  %v9656_v13 = vcombine.low %v879_v2, %v891_v3  ;;  %v1046_v3 = vld [vmem:[#allocation2 + $0x1ee0] sm:$0xff] }
 0x216   :  { %7652 = vmatpush1.bf16.msra.mxu0 %v9486_v9  ;;  %7775 = vmatpush1.bf16.msra.mxu1 %v9488_v10  ;;  %v914_v9 = vld [vmem:[#allocation2 + $0x1ac0] sm:$0xff]  ;;  %v903_v10 = vld [vmem:[#allocation2 + $0x1a68] sm:$0xff] }
 0x217   :  { %7653 = vmatprep.subr.bf16.mxu0 %v9511_v11  ;;  %7776 = vmatprep.subr.bf16.mxu1 %v9513_v12  ;;  %v915_v11 = vld [vmem:[#allocation2 + $0x1ac8] sm:$0xff]  ;;  %v9654_v12 = vcombine.low %v878_v63, %v890_v1  ;;  %v9679_v14 = vcombine.high %v902_v8, %v914_v9 }
 0x218   :  { %v9681_v15 = vcombine.high %v903_v10, %v915_v11  ;;  %v9680_v22 = vcombine.low %v903_v10, %v915_v11  ;;  %v1070_v11 = vld [vmem:[#allocation2 + $0x1fa0] sm:$0xff] }
 0x21a   :  { %7654 = vmatpush1.bf16.msra.mxu0 %v9510_v18  ;;  %7777 = vmatpush1.bf16.msra.mxu1 %v9512_v19  ;;  %v938_v18 = vld [vmem:[#allocation2 + $0x1b80] sm:$0xff]  ;;  %v927_v19 = vld [vmem:[#allocation2 + $0x1b28] sm:$0xff] }
 0x21b   :  { %7655 = vmatprep.subr.bf16.mxu0 %v9535_v20  ;;  %7778 = vmatprep.subr.bf16.mxu1 %v9537_v21  ;;  %v939_v20 = vld [vmem:[#allocation2 + $0x1b88] sm:$0xff]  ;;  %v9678_v21 = vcombine.low %v902_v8, %v914_v9  ;;  %v9703_v23 = vcombine.high %v926_v17, %v938_v18 }
 0x21c   :  { %v9705_v24 = vcombine.high %v927_v19, %v939_v20  ;;  %v9704_v32 = vcombine.low %v927_v19, %v939_v20  ;;  %v1094_v20 = vld [vmem:[#allocation2 + $0x2060] sm:$0xff] }
 0x21e   :  { %7656 = vmatpush1.bf16.msra.mxu0 %v9534_v27  ;;  %7779 = vmatpush1.bf16.msra.mxu1 %v9536_v29  ;;  %v962_v27 = vld [vmem:[#allocation2 + $0x1c40] sm:$0xff]  ;;  %v951_v29 = vld [vmem:[#allocation2 + $0x1be8] sm:$0xff] }
 0x21f   :  { %7657 = vmatprep.subr.bf16.mxu0 %v9559_v30  ;;  %7780 = vmatprep.subr.bf16.mxu1 %v9561_v31  ;;  %v963_v30 = vld [vmem:[#allocation2 + $0x1c48] sm:$0xff]  ;;  %v9702_v31 = vcombine.low %v926_v17, %v938_v18  ;;  %v9727_v33 = vcombine.high %v950_v26, %v962_v27 }
 0x220   :  { %v9729_v34 = vcombine.high %v951_v29, %v963_v30  ;;  %v9728_v41 = vcombine.low %v951_v29, %v963_v30  ;;  %v1118_v30 = vld [vmem:[#allocation2 + $0x2120] sm:$0xff] }
 0x222   :  { %7658 = vmatpush1.bf16.msra.mxu0 %v9558_v36  ;;  %7781 = vmatpush1.bf16.msra.mxu1 %v9560_v38  ;;  %v986_v36 = vld [vmem:[#allocation2 + $0x1d00] sm:$0xff]  ;;  %v975_v38 = vld [vmem:[#allocation2 + $0x1ca8] sm:$0xff] }
 0x223   :  { %7659 = vmatprep.subr.bf16.mxu0 %v9583_v39  ;;  %7782 = vmatprep.subr.bf16.mxu1 %v9585_v40  ;;  %v987_v39 = vld [vmem:[#allocation2 + $0x1d08] sm:$0xff]  ;;  %v9726_v40 = vcombine.low %v950_v26, %v962_v27  ;;  %v9751_v43 = vcombine.high %v974_v35, %v986_v36 }
 0x224   :  { %v9753_v44 = vcombine.high %v975_v38, %v987_v39  ;;  %v9752_v51 = vcombine.low %v975_v38, %v987_v39  ;;  %v1142_v39 = vld [vmem:[#allocation2 + $0x21e0] sm:$0xff] }
 0x226   :  { %7660 = vmatpush1.bf16.msra.mxu0 %v9582_v46  ;;  %7783 = vmatpush1.bf16.msra.mxu1 %v9584_v47  ;;  %v1010_v46 = vld [vmem:[#allocation2 + $0x1dc0] sm:$0xff]  ;;  %v999_v47 = vld [vmem:[#allocation2 + $0x1d68] sm:$0xff] }
 0x227   :  { %7670 = vmatprep.subr.bf16.mxu0 %v9607_v49  ;;  %7793 = vmatprep.subr.bf16.mxu1 %v9609_v50  ;;  %v1011_v49 = vld [vmem:[#allocation2 + $0x1dc8] sm:$0xff]  ;;  %v9750_v50 = vcombine.low %v974_v35, %v986_v36  ;;  %v9775_v52 = vcombine.high %v998_v45, %v1010_v46 }
 0x228   :  { %v9777_v53 = vcombine.high %v999_v47, %v1011_v49  ;;  %v9776_v63 = vcombine.low %v999_v47, %v1011_v49  ;;  %v1166_v49 = vld [vmem:[#allocation2 + $0x22a0] sm:$0xff] }
 0x229   :  { %7662 = vmatmul.mubr.bf16.vlgmr.msra.gmra.mrb[8].mxu0 %v10351_v28  ;;  %7785 = vmatmul.mubr.bf16.vlgmr.msra.gmra.mrb[8].mxu1 %v10351_v28 }
 0x22a   :  { %7671 = vmatpush1.bf16.msra.mxu0 %v9606_v56  ;;  %7794 = vmatpush1.bf16.msra.mxu1 %v9608_v57  ;;  %v1034_v56 = vld [vmem:[#allocation2 + $0x1e80] sm:$0xff]  ;;  %v1023_v57 = vld [vmem:[#allocation2 + $0x1e28] sm:$0xff] }
 0x22b   :  { %7672 = vmatprep.subr.bf16.mxu0 %v9631_v58  ;;  %7795 = vmatprep.subr.bf16.mxu1 %v9633_v59  ;;  %v1035_v58 = vld [vmem:[#allocation2 + $0x1e88] sm:$0xff]  ;;  %v9774_v59 = vcombine.low %v998_v45, %v1010_v46  ;;  %v9799_v1 = vcombine.high %v1022_v54, %v1034_v56 }
 0x22c   :  { %7702 = vmatprep.mubr.bf16.mxu0 %v10353_v37  ;;  %7825 = vmatprep.mubr.bf16.mxu1 %v10353_v37  ;;  %v9801_v2 = vcombine.high %v1023_v57, %v1035_v58  ;;  %v9800_v8 = vcombine.low %v1023_v57, %v1035_v58  ;;  %v1190_v58 = vld [vmem:[#allocation2 + $0x2360] sm:$0xff] }
 0x22e   :  { %7673 = vmatpush1.bf16.msra.mxu0 %v9630_v4  ;;  %7796 = vmatpush1.bf16.msra.mxu1 %v9632_v5  ;;  %v1058_v4 = vld [vmem:[#allocation2 + $0x1f40] sm:$0xff]  ;;  %v1047_v5 = vld [vmem:[#allocation2 + $0x1ee8] sm:$0xff] }
 0x22f   :  { %7674 = vmatprep.subr.bf16.mxu0 %v9655_v6  ;;  %7797 = vmatprep.subr.bf16.mxu1 %v9657_v7  ;;  %v1059_v6 = vld [vmem:[#allocation2 + $0x1f48] sm:$0xff]  ;;  %v9798_v7 = vcombine.low %v1022_v54, %v1034_v56  ;;  %v9823_v9 = vcombine.high %v1046_v3, %v1058_v4 }
 0x230   :  { %v9825_v10 = vcombine.high %v1047_v5, %v1059_v6  ;;  %v9824_v17 = vcombine.low %v1047_v5, %v1059_v6  ;;  %v64_v6 = vld [vmem:[#allocation2 + $0x30] sm:$0xff] }
 0x232   :  { %7675 = vmatpush1.bf16.msra.mxu0 %v9654_v12  ;;  %7798 = vmatpush1.bf16.msra.mxu1 %v9656_v13  ;;  %v1082_v12 = vld [vmem:[#allocation2 + $0x2000] sm:$0xff]  ;;  %v1071_v13 = vld [vmem:[#allocation2 + $0x1fa8] sm:$0xff] }
 0x233   :  { %7676 = vmatprep.subr.bf16.mxu0 %v9679_v14  ;;  %7799 = vmatprep.subr.bf16.mxu1 %v9681_v15  ;;  %v1083_v14 = vld [vmem:[#allocation2 + $0x2008] sm:$0xff]  ;;  %v9822_v15 = vcombine.low %v1046_v3, %v1058_v4  ;;  %v9847_v18 = vcombine.high %v1070_v11, %v1082_v12 }
 0x234   :  { %v9849_v19 = vcombine.high %v1071_v13, %v1083_v14  ;;  %v9848_v26 = vcombine.low %v1071_v13, %v1083_v14  ;;  %v88_v14 = vld [vmem:[#allocation2 + $0xf0] sm:$0xff] }
 0x236   :  { %7677 = vmatpush1.bf16.msra.mxu0 %v9678_v21  ;;  %7800 = vmatpush1.bf16.msra.mxu1 %v9680_v22  ;;  %v1106_v21 = vld [vmem:[#allocation2 + $0x20c0] sm:$0xff]  ;;  %v1095_v22 = vld [vmem:[#allocation2 + $0x2068] sm:$0xff] }
 0x237   :  { %7678 = vmatprep.subr.bf16.mxu0 %v9703_v23  ;;  %7801 = vmatprep.subr.bf16.mxu1 %v9705_v24  ;;  %v1107_v23 = vld [vmem:[#allocation2 + $0x20c8] sm:$0xff]  ;;  %v9846_v24 = vcombine.low %v1070_v11, %v1082_v12  ;;  %v9871_v27 = vcombine.high %v1094_v20, %v1106_v21 }
 0x238   :  { %v9873_v29 = vcombine.high %v1095_v22, %v1107_v23  ;;  %v9872_v35 = vcombine.low %v1095_v22, %v1107_v23  ;;  %v112_v23 = vld [vmem:[#allocation2 + $0x1b0] sm:$0xff] }
 0x23a   :  { %7679 = vmatpush1.bf16.msra.mxu0 %v9702_v31  ;;  %7802 = vmatpush1.bf16.msra.mxu1 %v9704_v32  ;;  %v1130_v31 = vld [vmem:[#allocation2 + $0x2180] sm:$0xff]  ;;  %v1119_v32 = vld [vmem:[#allocation2 + $0x2128] sm:$0xff] }
 0x23b   :  { %7680 = vmatprep.subr.bf16.mxu0 %v9727_v33  ;;  %7803 = vmatprep.subr.bf16.mxu1 %v9729_v34  ;;  %v1131_v33 = vld [vmem:[#allocation2 + $0x2188] sm:$0xff]  ;;  %v9870_v34 = vcombine.low %v1094_v20, %v1106_v21  ;;  %v9895_v36 = vcombine.high %v1118_v30, %v1130_v31 }
 0x23c   :  { %v9897_v38 = vcombine.high %v1119_v32, %v1131_v33  ;;  %v9896_v45 = vcombine.low %v1119_v32, %v1131_v33  ;;  %v136_v33 = vld [vmem:[#allocation2 + $0x270] sm:$0xff] }
 0x23e   :  { %7681 = vmatpush1.bf16.msra.mxu0 %v9726_v40  ;;  %7804 = vmatpush1.bf16.msra.mxu1 %v9728_v41  ;;  %v1154_v40 = vld [vmem:[#allocation2 + $0x2240] sm:$0xff]  ;;  %v1143_v41 = vld [vmem:[#allocation2 + $0x21e8] sm:$0xff] }
 0x23f   :  { %7682 = vmatprep.subr.bf16.mxu0 %v9751_v43  ;;  %7805 = vmatprep.subr.bf16.mxu1 %v9753_v44  ;;  %v1155_v43 = vld [vmem:[#allocation2 + $0x2248] sm:$0xff]  ;;  %v9894_v44 = vcombine.low %v1118_v30, %v1130_v31  ;;  %v9919_v46 = vcombine.high %v1142_v39, %v1154_v40 }
 0x240   :  { %v9921_v47 = vcombine.high %v1143_v41, %v1155_v43  ;;  %v9920_v54 = vcombine.low %v1143_v41, %v1155_v43  ;;  %v160_v43 = vld [vmem:[#allocation2 + $0x330] sm:$0xff] }
 0x242   :  { %7683 = vmatpush1.bf16.msra.mxu0 %v9750_v50  ;;  %7806 = vmatpush1.bf16.msra.mxu1 %v9752_v51  ;;  %v1178_v50 = vld [vmem:[#allocation2 + $0x2300] sm:$0xff]  ;;  %v1167_v51 = vld [vmem:[#allocation2 + $0x22a8] sm:$0xff] }
 0x243   :  { %7684 = vmatprep.subr.bf16.mxu0 %v9775_v52  ;;  %7807 = vmatprep.subr.bf16.mxu1 %v9777_v53  ;;  %v1179_v52 = vld [vmem:[#allocation2 + $0x2308] sm:$0xff]  ;;  %v9918_v53 = vcombine.low %v1142_v39, %v1154_v40  ;;  %v9943_v56 = vcombine.high %v1166_v49, %v1178_v50 }
 0x244   :  { %v9945_v57 = vcombine.high %v1167_v51, %v1179_v52  ;;  %v9944_v3 = vcombine.low %v1167_v51, %v1179_v52  ;;  %v184_v52 = vld [vmem:[#allocation2 + $0x3f0] sm:$0xff] }
 0x246   :  { %7685 = vmatpush1.bf16.msra.mxu0 %v9774_v59  ;;  %7808 = vmatpush1.bf16.msra.mxu1 %v9776_v63  ;;  %v1202_v59 = vld [vmem:[#allocation2 + $0x23c0] sm:$0xff]  ;;  %v1191_v63 = vld [vmem:[#allocation2 + $0x2368] sm:$0xff] }
 0x247   :  { %7686 = vmatprep.subr.bf16.mxu0 %v9799_v1  ;;  %7809 = vmatprep.subr.bf16.mxu1 %v9801_v2  ;;  %v1203_v1 = vld [vmem:[#allocation2 + $0x23c8] sm:$0xff]  ;;  %v9942_v2 = vcombine.low %v1166_v49, %v1178_v50  ;;  %v9967_v4 = vcombine.high %v1190_v58, %v1202_v59 }
 0x248   :  { %v9969_v5 = vcombine.high %v1191_v63, %v1203_v1  ;;  %v9968_v11 = vcombine.low %v1191_v63, %v1203_v1  ;;  %v10423_v63 = vsub.s32 5, %v10380_v48 }
 0x24a   :  { %7687 = vmatpush1.bf16.msra.mxu0 %v9798_v7  ;;  %7810 = vmatpush1.bf16.msra.mxu1 %v9800_v8  ;;  %v76_v7 = vld [vmem:[#allocation2 + $0x90] sm:$0xff]  ;;  %v65_v8 = vld [vmem:[#allocation2 + $0x38] sm:$0xff] }
 0x24b   :  { %7688 = vmatprep.subr.bf16.mxu0 %v9823_v9  ;;  %7811 = vmatprep.subr.bf16.mxu1 %v9825_v10  ;;  %v77_v9 = vld [vmem:[#allocation2 + $0x98] sm:$0xff]  ;;  %v9966_v10 = vcombine.low %v1190_v58, %v1202_v59  ;;  %v8843_v12 = vcombine.high %v64_v6, %v76_v7  ;;  %v10420_v59 = vsub.s32 6, %v10380_v48 }
 0x24c   :  { %v8845_v13 = vcombine.high %v65_v8, %v77_v9  ;;  %v8844_v20 = vcombine.low %v65_v8, %v77_v9  ;;  %v209_v9 = vld [vmem:[#allocation2 + $0x4b8] sm:$0xff] }
 0x24e   :  { %7689 = vmatpush1.bf16.msra.mxu0 %v9822_v15  ;;  %7812 = vmatpush1.bf16.msra.mxu1 %v9824_v17  ;;  %v100_v15 = vld [vmem:[#allocation2 + $0x150] sm:$0xff]  ;;  %v89_v17 = vld [vmem:[#allocation2 + $0xf8] sm:$0xff] }
 0x24f   :  { %7690 = vmatprep.subr.bf16.mxu0 %v9847_v18  ;;  %7813 = vmatprep.subr.bf16.mxu1 %v9849_v19  ;;  %v101_v18 = vld [vmem:[#allocation2 + $0x158] sm:$0xff]  ;;  %v8842_v19 = vcombine.low %v64_v6, %v76_v7  ;;  %v8867_v21 = vcombine.high %v88_v14, %v100_v15  ;;  %v220_v6 = vld [vmem:[#allocation2 + $0x510] sm:$0xff]  ;;  %v10226_v7 = vld [vmem:[#allocation4] sm:$0xff] }
 0x250   :  { %v8869_v22 = vcombine.high %v89_v17, %v101_v18  ;;  %v8868_v30 = vcombine.low %v89_v17, %v101_v18 }
 0x252   :  { %7691 = vmatpush1.bf16.msra.mxu0 %v9846_v24  ;;  %7814 = vmatpush1.bf16.msra.mxu1 %v9848_v26  ;;  %v124_v24 = vld [vmem:[#allocation2 + $0x210] sm:$0xff]  ;;  %v113_v26 = vld [vmem:[#allocation2 + $0x1b8] sm:$0xff] }
 0x253   :  { %7692 = vmatprep.subr.bf16.mxu0 %v9871_v27  ;;  %7815 = vmatprep.subr.bf16.mxu1 %v9873_v29  ;;  %v125_v27 = vld [vmem:[#allocation2 + $0x218] sm:$0xff]  ;;  %v8866_v29 = vcombine.low %v88_v14, %v100_v15  ;;  %v8891_v31 = vcombine.high %v112_v23, %v124_v24 }
 0x254   :  { %v8893_v32 = vcombine.high %v113_v26, %v125_v27  ;;  %v8892_v39 = vcombine.low %v113_v26, %v125_v27  ;;  %v245_v26 = vld [vmem:[#allocation2 + $0x5d8] sm:$0xff] }
 0x256   :  { %7693 = vmatpush1.bf16.msra.mxu0 %v9870_v34  ;;  %7816 = vmatpush1.bf16.msra.mxu1 %v9872_v35  ;;  %v148_v34 = vld [vmem:[#allocation2 + $0x2d0] sm:$0xff]  ;;  %v137_v35 = vld [vmem:[#allocation2 + $0x278] sm:$0xff] }
 0x257   :  { %7694 = vmatprep.subr.bf16.mxu0 %v9895_v36  ;;  %7817 = vmatprep.subr.bf16.mxu1 %v9897_v38  ;;  %v149_v36 = vld [vmem:[#allocation2 + $0x2d8] sm:$0xff]  ;;  %v8890_v38 = vcombine.low %v112_v23, %v124_v24  ;;  %v8915_v40 = vcombine.high %v136_v33, %v148_v34 }
 0x258   :  { %v8917_v41 = vcombine.high %v137_v35, %v149_v36  ;;  %v8916_v49 = vcombine.low %v137_v35, %v149_v36  ;;  %v233_v24 = vld [vmem:[#allocation2 + $0x578] sm:$0xff] }
 0x25a   :  { %7695 = vmatpush1.bf16.msra.mxu0 %v9894_v44  ;;  %7818 = vmatpush1.bf16.msra.mxu1 %v9896_v45  ;;  %v172_v44 = vld [vmem:[#allocation2 + $0x390] sm:$0xff]  ;;  %v161_v45 = vld [vmem:[#allocation2 + $0x338] sm:$0xff] }
 0x25b   :  { %7696 = vmatprep.subr.bf16.mxu0 %v9919_v46  ;;  %7819 = vmatprep.subr.bf16.mxu1 %v9921_v47  ;;  %v173_v46 = vld [vmem:[#allocation2 + $0x398] sm:$0xff]  ;;  %v8914_v47 = vcombine.low %v136_v33, %v148_v34  ;;  %v8939_v50 = vcombine.high %v160_v43, %v172_v44  ;;  %v8938_v58 = vcombine.low %v160_v43, %v172_v44 }
 0x25c   :  { %v8941_v51 = vcombine.high %v161_v45, %v173_v46  ;;  %v8940_v1 = vcombine.low %v161_v45, %v173_v46  ;;  %v9013_v44 = vcombine.high %v233_v24, %v245_v26  ;;  %v256_v45 = vld [vmem:[#allocation2 + $0x630] sm:$0xff] }
 0x25d   :  { %v268_v46 = vld [vmem:[#allocation2 + $0x690] sm:$0xff] }
 0x25e   :  { %7697 = vmatpush1.bf16.msra.mxu0 %v9918_v53  ;;  %7820 = vmatpush1.bf16.msra.mxu1 %v9920_v54  ;;  %v196_v53 = vld [vmem:[#allocation2 + $0x450] sm:$0xff]  ;;  %v10417_v54 = vsub.s32 4, %v10380_v48 }
 0x25f   :  { %7698 = vmatprep.subr.bf16.mxu0 %v9943_v56  ;;  %7821 = vmatprep.subr.bf16.mxu1 %v9945_v57  ;;  %v185_v56 = vld [vmem:[#allocation2 + $0x3f8] sm:$0xff] }
 0x260   :  { %v197_v57 = vld [vmem:[#allocation2 + $0x458] sm:$0xff]  ;;  %v1235_v8 = vrot.slane %v10226_v7, %v10417_v54 }
 0x261   :  { %v8964_v14 = vcombine.low %v185_v56, %v197_v57 }
 0x262   :  { %7699 = vmatpush1.bf16.msra.mxu0 %v9942_v2  ;;  %7822 = vmatpush1.bf16.msra.mxu1 %v9944_v3  ;;  %v10426_v2 = vsub.s32 7, %v10380_v48  ;;  %v8963_v3 = vcombine.high %v184_v52, %v196_v53 }
 0x263   :  { %7700 = vmatprep.subr.bf16.mxu0 %v9967_v4  ;;  %7823 = vmatprep.subr.bf16.mxu1 %v9969_v5  ;;  %v8965_v4 = vcombine.high %v185_v56, %v197_v57  ;;  %v208_v5 = vld [vmem:[#allocation2 + $0x4b0] sm:$0xff] }
 0x264   :  { %v1247_v48 = vrot.slane %v10226_v7, %v10426_v2  ;;  %v8987_v15 = vcombine.high %v208_v5, %v220_v6 }
 0x266   :  { %7701 = vmatpush1.bf16.msra.mxu0 %v9966_v10  ;;  %7824 = vmatpush1.bf16.msra.mxu1 %v9968_v11  ;;  %v221_v10 = vld [vmem:[#allocation2 + $0x518] sm:$0xff]  ;;  %v1243_v11 = vrot.slane %v10226_v7, %v10420_v59 }
 0x267   :  { %7834 = vmatprep.subr.bf16.mxu0 %v8843_v12  ;;  %7957 = vmatprep.subr.bf16.mxu1 %v8845_v13  ;;  %v1239_v12 = vrot.slane %v10226_v7, %v10423_v63  ;;  %v8962_v13 = vcombine.low %v184_v52, %v196_v53  ;;  %v8989_v18 = vcombine.high %v209_v9, %v221_v10  ;;  %v293_v7 = vld [vmem:[#allocation2 + $0x758] sm:$0xff] }
 0x269   :  { %7703 = vmatmul.mubr.bf16.vlgmr.msra.gmra.mrb[8].mxu0 %v10362_v42  ;;  %7826 = vmatmul.mubr.bf16.vlgmr.msra.gmra.mrb[8].mxu1 %v10362_v42 }
 0x26a   :  { %7835 = vmatpush1.bf16.msra.mxu0 %v8842_v19  ;;  %7958 = vmatpush1.bf16.msra.mxu1 %v8844_v20  ;;  %v232_v19 = vld [vmem:[#allocation2 + $0x570] sm:$0xff] }
 0x26b   :  { %7836 = vmatprep.subr.bf16.mxu0 %v8867_v21  ;;  %7959 = vmatprep.subr.bf16.mxu1 %v8869_v22  ;;  %v244_v20 = vld [vmem:[#allocation2 + $0x5d0] sm:$0xff] }
 0x26c   :  { %7866 = vmatprep.mubr.bf16.mxu0 %v10327_v61  ;;  %7989 = vmatprep.mubr.bf16.mxu1 %v10327_v61  ;;  %v9010_v56 = vcombine.low %v232_v19, %v244_v20 }
 0x26e   :  { %7837 = vmatpush1.bf16.msra.mxu0 %v8866_v29  ;;  %7960 = vmatpush1.bf16.msra.mxu1 %v8868_v30 }
 0x26f   :  { %7838 = vmatprep.subr.bf16.mxu0 %v8891_v31  ;;  %7961 = vmatprep.subr.bf16.mxu1 %v8893_v32  ;;  %v8986_v32 = vcombine.low %v208_v5, %v220_v6  ;;  %v292_v5 = vld [vmem:[#allocation2 + $0x750] sm:$0xff]  ;;  %v281_v6 = vld [vmem:[#allocation2 + $0x6f8] sm:$0xff] }
 0x272   :  { %7839 = vmatpush1.bf16.msra.mxu0 %v8890_v38  ;;  %7962 = vmatpush1.bf16.msra.mxu1 %v8892_v39  ;;  %v8988_v38 = vcombine.low %v209_v9, %v221_v10  ;;  %v9011_v39 = vcombine.high %v232_v19, %v244_v20  ;;  %v328_v20 = vld [vmem:[#allocation2 + $0x870] sm:$0xff] }
 0x273   :  { %7840 = vmatprep.subr.bf16.mxu0 %v8915_v40  ;;  %7963 = vmatprep.subr.bf16.mxu1 %v8917_v41 }
 0x276   :  { %7841 = vmatpush1.bf16.msra.mxu0 %v8914_v47  ;;  %7964 = vmatpush1.bf16.msra.mxu1 %v8916_v49 }
 0x277   :  { %7842 = vmatprep.subr.bf16.mxu0 %v8939_v50  ;;  %7965 = vmatprep.subr.bf16.mxu1 %v8941_v51  ;;  %v257_v50 = vld [vmem:[#allocation2 + $0x638] sm:$0xff] }
 0x278   :  { %v269_v51 = vld [vmem:[#allocation2 + $0x698] sm:$0xff] }
 0x279   :  { %v9036_v9 = vcombine.low %v257_v50, %v269_v51 }
 0x27a   :  { %7843 = vmatpush1.bf16.msra.mxu0 %v8938_v58  ;;  %7966 = vmatpush1.bf16.msra.mxu1 %v8940_v1  ;;  %v9012_v58 = vcombine.low %v233_v24, %v245_v26  ;;  %v9035_v1 = vcombine.high %v256_v45, %v268_v46  ;;  %v341_v24 = vld [vmem:[#allocation2 + $0x8d8] sm:$0xff] }
 0x27b   :  { %7844 = vmatprep.subr.bf16.mxu0 %v8963_v3  ;;  %7967 = vmatprep.subr.bf16.mxu1 %v8965_v4  ;;  %v9037_v3 = vcombine.high %v257_v50, %v269_v51  ;;  %v280_v4 = vld [vmem:[#allocation2 + $0x6f0] sm:$0xff]  ;;  %v377_v51 = vld [vmem:[#allocation2 + $0x9f8] sm:$0xff] }
 0x27c   :  { %v7458_v17 = vpop.f32.mrb[4].mxu0  ;;  %v7581_v22 = vpop.f32.mrb[4].mxu1  ;;  %v9059_v10 = vcombine.high %v280_v4, %v292_v5  ;;  %v388_v50 = vld [vmem:[#allocation2 + $0xa50] sm:$0xff] }
 0x27d   :  { %v10010_v21 = vadd.f32 %v7458_v17, %v1235_v8  ;;  %v7460_v23 = vpop.f32.mrb[5].mxu0  ;;  %v10012_v27 = vadd.f32 %v7581_v22, %v1243_v11  ;;  %v7583_v30 = vpop.f32.mrb[5].mxu1  ;;  %v9034_v8 = vcombine.low %v256_v45, %v268_v46  ;;  %v9061_v11 = vcombine.high %v281_v6, %v293_v7 }
 0x27e   :  { %v10011_v29 = vadd.f32 %v7460_v23, %v1239_v12  ;;  %v7462_v31 = vpop.f32.mrb[6].mxu0  ;;  %7845 = vmatpush1.bf16.msra.mxu0 %v8962_v13  ;;  %v10013_v34 = vadd.f32 %v7583_v30, %v1247_v48  ;;  %v7585_v35 = vpop.f32.mrb[6].mxu1  ;;  %7968 = vmatpush1.bf16.msra.mxu1 %v8964_v14  ;;  %v304_v12 = vld [vmem:[#allocation2 + $0x7b0] sm:$0xff]  ;;  %v305_v48 = vld [vmem:[#allocation2 + $0x7b8] sm:$0xff]  ;;  %v9060_v17 = vcombine.low %v281_v6, %v293_v7 }
 0x27f   :  { %v8576_v33 = vsub.f32 0.0, %v10010_v21  ;;  %v7463_v36 = vpop.f32.mrb[7].mxu0  ;;  %7846 = vmatprep.subr.bf16.mxu0 %v8987_v15  ;;  %v8578_v40 = vsub.f32 0.0, %v10012_v27  ;;  %v7586_v43 = vpop.f32.mrb[7].mxu1  ;;  %7969 = vmatprep.subr.bf16.mxu1 %v8989_v18  ;;  %v316_v13 = vld [vmem:[#allocation2 + $0x810] sm:$0xff]  ;;  %v317_v14 = vld [vmem:[#allocation2 + $0x818] sm:$0xff]  ;;  %v9058_v15 = vcombine.low %v280_v4, %v292_v5 }
 0x280   :  { %v8577_v41 = vsub.f32 0.0, %v10011_v29  ;;  %v8579_v49 = vsub.f32 0.0, %v10013_v34  ;;  %v9083_v18 = vcombine.high %v304_v12, %v316_v13  ;;  %v9085_v19 = vcombine.high %v305_v48, %v317_v14  ;;  %v340_v21 = vld [vmem:[#allocation2 + $0x8d0] sm:$0xff]  ;;  %v329_v23 = vld [vmem:[#allocation2 + $0x878] sm:$0xff] }
 0x281   :  { %v8604_v47 = vmul.f32 1.442695, %v8576_v33  ;;  %v8608_v52 = vmul.f32 1.442695, %v8578_v40  ;;  %v9082_v29 = vcombine.low %v304_v12, %v316_v13  ;;  %v9107_v33 = vcombine.high %v328_v20, %v340_v21  ;;  %v365_v43 = vld [vmem:[#allocation2 + $0x998] sm:$0xff]  ;;  %v424_v13 = vld [vmem:[#allocation2 + $0xb70] sm:$0xff] }
 0x282   :  { %v8606_v53 = vmul.f32 1.442695, %v8577_v41  ;;  %7847 = vmatpush1.bf16.msra.mxu0 %v8986_v32  ;;  %v8610_v57 = vmul.f32 1.442695, %v8579_v49  ;;  %7970 = vmatpush1.bf16.msra.mxu1 %v8988_v38  ;;  %v9084_v32 = vcombine.low %v305_v48, %v317_v14  ;;  %v9109_v36 = vcombine.high %v329_v23, %v341_v24  ;;  %v352_v38 = vld [vmem:[#allocation2 + $0x930] sm:$0xff]  ;;  %v353_v41 = vld [vmem:[#allocation2 + $0x938] sm:$0xff] }
 0x283   :  { %10146 = vpow2.f32 %v8604_v47  ;;  %7848 = vmatprep.subr.bf16.mxu0 %v9011_v39  ;;  %7971 = vmatprep.subr.bf16.mxu1 %v9013_v44  ;;  %v364_v39 = vld [vmem:[#allocation2 + $0x990] sm:$0xff]  ;;  %v9106_v44 = vcombine.low %v328_v20, %v340_v21  ;;  %v9108_v45 = vcombine.low %v329_v23, %v341_v24  ;;  %v9133_v47 = vcombine.high %v353_v41, %v365_v43  ;;  %v401_v4 = vld [vmem:[#allocation2 + $0xab8] sm:$0xff] }
 0x284   :  { %10148 = vpow2.f32 %v8608_v52  ;;  %v9131_v46 = vcombine.high %v352_v38, %v364_v39  ;;  %v376_v49 = vld [vmem:[#allocation2 + $0x9f0] sm:$0xff]  ;;  %v389_v52 = vld [vmem:[#allocation2 + $0xa58] sm:$0xff] }
 0x285   :  { %10150 = vpow2.f32 %v8606_v53  ;;  %v9130_v53 = vcombine.low %v352_v38, %v364_v39  ;;  %v413_v5 = vld [vmem:[#allocation2 + $0xb18] sm:$0xff]  ;;  %v9154_v7 = vcombine.low %v376_v49, %v388_v50  ;;  %v436_v48 = vld [vmem:[#allocation2 + $0xbd0] sm:$0xff] }
 0x286   :  { %10152 = vpow2.f32 %v8610_v57  ;;  %7849 = vmatpush1.bf16.msra.mxu0 %v9010_v56  ;;  %7972 = vmatpush1.bf16.msra.mxu1 %v9012_v58  ;;  %v9132_v56 = vcombine.low %v353_v41, %v365_v43  ;;  %v9155_v57 = vcombine.high %v376_v49, %v388_v50  ;;  %v9157_v58 = vcombine.high %v377_v51, %v389_v52  ;;  %v448_v24 = vld [vmem:[#allocation2 + $0xc30] sm:$0xff]  ;;  %v485_v38 = vld [vmem:[#allocation2 + $0xd58] sm:$0xff] }
 0x287   :  { %7850 = vmatprep.subr.bf16.mxu0 %v9035_v1  ;;  %7973 = vmatprep.subr.bf16.mxu1 %v9037_v3  ;;  %v400_v1 = vld [vmem:[#allocation2 + $0xab0] sm:$0xff]  ;;  %v9181_v12 = vcombine.high %v401_v4, %v413_v5  ;;  %v9180_v21 = vcombine.low %v401_v4, %v413_v5 }
 0x288   :  { %v412_v3 = vld [vmem:[#allocation2 + $0xb10] sm:$0xff] }
 0x289   :  { %v9178_v20 = vcombine.low %v400_v1, %v412_v3 }
 0x28a   :  { %7851 = vmatpush1.bf16.msra.mxu0 %v9034_v8  ;;  %7974 = vmatpush1.bf16.msra.mxu1 %v9036_v9  ;;  %v9156_v9 = vcombine.low %v377_v51, %v389_v52 }
 0x28b   :  { %7852 = vmatprep.subr.bf16.mxu0 %v9059_v10  ;;  %7975 = vmatprep.subr.bf16.mxu1 %v9061_v11  ;;  %v9179_v10 = vcombine.high %v400_v1, %v412_v3 }
 0x28d   :  { %v10147_v22 = vpop.eup %10146 }
 0x28e   :  { %v10149_v26 = vpop.eup %10148  ;;  %v8648_v27 = vadd.f32 1.0, %v10147_v22  ;;  %7853 = vmatpush1.bf16.msra.mxu0 %v9058_v15  ;;  %7976 = vmatpush1.bf16.msra.mxu1 %v9060_v17  ;;  %v425_v17 = vld [vmem:[#allocation2 + $0xb78] sm:$0xff]  ;;  %v9203_v22 = vcombine.high %v424_v13, %v436_v48 }
 0x28f   :  { %v10151_v30 = vpop.eup %10150  ;;  %v8650_v31 = vadd.f32 1.0, %v10149_v26  ;;  %7854 = vmatprep.subr.bf16.mxu0 %v9083_v18  ;;  %7977 = vmatprep.subr.bf16.mxu1 %v9085_v19  ;;  %v437_v18 = vld [vmem:[#allocation2 + $0xbd8] sm:$0xff]  ;;  %v460_v26 = vld [vmem:[#allocation2 + $0xc90] sm:$0xff] }
 0x290   :  { %v10153_v34 = vpop.eup %10152  ;;  %10154 = vrcp.f32 %v8648_v27  ;;  %v8649_v35 = vadd.f32 1.0, %v10151_v30  ;;  %v9205_v23 = vcombine.high %v425_v17, %v437_v18  ;;  %v449_v27 = vld [vmem:[#allocation2 + $0xc38] sm:$0xff]  ;;  %v9202_v30 = vcombine.low %v424_v13, %v436_v48  ;;  %v568_v48 = vld [vmem:[#allocation2 + $0xff0] sm:$0xff] }
 0x291   :  { %10156 = vrcp.f32 %v8650_v31  ;;  %v8651_v40 = vadd.f32 1.0, %v10153_v34  ;;  %v9204_v31 = vcombine.low %v425_v17, %v437_v18  ;;  %v472_v34 = vld [vmem:[#allocation2 + $0xcf0] sm:$0xff]  ;;  %v9226_v39 = vcombine.low %v448_v24, %v460_v26  ;;  %v581_v17 = vld [vmem:[#allocation2 + $0x1058] sm:$0xff] }
 0x292   :  { %10158 = vrcp.f32 %v8649_v35  ;;  %7855 = vmatpush1.bf16.msra.mxu0 %v9082_v29  ;;  %7978 = vmatpush1.bf16.msra.mxu1 %v9084_v32  ;;  %v461_v29 = vld [vmem:[#allocation2 + $0xc98] sm:$0xff]  ;;  %v9227_v32 = vcombine.high %v448_v24, %v460_v26  ;;  %v484_v35 = vld [vmem:[#allocation2 + $0xd50] sm:$0xff] }
 0x293   :  { %10160 = vrcp.f32 %v8651_v40  ;;  %7856 = vmatprep.subr.bf16.mxu0 %v9107_v33  ;;  %7979 = vmatprep.subr.bf16.mxu1 %v9109_v36  ;;  %v9229_v33 = vcombine.high %v449_v27, %v461_v29  ;;  %v473_v36 = vld [vmem:[#allocation2 + $0xcf8] sm:$0xff]  ;;  %v9228_v40 = vcombine.low %v449_v27, %v461_v29  ;;  %v9251_v41 = vcombine.high %v472_v34, %v484_v35 }
 0x294   :  { %v9253_v43 = vcombine.high %v473_v36, %v485_v38  ;;  %v9250_v49 = vcombine.low %v472_v34, %v484_v35  ;;  %v9252_v50 = vcombine.low %v473_v36, %v485_v38  ;;  %v593_v24 = vld [vmem:[#allocation2 + $0x10b8] sm:$0xff] }
 0x295   :  { %v605_v26 = vld [vmem:[#allocation2 + $0x1118] sm:$0xff] }
 0x296   :  { %7857 = vmatpush1.bf16.msra.mxu0 %v9106_v44  ;;  %7980 = vmatpush1.bf16.msra.mxu1 %v9108_v45  ;;  %v496_v44 = vld [vmem:[#allocation2 + $0xdb0] sm:$0xff]  ;;  %v617_v34 = vld [vmem:[#allocation2 + $0x1178] sm:$0xff]  ;;  %v9372_v38 = vcombine.low %v593_v24, %v605_v26 }
 0x297   :  { %7858 = vmatprep.subr.bf16.mxu0 %v9131_v46  ;;  %7981 = vmatprep.subr.bf16.mxu1 %v9133_v47  ;;  %v508_v45 = vld [vmem:[#allocation2 + $0xe10] sm:$0xff]  ;;  %v497_v46 = vld [vmem:[#allocation2 + $0xdb8] sm:$0xff] }
 0x298   :  { %v509_v47 = vld [vmem:[#allocation2 + $0xe18] sm:$0xff]  ;;  %v9275_v51 = vcombine.high %v496_v44, %v508_v45  ;;  %v9274_v1 = vcombine.low %v496_v44, %v508_v45 }
 0x299   :  { %v9277_v52 = vcombine.high %v497_v46, %v509_v47  ;;  %v9276_v3 = vcombine.low %v497_v46, %v509_v47  ;;  %v629_v35 = vld [vmem:[#allocation2 + $0x11d8] sm:$0xff] }
 0x29a   :  { %v10155_v6 = vpop.eup %10154  ;;  %7859 = vmatpush1.bf16.msra.mxu0 %v9130_v53  ;;  %7982 = vmatpush1.bf16.msra.mxu1 %v9132_v56  ;;  %v520_v53 = vld [vmem:[#allocation2 + $0xe70] sm:$0xff]  ;;  %v641_v44 = vld [vmem:[#allocation2 + $0x1238] sm:$0xff]  ;;  %v9396_v47 = vcombine.low %v617_v34, %v629_v35 }
 0x29b   :  { %v10157_v8 = vpop.eup %10156  ;;  %7860 = vmatprep.subr.bf16.mxu0 %v9155_v57  ;;  %7983 = vmatprep.subr.bf16.mxu1 %v9157_v58  ;;  %v532_v56 = vld [vmem:[#allocation2 + $0xed0] sm:$0xff]  ;;  %v521_v57 = vld [vmem:[#allocation2 + $0xe78] sm:$0xff] }
 0x29c   :  { %v10159_v11 = vpop.eup %10158  ;;  %v533_v58 = vld [vmem:[#allocation2 + $0xed8] sm:$0xff]  ;;  %v9299_v4 = vcombine.high %v520_v53, %v532_v56 }
 0x29d   :  { %v10161_v14 = vpop.eup %10160  ;;  %v9996_v15 = vpack.c.bf16 %v10159_v11, %v10155_v6  ;;  %v9301_v5 = vcombine.high %v521_v57, %v533_v58  ;;  %v544_v6 = vld [vmem:[#allocation2 + $0xf30] sm:$0xff]  ;;  %v9300_v11 = vcombine.low %v521_v57, %v533_v58  ;;  %v653_v45 = vld [vmem:[#allocation2 + $0x1298] sm:$0xff] }
 0x29e   :  { %v9997_v19 = vpack.c.bf16 %v10161_v14, %v10157_v8  ;;  %7861 = vmatpush1.bf16.msra.mxu0 %v9154_v7  ;;  %7984 = vmatpush1.bf16.msra.mxu1 %v9156_v9  ;;  %v556_v7 = vld [vmem:[#allocation2 + $0xf90] sm:$0xff]  ;;  %v545_v8 = vld [vmem:[#allocation2 + $0xf38] sm:$0xff]  ;;  %v9420_v58 = vcombine.low %v641_v44, %v653_v45 }
 0x29f   :  { %8814 = vst [vmem:[%s10525_s3 + $0x10] sm:$0xff] %v9996_v15  ;;  %7862 = vmatprep.subr.bf16.mxu0 %v9179_v10  ;;  %7985 = vmatprep.subr.bf16.mxu1 %v9181_v12  ;;  %v557_v9 = vld [vmem:[#allocation2 + $0xf98] sm:$0xff]  ;;  %v9298_v10 = vcombine.low %v520_v53, %v532_v56  ;;  %v9323_v12 = vcombine.high %v544_v6, %v556_v7  ;;  %v580_v14 = vld [vmem:[#allocation2 + $0x1050] sm:$0xff] }
 0x2a0   :  { %8815 = vst [vmem:[%s10525_s3 + $0x18] sm:$0xff] %v9997_v19  ;;  %v9325_v13 = vcombine.high %v545_v8, %v557_v9  ;;  %v569_v15 = vld [vmem:[#allocation2 + $0xff8] sm:$0xff]  ;;  %v9322_v18 = vcombine.low %v544_v6, %v556_v7  ;;  %v9324_v19 = vcombine.low %v545_v8, %v557_v9  ;;  %v9346_v27 = vcombine.low %v568_v48, %v580_v14 }
 0x2a1   :  { %v9348_v29 = vcombine.low %v569_v15, %v581_v17  ;;  %v665_v53 = vld [vmem:[#allocation2 + $0x12f8] sm:$0xff] }
 0x2a2   :  { %7863 = vmatpush1.bf16.msra.mxu0 %v9178_v20  ;;  %7986 = vmatpush1.bf16.msra.mxu1 %v9180_v21  ;;  %v9347_v20 = vcombine.high %v568_v48, %v580_v14  ;;  %v9349_v21 = vcombine.high %v569_v15, %v581_v17  ;;  %v677_v56 = vld [vmem:[#allocation2 + $0x1358] sm:$0xff] }
 0x2a3   :  { %7864 = vmatprep.subr.bf16.mxu0 %v9203_v22  ;;  %7987 = vmatprep.subr.bf16.mxu1 %v9205_v23  ;;  %v592_v22 = vld [vmem:[#allocation2 + $0x10b0] sm:$0xff]  ;;  %v689_v6 = vld [vmem:[#allocation2 + $0x13b8] sm:$0xff]  ;;  %v9444_v9 = vcombine.low %v665_v53, %v677_v56 }
 0x2a4   :  { %v604_v23 = vld [vmem:[#allocation2 + $0x1110] sm:$0xff]  ;;  %v701_v7 = vld [vmem:[#allocation2 + $0x1418] sm:$0xff] }
 0x2a5   :  { %v9370_v36 = vcombine.low %v592_v22, %v604_v23  ;;  %v713_v48 = vld [vmem:[#allocation2 + $0x1478] sm:$0xff]  ;;  %v9468_v17 = vcombine.low %v689_v6, %v701_v7 }
 0x2a6   :  { %7865 = vmatpush1.bf16.msra.mxu0 %v9202_v30  ;;  %7988 = vmatpush1.bf16.msra.mxu1 %v9204_v31  ;;  %v9371_v30 = vcombine.high %v592_v22, %v604_v23  ;;  %v9373_v31 = vcombine.high %v593_v24, %v605_v26  ;;  %v725_v14 = vld [vmem:[#allocation2 + $0x14d8] sm:$0xff] }
 0x2a7   :  { %7875 = vmatprep.subr.bf16.mxu0 %v9227_v32  ;;  %7998 = vmatprep.subr.bf16.mxu1 %v9229_v33  ;;  %v616_v32 = vld [vmem:[#allocation2 + $0x1170] sm:$0xff]  ;;  %v737_v22 = vld [vmem:[#allocation2 + $0x1538] sm:$0xff]  ;;  %v9492_v26 = vcombine.low %v713_v48, %v725_v14 }
 0x2a8   :  { %v628_v33 = vld [vmem:[#allocation2 + $0x11d0] sm:$0xff]  ;;  %v749_v23 = vld [vmem:[#allocation2 + $0x1598] sm:$0xff] }
 0x2a9   :  { %7867 = vmatmul.mubr.bf16.vlgmr.msra.gmra.mrb[12].mxu0 %v10337_v16  ;;  %7990 = vmatmul.mubr.bf16.vlgmr.msra.gmra.mrb[12].mxu1 %v10337_v16  ;;  %v9394_v46 = vcombine.low %v616_v32, %v628_v33 }
 0x2aa   :  { %7876 = vmatpush1.bf16.msra.mxu0 %v9226_v39  ;;  %7999 = vmatpush1.bf16.msra.mxu1 %v9228_v40  ;;  %v9395_v39 = vcombine.high %v616_v32, %v628_v33  ;;  %v9397_v40 = vcombine.high %v617_v34, %v629_v35  ;;  %v761_v32 = vld [vmem:[#allocation2 + $0x15f8] sm:$0xff]  ;;  %v9516_v35 = vcombine.low %v737_v22, %v749_v23 }
 0x2ab   :  { %7877 = vmatprep.subr.bf16.mxu0 %v9251_v41  ;;  %8000 = vmatprep.subr.bf16.mxu1 %v9253_v43  ;;  %v640_v41 = vld [vmem:[#allocation2 + $0x1230] sm:$0xff]  ;;  %v773_v33 = vld [vmem:[#allocation2 + $0x1658] sm:$0xff] }
 0x2ac   :  { %7907 = vmatprep.mubr.bf16.mxu0 %v10339_v25  ;;  %8030 = vmatprep.mubr.bf16.mxu1 %v10339_v25  ;;  %v652_v43 = vld [vmem:[#allocation2 + $0x1290] sm:$0xff] }
 0x2ad   :  { %v9418_v57 = vcombine.low %v640_v41, %v652_v43 }
 0x2ae   :  { %7878 = vmatpush1.bf16.msra.mxu0 %v9250_v49  ;;  %8001 = vmatpush1.bf16.msra.mxu1 %v9252_v50  ;;  %v9419_v49 = vcombine.high %v640_v41, %v652_v43  ;;  %v9421_v50 = vcombine.high %v641_v44, %v653_v45  ;;  %v785_v41 = vld [vmem:[#allocation2 + $0x16b8] sm:$0xff]  ;;  %v9540_v45 = vcombine.low %v761_v32, %v773_v33 }
 0x2af   :  { %7879 = vmatprep.subr.bf16.mxu0 %v9275_v51  ;;  %8002 = vmatprep.subr.bf16.mxu1 %v9277_v52  ;;  %v664_v51 = vld [vmem:[#allocation2 + $0x12f0] sm:$0xff]  ;;  %v797_v43 = vld [vmem:[#allocation2 + $0x1718] sm:$0xff] }
 0x2b0   :  { %v676_v52 = vld [vmem:[#allocation2 + $0x1350] sm:$0xff] }
 0x2b1   :  { %v9442_v8 = vcombine.low %v664_v51, %v676_v52 }
 0x2b2   :  { %7880 = vmatpush1.bf16.msra.mxu0 %v9274_v1  ;;  %8003 = vmatpush1.bf16.msra.mxu1 %v9276_v3  ;;  %v9443_v1 = vcombine.high %v664_v51, %v676_v52  ;;  %v9445_v3 = vcombine.high %v665_v53, %v677_v56  ;;  %v809_v51 = vld [vmem:[#allocation2 + $0x1778] sm:$0xff]  ;;  %v9564_v56 = vcombine.low %v785_v41, %v797_v43 }
 0x2b3   :  { %7881 = vmatprep.subr.bf16.mxu0 %v9299_v4  ;;  %8004 = vmatprep.subr.bf16.mxu1 %v9301_v5  ;;  %v688_v4 = vld [vmem:[#allocation2 + $0x13b0] sm:$0xff]  ;;  %v821_v52 = vld [vmem:[#allocation2 + $0x17d8] sm:$0xff] }
 0x2b4   :  { %v700_v5 = vld [vmem:[#allocation2 + $0x1410] sm:$0xff] }
 0x2b5   :  { %v9466_v15 = vcombine.low %v688_v4, %v700_v5 }
 0x2b6   :  { %7882 = vmatpush1.bf16.msra.mxu0 %v9298_v10  ;;  %8005 = vmatpush1.bf16.msra.mxu1 %v9300_v11  ;;  %v9467_v10 = vcombine.high %v688_v4, %v700_v5  ;;  %v9469_v11 = vcombine.high %v689_v6, %v701_v7  ;;  %v833_v4 = vld [vmem:[#allocation2 + $0x1838] sm:$0xff]  ;;  %v9588_v7 = vcombine.low %v809_v51, %v821_v52 }
 0x2b7   :  { %7883 = vmatprep.subr.bf16.mxu0 %v9323_v12  ;;  %8006 = vmatprep.subr.bf16.mxu1 %v9325_v13  ;;  %v712_v12 = vld [vmem:[#allocation2 + $0x1470] sm:$0xff]  ;;  %v845_v5 = vld [vmem:[#allocation2 + $0x1898] sm:$0xff] }
 0x2b8   :  { %v724_v13 = vld [vmem:[#allocation2 + $0x14d0] sm:$0xff] }
 0x2b9   :  { %v9490_v24 = vcombine.low %v712_v12, %v724_v13 }
 0x2ba   :  { %7884 = vmatpush1.bf16.msra.mxu0 %v9322_v18  ;;  %8007 = vmatpush1.bf16.msra.mxu1 %v9324_v19  ;;  %v9491_v18 = vcombine.high %v712_v12, %v724_v13  ;;  %v9493_v19 = vcombine.high %v713_v48, %v725_v14  ;;  %v857_v12 = vld [vmem:[#allocation2 + $0x18f8] sm:$0xff]  ;;  %v9612_v14 = vcombine.low %v833_v4, %v845_v5 }
 0x2bb   :  { %7885 = vmatprep.subr.bf16.mxu0 %v9347_v20  ;;  %8008 = vmatprep.subr.bf16.mxu1 %v9349_v21  ;;  %v736_v20 = vld [vmem:[#allocation2 + $0x1530] sm:$0xff]  ;;  %v869_v13 = vld [vmem:[#allocation2 + $0x1958] sm:$0xff] }
 0x2bc   :  { %v748_v21 = vld [vmem:[#allocation2 + $0x1590] sm:$0xff] }
 0x2bd   :  { %v9514_v34 = vcombine.low %v736_v20, %v748_v21 }
 0x2be   :  { %7886 = vmatpush1.bf16.msra.mxu0 %v9346_v27  ;;  %8009 = vmatpush1.bf16.msra.mxu1 %v9348_v29  ;;  %v9515_v27 = vcombine.high %v736_v20, %v748_v21  ;;  %v9517_v29 = vcombine.high %v737_v22, %v749_v23  ;;  %v881_v20 = vld [vmem:[#allocation2 + $0x19b8] sm:$0xff]  ;;  %v9636_v23 = vcombine.low %v857_v12, %v869_v13 }
 0x2bf   :  { %7887 = vmatprep.subr.bf16.mxu0 %v9371_v30  ;;  %8010 = vmatprep.subr.bf16.mxu1 %v9373_v31  ;;  %v760_v30 = vld [vmem:[#allocation2 + $0x15f0] sm:$0xff]  ;;  %v893_v21 = vld [vmem:[#allocation2 + $0x1a18] sm:$0xff] }
 0x2c0   :  { %v772_v31 = vld [vmem:[#allocation2 + $0x1650] sm:$0xff] }
 0x2c1   :  { %v9538_v44 = vcombine.low %v760_v30, %v772_v31 }
 0x2c2   :  { %7888 = vmatpush1.bf16.msra.mxu0 %v9370_v36  ;;  %8011 = vmatpush1.bf16.msra.mxu1 %v9372_v38  ;;  %v9539_v36 = vcombine.high %v760_v30, %v772_v31  ;;  %v9541_v38 = vcombine.high %v761_v32, %v773_v33  ;;  %v905_v30 = vld [vmem:[#allocation2 + $0x1a78] sm:$0xff]  ;;  %v9660_v33 = vcombine.low %v881_v20, %v893_v21 }
 0x2c3   :  { %7889 = vmatprep.subr.bf16.mxu0 %v9395_v39  ;;  %8012 = vmatprep.subr.bf16.mxu1 %v9397_v40  ;;  %v784_v39 = vld [vmem:[#allocation2 + $0x16b0] sm:$0xff]  ;;  %v917_v31 = vld [vmem:[#allocation2 + $0x1ad8] sm:$0xff] }
 0x2c4   :  { %v796_v40 = vld [vmem:[#allocation2 + $0x1710] sm:$0xff] }
 0x2c5   :  { %v9562_v53 = vcombine.low %v784_v39, %v796_v40 }
 0x2c6   :  { %7890 = vmatpush1.bf16.msra.mxu0 %v9394_v46  ;;  %8013 = vmatpush1.bf16.msra.mxu1 %v9396_v47  ;;  %v9563_v46 = vcombine.high %v784_v39, %v796_v40  ;;  %v9565_v47 = vcombine.high %v785_v41, %v797_v43  ;;  %v929_v39 = vld [vmem:[#allocation2 + $0x1b38] sm:$0xff]  ;;  %v9684_v43 = vcombine.low %v905_v30, %v917_v31 }
 0x2c7   :  { %7891 = vmatprep.subr.bf16.mxu0 %v9419_v49  ;;  %8014 = vmatprep.subr.bf16.mxu1 %v9421_v50  ;;  %v808_v49 = vld [vmem:[#allocation2 + $0x1770] sm:$0xff]  ;;  %v941_v40 = vld [vmem:[#allocation2 + $0x1b98] sm:$0xff] }
 0x2c8   :  { %v820_v50 = vld [vmem:[#allocation2 + $0x17d0] sm:$0xff] }
 0x2c9   :  { %v9586_v6 = vcombine.low %v808_v49, %v820_v50 }
 0x2ca   :  { %7892 = vmatpush1.bf16.msra.mxu0 %v9418_v57  ;;  %8015 = vmatpush1.bf16.msra.mxu1 %v9420_v58  ;;  %v9587_v57 = vcombine.high %v808_v49, %v820_v50  ;;  %v9589_v58 = vcombine.high %v809_v51, %v821_v52  ;;  %v953_v49 = vld [vmem:[#allocation2 + $0x1bf8] sm:$0xff]  ;;  %v9708_v52 = vcombine.low %v929_v39, %v941_v40 }
 0x2cb   :  { %7893 = vmatprep.subr.bf16.mxu0 %v9443_v1  ;;  %8016 = vmatprep.subr.bf16.mxu1 %v9445_v3  ;;  %v832_v1 = vld [vmem:[#allocation2 + $0x1830] sm:$0xff]  ;;  %v965_v50 = vld [vmem:[#allocation2 + $0x1c58] sm:$0xff] }
 0x2cc   :  { %v844_v3 = vld [vmem:[#allocation2 + $0x1890] sm:$0xff] }
 0x2cd   :  { %v9610_v48 = vcombine.low %v832_v1, %v844_v3 }
 0x2ce   :  { %7894 = vmatpush1.bf16.msra.mxu0 %v9442_v8  ;;  %8017 = vmatpush1.bf16.msra.mxu1 %v9444_v9  ;;  %v9611_v8 = vcombine.high %v832_v1, %v844_v3  ;;  %v9613_v9 = vcombine.high %v833_v4, %v845_v5  ;;  %v977_v1 = vld [vmem:[#allocation2 + $0x1cb8] sm:$0xff]  ;;  %v9732_v5 = vcombine.low %v953_v49, %v965_v50 }
 0x2cf   :  { %7895 = vmatprep.subr.bf16.mxu0 %v9467_v10  ;;  %8018 = vmatprep.subr.bf16.mxu1 %v9469_v11  ;;  %v856_v10 = vld [vmem:[#allocation2 + $0x18f0] sm:$0xff]  ;;  %v989_v3 = vld [vmem:[#allocation2 + $0x1d18] sm:$0xff] }
 0x2d0   :  { %v868_v11 = vld [vmem:[#allocation2 + $0x1950] sm:$0xff] }
 0x2d1   :  { %v9634_v22 = vcombine.low %v856_v10, %v868_v11 }
 0x2d2   :  { %7896 = vmatpush1.bf16.msra.mxu0 %v9466_v15  ;;  %8019 = vmatpush1.bf16.msra.mxu1 %v9468_v17  ;;  %v9635_v15 = vcombine.high %v856_v10, %v868_v11  ;;  %v9637_v17 = vcombine.high %v857_v12, %v869_v13  ;;  %v1001_v10 = vld [vmem:[#allocation2 + $0x1d78] sm:$0xff]  ;;  %v9756_v13 = vcombine.low %v977_v1, %v989_v3 }
 0x2d3   :  { %7897 = vmatprep.subr.bf16.mxu0 %v9491_v18  ;;  %8020 = vmatprep.subr.bf16.mxu1 %v9493_v19  ;;  %v880_v18 = vld [vmem:[#allocation2 + $0x19b0] sm:$0xff]  ;;  %v1013_v11 = vld [vmem:[#allocation2 + $0x1dd8] sm:$0xff] }
 0x2d4   :  { %v892_v19 = vld [vmem:[#allocation2 + $0x1a10] sm:$0xff] }
 0x2d5   :  { %v9658_v32 = vcombine.low %v880_v18, %v892_v19 }
 0x2d6   :  { %7898 = vmatpush1.bf16.msra.mxu0 %v9490_v24  ;;  %8021 = vmatpush1.bf16.msra.mxu1 %v9492_v26  ;;  %v9659_v24 = vcombine.high %v880_v18, %v892_v19  ;;  %v9661_v26 = vcombine.high %v881_v20, %v893_v21  ;;  %v1025_v18 = vld [vmem:[#allocation2 + $0x1e38] sm:$0xff]  ;;  %v9780_v21 = vcombine.low %v1001_v10, %v1013_v11 }
 0x2d7   :  { %7899 = vmatprep.subr.bf16.mxu0 %v9515_v27  ;;  %8022 = vmatprep.subr.bf16.mxu1 %v9517_v29  ;;  %v904_v27 = vld [vmem:[#allocation2 + $0x1a70] sm:$0xff]  ;;  %v1037_v19 = vld [vmem:[#allocation2 + $0x1e98] sm:$0xff] }
 0x2d8   :  { %v916_v29 = vld [vmem:[#allocation2 + $0x1ad0] sm:$0xff] }
 0x2d9   :  { %v9682_v41 = vcombine.low %v904_v27, %v916_v29 }
 0x2da   :  { %7900 = vmatpush1.bf16.msra.mxu0 %v9514_v34  ;;  %8023 = vmatpush1.bf16.msra.mxu1 %v9516_v35  ;;  %v9683_v34 = vcombine.high %v904_v27, %v916_v29  ;;  %v9685_v35 = vcombine.high %v905_v30, %v917_v31  ;;  %v1049_v27 = vld [vmem:[#allocation2 + $0x1ef8] sm:$0xff]  ;;  %v9804_v31 = vcombine.low %v1025_v18, %v1037_v19 }
 0x2db   :  { %7901 = vmatprep.subr.bf16.mxu0 %v9539_v36  ;;  %8024 = vmatprep.subr.bf16.mxu1 %v9541_v38  ;;  %v928_v36 = vld [vmem:[#allocation2 + $0x1b30] sm:$0xff]  ;;  %v1061_v29 = vld [vmem:[#allocation2 + $0x1f58] sm:$0xff] }
 0x2dc   :  { %v940_v38 = vld [vmem:[#allocation2 + $0x1b90] sm:$0xff] }
 0x2dd   :  { %v9706_v51 = vcombine.low %v928_v36, %v940_v38 }
 0x2de   :  { %7902 = vmatpush1.bf16.msra.mxu0 %v9538_v44  ;;  %8025 = vmatpush1.bf16.msra.mxu1 %v9540_v45  ;;  %v9707_v44 = vcombine.high %v928_v36, %v940_v38  ;;  %v9709_v45 = vcombine.high %v929_v39, %v941_v40  ;;  %v1073_v36 = vld [vmem:[#allocation2 + $0x1fb8] sm:$0xff]  ;;  %v9828_v40 = vcombine.low %v1049_v27, %v1061_v29 }
 0x2df   :  { %7903 = vmatprep.subr.bf16.mxu0 %v9563_v46  ;;  %8026 = vmatprep.subr.bf16.mxu1 %v9565_v47  ;;  %v952_v46 = vld [vmem:[#allocation2 + $0x1bf0] sm:$0xff]  ;;  %v1085_v38 = vld [vmem:[#allocation2 + $0x2018] sm:$0xff] }
 0x2e0   :  { %v964_v47 = vld [vmem:[#allocation2 + $0x1c50] sm:$0xff] }
 0x2e1   :  { %v9730_v4 = vcombine.low %v952_v46, %v964_v47 }
 0x2e2   :  { %7904 = vmatpush1.bf16.msra.mxu0 %v9562_v53  ;;  %8027 = vmatpush1.bf16.msra.mxu1 %v9564_v56  ;;  %v9731_v53 = vcombine.high %v952_v46, %v964_v47  ;;  %v9733_v56 = vcombine.high %v953_v49, %v965_v50  ;;  %v1097_v46 = vld [vmem:[#allocation2 + $0x2078] sm:$0xff]  ;;  %v9852_v50 = vcombine.low %v1073_v36, %v1085_v38 }
 0x2e3   :  { %7905 = vmatprep.subr.bf16.mxu0 %v9587_v57  ;;  %8028 = vmatprep.subr.bf16.mxu1 %v9589_v58  ;;  %v976_v57 = vld [vmem:[#allocation2 + $0x1cb0] sm:$0xff]  ;;  %v1109_v47 = vld [vmem:[#allocation2 + $0x20d8] sm:$0xff] }
 0x2e4   :  { %v988_v58 = vld [vmem:[#allocation2 + $0x1d10] sm:$0xff] }
 0x2e5   :  { %v9754_v12 = vcombine.low %v976_v57, %v988_v58 }
 0x2e6   :  { %7906 = vmatpush1.bf16.msra.mxu0 %v9586_v6  ;;  %8029 = vmatpush1.bf16.msra.mxu1 %v9588_v7  ;;  %v9755_v6 = vcombine.high %v976_v57, %v988_v58  ;;  %v9757_v7 = vcombine.high %v977_v1, %v989_v3  ;;  %v1121_v57 = vld [vmem:[#allocation2 + $0x2138] sm:$0xff]  ;;  %v9876_v3 = vcombine.low %v1097_v46, %v1109_v47 }
 0x2e7   :  { %7916 = vmatprep.subr.bf16.mxu0 %v9611_v8  ;;  %8039 = vmatprep.subr.bf16.mxu1 %v9613_v9  ;;  %v1000_v8 = vld [vmem:[#allocation2 + $0x1d70] sm:$0xff]  ;;  %v1133_v58 = vld [vmem:[#allocation2 + $0x2198] sm:$0xff] }
 0x2e8   :  { %v1012_v9 = vld [vmem:[#allocation2 + $0x1dd0] sm:$0xff] }
 0x2e9   :  { %7908 = vmatmul.mubr.bf16.vlgmr.msra.gmra.mrb[12].mxu0 %v10351_v28  ;;  %8031 = vmatmul.mubr.bf16.vlgmr.msra.gmra.mrb[12].mxu1 %v10351_v28  ;;  %v9778_v20 = vcombine.low %v1000_v8, %v1012_v9 }
 0x2ea   :  { %7917 = vmatpush1.bf16.msra.mxu0 %v9610_v48  ;;  %8040 = vmatpush1.bf16.msra.mxu1 %v9612_v14  ;;  %v9779_v48 = vcombine.high %v1000_v8, %v1012_v9  ;;  %v9781_v14 = vcombine.high %v1001_v10, %v1013_v11  ;;  %v1145_v8 = vld [vmem:[#allocation2 + $0x21f8] sm:$0xff]  ;;  %v9900_v11 = vcombine.low %v1121_v57, %v1133_v58 }
 0x2eb   :  { %7918 = vmatprep.subr.bf16.mxu0 %v9635_v15  ;;  %8041 = vmatprep.subr.bf16.mxu1 %v9637_v17  ;;  %v1024_v15 = vld [vmem:[#allocation2 + $0x1e30] sm:$0xff]  ;;  %v1157_v9 = vld [vmem:[#allocation2 + $0x2258] sm:$0xff] }
 0x2ec   :  { %7948 = vmatprep.mubr.bf16.mxu0 %v10353_v37  ;;  %8071 = vmatprep.mubr.bf16.mxu1 %v10353_v37  ;;  %v1036_v17 = vld [vmem:[#allocation2 + $0x1e90] sm:$0xff] }
 0x2ed   :  { %v9802_v30 = vcombine.low %v1024_v15, %v1036_v17 }
 0x2ee   :  { %7919 = vmatpush1.bf16.msra.mxu0 %v9634_v22  ;;  %8042 = vmatpush1.bf16.msra.mxu1 %v9636_v23  ;;  %v9803_v22 = vcombine.high %v1024_v15, %v1036_v17  ;;  %v9805_v23 = vcombine.high %v1025_v18, %v1037_v19  ;;  %v1169_v15 = vld [vmem:[#allocation2 + $0x22b8] sm:$0xff]  ;;  %v9924_v19 = vcombine.low %v1145_v8, %v1157_v9 }
 0x2ef   :  { %7920 = vmatprep.subr.bf16.mxu0 %v9659_v24  ;;  %8043 = vmatprep.subr.bf16.mxu1 %v9661_v26  ;;  %v1048_v24 = vld [vmem:[#allocation2 + $0x1ef0] sm:$0xff]  ;;  %v1181_v17 = vld [vmem:[#allocation2 + $0x2318] sm:$0xff] }
 0x2f0   :  { %v1060_v26 = vld [vmem:[#allocation2 + $0x1f50] sm:$0xff] }
 0x2f1   :  { %v9826_v39 = vcombine.low %v1048_v24, %v1060_v26 }
 0x2f2   :  { %7921 = vmatpush1.bf16.msra.mxu0 %v9658_v32  ;;  %8044 = vmatpush1.bf16.msra.mxu1 %v9660_v33  ;;  %v9827_v32 = vcombine.high %v1048_v24, %v1060_v26  ;;  %v9829_v33 = vcombine.high %v1049_v27, %v1061_v29  ;;  %v1193_v24 = vld [vmem:[#allocation2 + $0x2378] sm:$0xff]  ;;  %v9948_v29 = vcombine.low %v1169_v15, %v1181_v17 }
 0x2f3   :  { %7922 = vmatprep.subr.bf16.mxu0 %v9683_v34  ;;  %8045 = vmatprep.subr.bf16.mxu1 %v9685_v35  ;;  %v1072_v34 = vld [vmem:[#allocation2 + $0x1fb0] sm:$0xff]  ;;  %v1205_v26 = vld [vmem:[#allocation2 + $0x23d8] sm:$0xff] }
 0x2f4   :  { %v1084_v35 = vld [vmem:[#allocation2 + $0x2010] sm:$0xff] }
 0x2f5   :  { %v9850_v49 = vcombine.low %v1072_v34, %v1084_v35 }
 0x2f6   :  { %7923 = vmatpush1.bf16.msra.mxu0 %v9682_v41  ;;  %8046 = vmatpush1.bf16.msra.mxu1 %v9684_v43  ;;  %v9851_v41 = vcombine.high %v1072_v34, %v1084_v35  ;;  %v9853_v43 = vcombine.high %v1073_v36, %v1085_v38  ;;  %v67_v34 = vld [vmem:[#allocation2 + $0x48] sm:$0xff]  ;;  %v9972_v38 = vcombine.low %v1193_v24, %v1205_v26 }
 0x2f7   :  { %7924 = vmatprep.subr.bf16.mxu0 %v9707_v44  ;;  %8047 = vmatprep.subr.bf16.mxu1 %v9709_v45  ;;  %v1096_v44 = vld [vmem:[#allocation2 + $0x2070] sm:$0xff]  ;;  %v79_v35 = vld [vmem:[#allocation2 + $0xa8] sm:$0xff] }
 0x2f8   :  { %v1108_v45 = vld [vmem:[#allocation2 + $0x20d0] sm:$0xff] }
 0x2f9   :  { %v9874_v1 = vcombine.low %v1096_v44, %v1108_v45 }
 0x2fa   :  { %7925 = vmatpush1.bf16.msra.mxu0 %v9706_v51  ;;  %8048 = vmatpush1.bf16.msra.mxu1 %v9708_v52  ;;  %v9875_v51 = vcombine.high %v1096_v44, %v1108_v45  ;;  %v9877_v52 = vcombine.high %v1097_v46, %v1109_v47  ;;  %v91_v44 = vld [vmem:[#allocation2 + $0x108] sm:$0xff]  ;;  %v8848_v47 = vcombine.low %v67_v34, %v79_v35 }
 0x2fb   :  { %7926 = vmatprep.subr.bf16.mxu0 %v9731_v53  ;;  %8049 = vmatprep.subr.bf16.mxu1 %v9733_v56  ;;  %v1120_v53 = vld [vmem:[#allocation2 + $0x2130] sm:$0xff]  ;;  %v103_v45 = vld [vmem:[#allocation2 + $0x168] sm:$0xff] }
 0x2fc   :  { %v1132_v56 = vld [vmem:[#allocation2 + $0x2190] sm:$0xff] }
 0x2fd   :  { %v9898_v10 = vcombine.low %v1120_v53, %v1132_v56 }
 0x2fe   :  { %7927 = vmatpush1.bf16.msra.mxu0 %v9730_v4  ;;  %8050 = vmatpush1.bf16.msra.mxu1 %v9732_v5  ;;  %v9899_v4 = vcombine.high %v1120_v53, %v1132_v56  ;;  %v9901_v5 = vcombine.high %v1121_v57, %v1133_v58  ;;  %v115_v53 = vld [vmem:[#allocation2 + $0x1c8] sm:$0xff]  ;;  %v8872_v58 = vcombine.low %v91_v44, %v103_v45 }
 0x2ff   :  { %7928 = vmatprep.subr.bf16.mxu0 %v9755_v6  ;;  %8051 = vmatprep.subr.bf16.mxu1 %v9757_v7  ;;  %v1144_v6 = vld [vmem:[#allocation2 + $0x21f0] sm:$0xff]  ;;  %v127_v56 = vld [vmem:[#allocation2 + $0x228] sm:$0xff] }
 0x300   :  { %v1156_v7 = vld [vmem:[#allocation2 + $0x2250] sm:$0xff] }
 0x301   :  { %v9922_v18 = vcombine.low %v1144_v6, %v1156_v7 }
 0x302   :  { %7929 = vmatpush1.bf16.msra.mxu0 %v9754_v12  ;;  %8052 = vmatpush1.bf16.msra.mxu1 %v9756_v13  ;;  %v9923_v12 = vcombine.high %v1144_v6, %v1156_v7  ;;  %v9925_v13 = vcombine.high %v1145_v8, %v1157_v9  ;;  %v139_v6 = vld [vmem:[#allocation2 + $0x288] sm:$0xff]  ;;  %v8896_v9 = vcombine.low %v115_v53, %v127_v56 }
 0x303   :  { %7930 = vmatprep.subr.bf16.mxu0 %v9779_v48  ;;  %8053 = vmatprep.subr.bf16.mxu1 %v9781_v14  ;;  %v1168_v48 = vld [vmem:[#allocation2 + $0x22b0] sm:$0xff]  ;;  %v151_v7 = vld [vmem:[#allocation2 + $0x2e8] sm:$0xff] }
 0x304   :  { %v1180_v14 = vld [vmem:[#allocation2 + $0x2310] sm:$0xff] }
 0x305   :  { %v9946_v27 = vcombine.low %v1168_v48, %v1180_v14 }
 0x306   :  { %7931 = vmatpush1.bf16.msra.mxu0 %v9778_v20  ;;  %8054 = vmatpush1.bf16.msra.mxu1 %v9780_v21  ;;  %v9947_v20 = vcombine.high %v1168_v48, %v1180_v14  ;;  %v9949_v21 = vcombine.high %v1169_v15, %v1181_v17  ;;  %v163_v48 = vld [vmem:[#allocation2 + $0x348] sm:$0xff]  ;;  %v8920_v17 = vcombine.low %v139_v6, %v151_v7 }
 0x307   :  { %7932 = vmatprep.subr.bf16.mxu0 %v9803_v22  ;;  %8055 = vmatprep.subr.bf16.mxu1 %v9805_v23  ;;  %v1192_v22 = vld [vmem:[#allocation2 + $0x2370] sm:$0xff]  ;;  %v175_v14 = vld [vmem:[#allocation2 + $0x3a8] sm:$0xff] }
 0x308   :  { %v1204_v23 = vld [vmem:[#allocation2 + $0x23d0] sm:$0xff] }
 0x309   :  { %v9970_v36 = vcombine.low %v1192_v22, %v1204_v23 }
 0x30a   :  { %7933 = vmatpush1.bf16.msra.mxu0 %v9802_v30  ;;  %8056 = vmatpush1.bf16.msra.mxu1 %v9804_v31  ;;  %v9971_v30 = vcombine.high %v1192_v22, %v1204_v23  ;;  %v9973_v31 = vcombine.high %v1193_v24, %v1205_v26  ;;  %v187_v22 = vld [vmem:[#allocation2 + $0x408] sm:$0xff] }
 0x30b   :  { %7934 = vmatprep.subr.bf16.mxu0 %v9827_v32  ;;  %8057 = vmatprep.subr.bf16.mxu1 %v9829_v33  ;;  %v66_v32 = vld [vmem:[#allocation2 + $0x40] sm:$0xff]  ;;  %v199_v23 = vld [vmem:[#allocation2 + $0x468] sm:$0xff] }
 0x30c   :  { %v78_v33 = vld [vmem:[#allocation2 + $0xa0] sm:$0xff]  ;;  %v1211_v26 = vld [vmem:[#allocation4 + $0x8] sm:$0xff] }
 0x30d   :  { %v8846_v46 = vcombine.low %v66_v32, %v78_v33 }
 0x30e   :  { %7935 = vmatpush1.bf16.msra.mxu0 %v9826_v39  ;;  %8058 = vmatpush1.bf16.msra.mxu1 %v9828_v40  ;;  %v8847_v39 = vcombine.high %v66_v32, %v78_v33  ;;  %v8849_v40 = vcombine.high %v67_v34, %v79_v35  ;;  %v222_v32 = vld [vmem:[#allocation2 + $0x520] sm:$0xff]  ;;  %v1251_v33 = vrot.slane %v1211_v26, %v10383_v55  ;;  %v211_v34 = vld [vmem:[#allocation2 + $0x4c8] sm:$0xff] }
 0x30f   :  { %7936 = vmatprep.subr.bf16.mxu0 %v9851_v41  ;;  %8059 = vmatprep.subr.bf16.mxu1 %v9853_v43  ;;  %v90_v41 = vld [vmem:[#allocation2 + $0x100] sm:$0xff]  ;;  %v223_v35 = vld [vmem:[#allocation2 + $0x528] sm:$0xff] }
 0x310   :  { %v102_v43 = vld [vmem:[#allocation2 + $0x160] sm:$0xff] }
 0x311   :  { %v8870_v57 = vcombine.low %v90_v41, %v102_v43 }
 0x312   :  { %7937 = vmatpush1.bf16.msra.mxu0 %v9850_v49  ;;  %8060 = vmatpush1.bf16.msra.mxu1 %v9852_v50  ;;  %v8871_v49 = vcombine.high %v90_v41, %v102_v43  ;;  %v8873_v50 = vcombine.high %v91_v44, %v103_v45  ;;  %v8968_v41 = vcombine.low %v187_v22, %v199_v23 }
 0x313   :  { %7938 = vmatprep.subr.bf16.mxu0 %v9875_v51  ;;  %8061 = vmatprep.subr.bf16.mxu1 %v9877_v52  ;;  %v114_v51 = vld [vmem:[#allocation2 + $0x1c0] sm:$0xff]  ;;  %v8993_v45 = vcombine.high %v211_v34, %v223_v35 }
 0x314   :  { %v126_v52 = vld [vmem:[#allocation2 + $0x220] sm:$0xff] }
 0x315   :  { %v8894_v8 = vcombine.low %v114_v51, %v126_v52 }
 0x316   :  { %7939 = vmatpush1.bf16.msra.mxu0 %v9874_v1  ;;  %8062 = vmatpush1.bf16.msra.mxu1 %v9876_v3  ;;  %v8895_v1 = vcombine.high %v114_v51, %v126_v52  ;;  %v8897_v3 = vcombine.high %v115_v53, %v127_v56  ;;  %v235_v52 = vld [vmem:[#allocation2 + $0x588] sm:$0xff] }
 0x317   :  { %7940 = vmatprep.subr.bf16.mxu0 %v9899_v4  ;;  %8063 = vmatprep.subr.bf16.mxu1 %v9901_v5  ;;  %v138_v4 = vld [vmem:[#allocation2 + $0x280] sm:$0xff]  ;;  %v247_v53 = vld [vmem:[#allocation2 + $0x5e8] sm:$0xff] }
 0x318   :  { %v150_v5 = vld [vmem:[#allocation2 + $0x2e0] sm:$0xff] }
 0x319   :  { %v8918_v15 = vcombine.low %v138_v4, %v150_v5 }
 0x31a   :  { %7941 = vmatpush1.bf16.msra.mxu0 %v9898_v10  ;;  %8064 = vmatpush1.bf16.msra.mxu1 %v9900_v11  ;;  %v8919_v10 = vcombine.high %v138_v4, %v150_v5  ;;  %v8921_v11 = vcombine.high %v139_v6, %v151_v7 }
 0x31b   :  { %7942 = vmatprep.subr.bf16.mxu0 %v9923_v12  ;;  %8065 = vmatprep.subr.bf16.mxu1 %v9925_v13  ;;  %v162_v12 = vld [vmem:[#allocation2 + $0x340] sm:$0xff] }
 0x31c   :  { %v174_v13 = vld [vmem:[#allocation2 + $0x3a0] sm:$0xff] }
 0x31d   :  { %v8942_v24 = vcombine.low %v162_v12, %v174_v13 }
 0x31e   :  { %7943 = vmatpush1.bf16.msra.mxu0 %v9922_v18  ;;  %8066 = vmatpush1.bf16.msra.mxu1 %v9924_v19  ;;  %v8943_v18 = vcombine.high %v162_v12, %v174_v13  ;;  %v8945_v19 = vcombine.high %v163_v48, %v175_v14  ;;  %v9017_v13 = vcombine.high %v235_v52, %v247_v53 }
 0x31f   :  { %7944 = vmatprep.subr.bf16.mxu0 %v9947_v20  ;;  %8067 = vmatprep.subr.bf16.mxu1 %v9949_v21  ;;  %v186_v20 = vld [vmem:[#allocation2 + $0x400] sm:$0xff] }
 0x320   :  { %v198_v21 = vld [vmem:[#allocation2 + $0x460] sm:$0xff] }
 0x322   :  { %7945 = vmatpush1.bf16.msra.mxu0 %v9946_v27  ;;  %8068 = vmatpush1.bf16.msra.mxu1 %v9948_v29  ;;  %v8944_v27 = vcombine.low %v163_v48, %v175_v14  ;;  %v8967_v29 = vcombine.high %v186_v20, %v198_v21  ;;  %v258_v48 = vld [vmem:[#allocation2 + $0x640] sm:$0xff] }
 0x323   :  { %7946 = vmatprep.subr.bf16.mxu0 %v9971_v30  ;;  %8069 = vmatprep.subr.bf16.mxu1 %v9973_v31  ;;  %v8969_v30 = vcombine.high %v187_v22, %v199_v23  ;;  %v210_v31 = vld [vmem:[#allocation2 + $0x4c0] sm:$0xff] }
 0x324   :  { %v8991_v43 = vcombine.high %v210_v31, %v222_v32  ;;  %v270_v14 = vld [vmem:[#allocation2 + $0x6a0] sm:$0xff] }
 0x326   :  { %7947 = vmatpush1.bf16.msra.mxu0 %v9970_v36  ;;  %8070 = vmatpush1.bf16.msra.mxu1 %v9972_v38  ;;  %v1259_v36 = vrot.slane %v1211_v26, %v10386_v60  ;;  %v1255_v38 = vrot.slane %v1211_v26, %v10389_v62 }
 0x327   :  { %8080 = vmatprep.subr.bf16.mxu0 %v8847_v39  ;;  %8203 = vmatprep.subr.bf16.mxu1 %v8849_v40  ;;  %v8966_v39 = vcombine.low %v186_v20, %v198_v21  ;;  %v1263_v40 = vrot.slane %v1211_v26, %v10392_v0  ;;  %v9039_v26 = vcombine.high %v258_v48, %v270_v14 }
 0x329   :  { %7949 = vmatmul.mubr.bf16.vlgmr.msra.gmra.mrb[12].mxu0 %v10362_v42  ;;  %8072 = vmatmul.mubr.bf16.vlgmr.msra.gmra.mrb[12].mxu1 %v10362_v42 }
 0x32a   :  { %8081 = vmatpush1.bf16.msra.mxu0 %v8846_v46  ;;  %8204 = vmatpush1.bf16.msra.mxu1 %v8848_v47  ;;  %v234_v46 = vld [vmem:[#allocation2 + $0x580] sm:$0xff] }
 0x32b   :  { %8082 = vmatprep.subr.bf16.mxu0 %v8871_v49  ;;  %8205 = vmatprep.subr.bf16.mxu1 %v8873_v50  ;;  %v246_v47 = vld [vmem:[#allocation2 + $0x5e0] sm:$0xff] }
 0x32c   :  { %8112 = vmatprep.mubr.bf16.mxu0 %v10327_v61  ;;  %8235 = vmatprep.mubr.bf16.mxu1 %v10327_v61  ;;  %v9014_v22 = vcombine.low %v234_v46, %v246_v47 }
 0x32e   :  { %8083 = vmatpush1.bf16.msra.mxu0 %v8870_v57  ;;  %8206 = vmatpush1.bf16.msra.mxu1 %v8872_v58 }
 0x32f   :  { %8084 = vmatprep.subr.bf16.mxu0 %v8895_v1  ;;  %8207 = vmatprep.subr.bf16.mxu1 %v8897_v3  ;;  %v8990_v3 = vcombine.low %v210_v31, %v222_v32  ;;  %v283_v31 = vld [vmem:[#allocation2 + $0x708] sm:$0xff] }
 0x330   :  { %v295_v32 = vld [vmem:[#allocation2 + $0x768] sm:$0xff] }
 0x332   :  { %8085 = vmatpush1.bf16.msra.mxu0 %v8894_v8  ;;  %8208 = vmatpush1.bf16.msra.mxu1 %v8896_v9  ;;  %v8992_v8 = vcombine.low %v211_v34, %v223_v35  ;;  %v9015_v9 = vcombine.high %v234_v46, %v246_v47  ;;  %v330_v47 = vld [vmem:[#allocation2 + $0x880] sm:$0xff] }
 0x333   :  { %8086 = vmatprep.subr.bf16.mxu0 %v8919_v10  ;;  %8209 = vmatprep.subr.bf16.mxu1 %v8921_v11 }
 0x336   :  { %8087 = vmatpush1.bf16.msra.mxu0 %v8918_v15  ;;  %8210 = vmatpush1.bf16.msra.mxu1 %v8920_v17 }
 0x337   :  { %8088 = vmatprep.subr.bf16.mxu0 %v8943_v18  ;;  %8211 = vmatprep.subr.bf16.mxu1 %v8945_v19  ;;  %v259_v18 = vld [vmem:[#allocation2 + $0x648] sm:$0xff] }
 0x338   :  { %v271_v19 = vld [vmem:[#allocation2 + $0x6a8] sm:$0xff] }
 0x339   :  { %v9040_v34 = vcombine.low %v259_v18, %v271_v19 }
 0x33a   :  { %8089 = vmatpush1.bf16.msra.mxu0 %v8942_v24  ;;  %8212 = vmatpush1.bf16.msra.mxu1 %v8944_v27  ;;  %v9016_v24 = vcombine.low %v235_v52, %v247_v53  ;;  %v9041_v27 = vcombine.high %v259_v18, %v271_v19  ;;  %v343_v52 = vld [vmem:[#allocation2 + $0x8e8] sm:$0xff]  ;;  %v390_v18 = vld [vmem:[#allocation2 + $0xa60] sm:$0xff] }
 0x33b   :  { %8090 = vmatprep.subr.bf16.mxu0 %v8967_v29  ;;  %8213 = vmatprep.subr.bf16.mxu1 %v8969_v30  ;;  %v282_v29 = vld [vmem:[#allocation2 + $0x700] sm:$0xff]  ;;  %v379_v19 = vld [vmem:[#allocation2 + $0xa08] sm:$0xff] }
 0x33c   :  { %v7704_v44 = vpop.f32.mrb[8].mxu0  ;;  %v7827_v50 = vpop.f32.mrb[8].mxu1  ;;  %v294_v30 = vld [vmem:[#allocation2 + $0x760] sm:$0xff] }
 0x33d   :  { %v10014_v49 = vadd.f32 %v7704_v44, %v1251_v33  ;;  %v7706_v51 = vpop.f32.mrb[9].mxu0  ;;  %v10016_v56 = vadd.f32 %v7827_v50, %v1259_v36  ;;  %v7829_v58 = vpop.f32.mrb[9].mxu1  ;;  %v9038_v33 = vcombine.low %v258_v48, %v270_v14  ;;  %v9063_v35 = vcombine.high %v282_v29, %v294_v30 }
 0x33e   :  { %v10015_v57 = vadd.f32 %v7706_v51, %v1255_v38  ;;  %v7708_v1 = vpop.f32.mrb[10].mxu0  ;;  %8091 = vmatpush1.bf16.msra.mxu0 %v8966_v39  ;;  %v10017_v5 = vadd.f32 %v7829_v58, %v1263_v40  ;;  %v7831_v6 = vpop.f32.mrb[10].mxu1  ;;  %8214 = vmatpush1.bf16.msra.mxu1 %v8968_v41  ;;  %v9065_v36 = vcombine.high %v283_v31, %v295_v32  ;;  %v306_v38 = vld [vmem:[#allocation2 + $0x7c0] sm:$0xff]  ;;  %v307_v40 = vld [vmem:[#allocation2 + $0x7c8] sm:$0xff] }
 0x33f   :  { %v8580_v4 = vsub.f32 0.0, %v10014_v49  ;;  %v7709_v7 = vpop.f32.mrb[11].mxu0  ;;  %8092 = vmatprep.subr.bf16.mxu0 %v8991_v43  ;;  %v8582_v10 = vsub.f32 0.0, %v10016_v56  ;;  %v7832_v12 = vpop.f32.mrb[11].mxu1  ;;  %8215 = vmatprep.subr.bf16.mxu1 %v8993_v45  ;;  %v318_v39 = vld [vmem:[#allocation2 + $0x820] sm:$0xff]  ;;  %v319_v41 = vld [vmem:[#allocation2 + $0x828] sm:$0xff]  ;;  %v9062_v43 = vcombine.low %v282_v29, %v294_v30  ;;  %v9064_v44 = vcombine.low %v283_v31, %v295_v32 }
 0x340   :  { %v8581_v11 = vsub.f32 0.0, %v10015_v57  ;;  %v8583_v17 = vsub.f32 0.0, %v10017_v5  ;;  %v9087_v45 = vcombine.high %v306_v38, %v318_v39  ;;  %v9089_v46 = vcombine.high %v307_v40, %v319_v41  ;;  %v342_v49 = vld [vmem:[#allocation2 + $0x8e0] sm:$0xff]  ;;  %v331_v51 = vld [vmem:[#allocation2 + $0x888] sm:$0xff] }
 0x341   :  { %v8612_v15 = vmul.f32 1.442695, %v8580_v4  ;;  %v8616_v20 = vmul.f32 1.442695, %v8582_v10  ;;  %v9086_v57 = vcombine.low %v306_v38, %v318_v39  ;;  %v9111_v4 = vcombine.high %v330_v47, %v342_v49  ;;  %v367_v12 = vld [vmem:[#allocation2 + $0x9a8] sm:$0xff]  ;;  %v426_v39 = vld [vmem:[#allocation2 + $0xb80] sm:$0xff] }
 0x342   :  { %v8614_v21 = vmul.f32 1.442695, %v8581_v11  ;;  %8093 = vmatpush1.bf16.msra.mxu0 %v8990_v3  ;;  %v8618_v23 = vmul.f32 1.442695, %v8583_v17  ;;  %8216 = vmatpush1.bf16.msra.mxu1 %v8992_v8  ;;  %v9088_v3 = vcombine.low %v307_v40, %v319_v41  ;;  %v9113_v7 = vcombine.high %v331_v51, %v343_v52  ;;  %v354_v8 = vld [vmem:[#allocation2 + $0x940] sm:$0xff]  ;;  %v355_v11 = vld [vmem:[#allocation2 + $0x948] sm:$0xff] }
 0x343   :  { %10162 = vpow2.f32 %v8612_v15  ;;  %8094 = vmatprep.subr.bf16.mxu0 %v9015_v9  ;;  %8217 = vmatprep.subr.bf16.mxu1 %v9017_v13  ;;  %v366_v9 = vld [vmem:[#allocation2 + $0x9a0] sm:$0xff]  ;;  %v9110_v13 = vcombine.low %v330_v47, %v342_v49  ;;  %v9112_v48 = vcombine.low %v331_v51, %v343_v52  ;;  %v9137_v15 = vcombine.high %v355_v11, %v367_v12  ;;  %v403_v29 = vld [vmem:[#allocation2 + $0xac8] sm:$0xff] }
 0x344   :  { %10164 = vpow2.f32 %v8616_v20  ;;  %v9135_v14 = vcombine.high %v354_v8, %v366_v9  ;;  %v378_v17 = vld [vmem:[#allocation2 + $0xa00] sm:$0xff]  ;;  %v391_v20 = vld [vmem:[#allocation2 + $0xa68] sm:$0xff] }
 0x345   :  { %10166 = vpow2.f32 %v8614_v21  ;;  %v9134_v21 = vcombine.low %v354_v8, %v366_v9  ;;  %v415_v30 = vld [vmem:[#allocation2 + $0xb28] sm:$0xff]  ;;  %v9158_v32 = vcombine.low %v378_v17, %v390_v18  ;;  %v438_v40 = vld [vmem:[#allocation2 + $0xbe0] sm:$0xff] }
 0x346   :  { %10168 = vpow2.f32 %v8618_v23  ;;  %8095 = vmatpush1.bf16.msra.mxu0 %v9014_v22  ;;  %8218 = vmatpush1.bf16.msra.mxu1 %v9016_v24  ;;  %v9136_v22 = vcombine.low %v355_v11, %v367_v12  ;;  %v9159_v23 = vcombine.high %v378_v17, %v390_v18  ;;  %v9161_v24 = vcombine.high %v379_v19, %v391_v20  ;;  %v450_v52 = vld [vmem:[#allocation2 + $0xc40] sm:$0xff]  ;;  %v487_v8 = vld [vmem:[#allocation2 + $0xd68] sm:$0xff] }
 0x347   :  { %8096 = vmatprep.subr.bf16.mxu0 %v9039_v26  ;;  %8219 = vmatprep.subr.bf16.mxu1 %v9041_v27  ;;  %v402_v26 = vld [vmem:[#allocation2 + $0xac0] sm:$0xff]  ;;  %v9185_v38 = vcombine.high %v403_v29, %v415_v30  ;;  %v9184_v49 = vcombine.low %v403_v29, %v415_v30 }
 0x348   :  { %v414_v27 = vld [vmem:[#allocation2 + $0xb20] sm:$0xff] }
 0x349   :  { %v9182_v47 = vcombine.low %v402_v26, %v414_v27 }
 0x34a   :  { %8097 = vmatpush1.bf16.msra.mxu0 %v9038_v33  ;;  %8220 = vmatpush1.bf16.msra.mxu1 %v9040_v34  ;;  %v9160_v34 = vcombine.low %v379_v19, %v391_v20 }
 0x34b   :  { %8098 = vmatprep.subr.bf16.mxu0 %v9063_v35  ;;  %8221 = vmatprep.subr.bf16.mxu1 %v9065_v36  ;;  %v9183_v35 = vcombine.high %v402_v26, %v414_v27 }
 0x34d   :  { %v10163_v50 = vpop.eup %10162 }
 0x34e   :  { %v10165_v53 = vpop.eup %10164  ;;  %v8652_v56 = vadd.f32 1.0, %v10163_v50  ;;  %8099 = vmatpush1.bf16.msra.mxu0 %v9062_v43  ;;  %8222 = vmatpush1.bf16.msra.mxu1 %v9064_v44  ;;  %v427_v44 = vld [vmem:[#allocation2 + $0xb88] sm:$0xff]  ;;  %v9207_v50 = vcombine.high %v426_v39, %v438_v40 }
 0x34f   :  { %v10167_v58 = vpop.eup %10166  ;;  %v8654_v1 = vadd.f32 1.0, %v10165_v53  ;;  %8100 = vmatprep.subr.bf16.mxu0 %v9087_v45  ;;  %8223 = vmatprep.subr.bf16.mxu1 %v9089_v46  ;;  %v439_v45 = vld [vmem:[#allocation2 + $0xbe8] sm:$0xff]  ;;  %v462_v53 = vld [vmem:[#allocation2 + $0xca0] sm:$0xff] }
 0x350   :  { %v10169_v5 = vpop.eup %10168  ;;  %10170 = vrcp.f32 %v8652_v56  ;;  %v8653_v6 = vadd.f32 1.0, %v10167_v58  ;;  %v9209_v51 = vcombine.high %v427_v44, %v439_v45  ;;  %v451_v56 = vld [vmem:[#allocation2 + $0xc48] sm:$0xff]  ;;  %v9206_v58 = vcombine.low %v426_v39, %v438_v40  ;;  %v570_v40 = vld [vmem:[#allocation2 + $0x1000] sm:$0xff] }
 0x351   :  { %10172 = vrcp.f32 %v8654_v1  ;;  %v8655_v10 = vadd.f32 1.0, %v10169_v5  ;;  %v9208_v1 = vcombine.low %v427_v44, %v439_v45  ;;  %v474_v5 = vld [vmem:[#allocation2 + $0xd00] sm:$0xff]  ;;  %v9230_v9 = vcombine.low %v450_v52, %v462_v53  ;;  %v583_v44 = vld [vmem:[#allocation2 + $0x1068] sm:$0xff] }
 0x352   :  { %10174 = vrcp.f32 %v8653_v6  ;;  %8101 = vmatpush1.bf16.msra.mxu0 %v9086_v57  ;;  %8224 = vmatpush1.bf16.msra.mxu1 %v9088_v3  ;;  %v463_v57 = vld [vmem:[#allocation2 + $0xca8] sm:$0xff]  ;;  %v9231_v3 = vcombine.high %v450_v52, %v462_v53  ;;  %v486_v6 = vld [vmem:[#allocation2 + $0xd60] sm:$0xff] }
 0x353   :  { %10176 = vrcp.f32 %v8655_v10  ;;  %8102 = vmatprep.subr.bf16.mxu0 %v9111_v4  ;;  %8225 = vmatprep.subr.bf16.mxu1 %v9113_v7  ;;  %v9233_v4 = vcombine.high %v451_v56, %v463_v57  ;;  %v475_v7 = vld [vmem:[#allocation2 + $0xd08] sm:$0xff]  ;;  %v9232_v10 = vcombine.low %v451_v56, %v463_v57  ;;  %v9255_v11 = vcombine.high %v474_v5, %v486_v6 }
 0x354   :  { %v9257_v12 = vcombine.high %v475_v7, %v487_v8  ;;  %v9254_v17 = vcombine.low %v474_v5, %v486_v6  ;;  %v9256_v18 = vcombine.low %v475_v7, %v487_v8  ;;  %v595_v52 = vld [vmem:[#allocation2 + $0x10c8] sm:$0xff] }
 0x355   :  { %v607_v53 = vld [vmem:[#allocation2 + $0x1128] sm:$0xff] }
 0x356   :  { %8103 = vmatpush1.bf16.msra.mxu0 %v9110_v13  ;;  %8226 = vmatpush1.bf16.msra.mxu1 %v9112_v48  ;;  %v498_v13 = vld [vmem:[#allocation2 + $0xdc0] sm:$0xff]  ;;  %v619_v5 = vld [vmem:[#allocation2 + $0x1188] sm:$0xff]  ;;  %v9376_v8 = vcombine.low %v595_v52, %v607_v53 }
 0x357   :  { %8104 = vmatprep.subr.bf16.mxu0 %v9135_v14  ;;  %8227 = vmatprep.subr.bf16.mxu1 %v9137_v15  ;;  %v510_v48 = vld [vmem:[#allocation2 + $0xe20] sm:$0xff]  ;;  %v499_v14 = vld [vmem:[#allocation2 + $0xdc8] sm:$0xff] }
 0x358   :  { %v511_v15 = vld [vmem:[#allocation2 + $0xe28] sm:$0xff]  ;;  %v9279_v19 = vcombine.high %v498_v13, %v510_v48  ;;  %v9278_v26 = vcombine.low %v498_v13, %v510_v48 }
 0x359   :  { %v9281_v20 = vcombine.high %v499_v14, %v511_v15  ;;  %v9280_v27 = vcombine.low %v499_v14, %v511_v15  ;;  %v631_v6 = vld [vmem:[#allocation2 + $0x11e8] sm:$0xff] }
 0x35a   :  { %v10171_v31 = vpop.eup %10170  ;;  %8105 = vmatpush1.bf16.msra.mxu0 %v9134_v21  ;;  %8228 = vmatpush1.bf16.msra.mxu1 %v9136_v22  ;;  %v522_v21 = vld [vmem:[#allocation2 + $0xe80] sm:$0xff]  ;;  %v643_v13 = vld [vmem:[#allocation2 + $0x1248] sm:$0xff]  ;;  %v9400_v15 = vcombine.low %v619_v5, %v631_v6 }
 0x35b   :  { %v10173_v33 = vpop.eup %10172  ;;  %8106 = vmatprep.subr.bf16.mxu0 %v9159_v23  ;;  %8229 = vmatprep.subr.bf16.mxu1 %v9161_v24  ;;  %v534_v22 = vld [vmem:[#allocation2 + $0xee0] sm:$0xff]  ;;  %v523_v23 = vld [vmem:[#allocation2 + $0xe88] sm:$0xff] }
 0x35c   :  { %v10175_v36 = vpop.eup %10174  ;;  %v535_v24 = vld [vmem:[#allocation2 + $0xee8] sm:$0xff]  ;;  %v9303_v29 = vcombine.high %v522_v21, %v534_v22 }
 0x35d   :  { %v10177_v41 = vpop.eup %10176  ;;  %v9998_v43 = vpack.c.bf16 %v10175_v36, %v10171_v31  ;;  %v9305_v30 = vcombine.high %v523_v23, %v535_v24  ;;  %v546_v31 = vld [vmem:[#allocation2 + $0xf40] sm:$0xff]  ;;  %v9304_v36 = vcombine.low %v523_v23, %v535_v24  ;;  %v655_v48 = vld [vmem:[#allocation2 + $0x12a8] sm:$0xff] }
 0x35e   :  { %v9999_v46 = vpack.c.bf16 %v10177_v41, %v10173_v33  ;;  %8107 = vmatpush1.bf16.msra.mxu0 %v9158_v32  ;;  %8230 = vmatpush1.bf16.msra.mxu1 %v9160_v34  ;;  %v558_v32 = vld [vmem:[#allocation2 + $0xfa0] sm:$0xff]  ;;  %v547_v33 = vld [vmem:[#allocation2 + $0xf48] sm:$0xff]  ;;  %v9424_v24 = vcombine.low %v643_v13, %v655_v48 }
 0x35f   :  { %8816 = vst [vmem:[%s10525_s3 + $0x20] sm:$0xff] %v9998_v43  ;;  %8108 = vmatprep.subr.bf16.mxu0 %v9183_v35  ;;  %8231 = vmatprep.subr.bf16.mxu1 %v9185_v38  ;;  %v559_v34 = vld [vmem:[#allocation2 + $0xfa8] sm:$0xff]  ;;  %v9302_v35 = vcombine.low %v522_v21, %v534_v22  ;;  %v9327_v38 = vcombine.high %v546_v31, %v558_v32  ;;  %v582_v41 = vld [vmem:[#allocation2 + $0x1060] sm:$0xff] }
 0x360   :  { %8817 = vst [vmem:[%s10525_s3 + $0x28] sm:$0xff] %v9999_v46  ;;  %v9329_v39 = vcombine.high %v547_v33, %v559_v34  ;;  %v571_v43 = vld [vmem:[#allocation2 + $0x1008] sm:$0xff]  ;;  %v9326_v45 = vcombine.low %v546_v31, %v558_v32  ;;  %v9328_v46 = vcombine.low %v547_v33, %v559_v34  ;;  %v9350_v56 = vcombine.low %v570_v40, %v582_v41 }
 0x361   :  { %v9352_v57 = vcombine.low %v571_v43, %v583_v44  ;;  %v667_v21 = vld [vmem:[#allocation2 + $0x1308] sm:$0xff] }
 0x362   :  { %8109 = vmatpush1.bf16.msra.mxu0 %v9182_v47  ;;  %8232 = vmatpush1.bf16.msra.mxu1 %v9184_v49  ;;  %v9351_v47 = vcombine.high %v570_v40, %v582_v41  ;;  %v9353_v49 = vcombine.high %v571_v43, %v583_v44  ;;  %v679_v22 = vld [vmem:[#allocation2 + $0x1368] sm:$0xff] }
 0x363   :  { %8110 = vmatprep.subr.bf16.mxu0 %v9207_v50  ;;  %8233 = vmatprep.subr.bf16.mxu1 %v9209_v51  ;;  %v594_v50 = vld [vmem:[#allocation2 + $0x10c0] sm:$0xff]  ;;  %v691_v31 = vld [vmem:[#allocation2 + $0x13c8] sm:$0xff]  ;;  %v9448_v34 = vcombine.low %v667_v21, %v679_v22 }
 0x364   :  { %v606_v51 = vld [vmem:[#allocation2 + $0x1120] sm:$0xff]  ;;  %v703_v32 = vld [vmem:[#allocation2 + $0x1428] sm:$0xff] }
 0x365   :  { %v9374_v7 = vcombine.low %v594_v50, %v606_v51  ;;  %v715_v40 = vld [vmem:[#allocation2 + $0x1488] sm:$0xff]  ;;  %v9472_v44 = vcombine.low %v691_v31, %v703_v32 }
 0x366   :  { %8111 = vmatpush1.bf16.msra.mxu0 %v9206_v58  ;;  %8234 = vmatpush1.bf16.msra.mxu1 %v9208_v1  ;;  %v9375_v58 = vcombine.high %v594_v50, %v606_v51  ;;  %v9377_v1 = vcombine.high %v595_v52, %v607_v53  ;;  %v727_v41 = vld [vmem:[#allocation2 + $0x14e8] sm:$0xff] }
 0x367   :  { %8121 = vmatprep.subr.bf16.mxu0 %v9231_v3  ;;  %8244 = vmatprep.subr.bf16.mxu1 %v9233_v4  ;;  %v618_v3 = vld [vmem:[#allocation2 + $0x1180] sm:$0xff]  ;;  %v739_v50 = vld [vmem:[#allocation2 + $0x1548] sm:$0xff]  ;;  %v9496_v53 = vcombine.low %v715_v40, %v727_v41 }
 0x368   :  { %v630_v4 = vld [vmem:[#allocation2 + $0x11e0] sm:$0xff]  ;;  %v751_v51 = vld [vmem:[#allocation2 + $0x15a8] sm:$0xff] }
 0x369   :  { %8113 = vmatmul.mubr.bf16.vlgmr.msra.gmra.mrb[16].mxu0 %v10337_v16  ;;  %8236 = vmatmul.mubr.bf16.vlgmr.msra.gmra.mrb[16].mxu1 %v10337_v16  ;;  %v9398_v14 = vcombine.low %v618_v3, %v630_v4 }
 0x36a   :  { %8122 = vmatpush1.bf16.msra.mxu0 %v9230_v9  ;;  %8245 = vmatpush1.bf16.msra.mxu1 %v9232_v10  ;;  %v9399_v9 = vcombine.high %v618_v3, %v630_v4  ;;  %v9401_v10 = vcombine.high %v619_v5, %v631_v6  ;;  %v763_v3 = vld [vmem:[#allocation2 + $0x1608] sm:$0xff]  ;;  %v9520_v6 = vcombine.low %v739_v50, %v751_v51 }
 0x36b   :  { %8123 = vmatprep.subr.bf16.mxu0 %v9255_v11  ;;  %8246 = vmatprep.subr.bf16.mxu1 %v9257_v12  ;;  %v642_v11 = vld [vmem:[#allocation2 + $0x1240] sm:$0xff]  ;;  %v775_v4 = vld [vmem:[#allocation2 + $0x1668] sm:$0xff] }
 0x36c   :  { %8153 = vmatprep.mubr.bf16.mxu0 %v10339_v25  ;;  %8276 = vmatprep.mubr.bf16.mxu1 %v10339_v25  ;;  %v654_v12 = vld [vmem:[#allocation2 + $0x12a0] sm:$0xff] }
 0x36d   :  { %v9422_v23 = vcombine.low %v642_v11, %v654_v12 }
 0x36e   :  { %8124 = vmatpush1.bf16.msra.mxu0 %v9254_v17  ;;  %8247 = vmatpush1.bf16.msra.mxu1 %v9256_v18  ;;  %v9423_v17 = vcombine.high %v642_v11, %v654_v12  ;;  %v9425_v18 = vcombine.high %v643_v13, %v655_v48  ;;  %v787_v11 = vld [vmem:[#allocation2 + $0x16c8] sm:$0xff]  ;;  %v9544_v48 = vcombine.low %v763_v3, %v775_v4 }
 0x36f   :  { %8125 = vmatprep.subr.bf16.mxu0 %v9279_v19  ;;  %8248 = vmatprep.subr.bf16.mxu1 %v9281_v20  ;;  %v666_v19 = vld [vmem:[#allocation2 + $0x1300] sm:$0xff]  ;;  %v799_v12 = vld [vmem:[#allocation2 + $0x1728] sm:$0xff] }
 0x370   :  { %v678_v20 = vld [vmem:[#allocation2 + $0x1360] sm:$0xff] }
 0x371   :  { %v9446_v33 = vcombine.low %v666_v19, %v678_v20 }
 0x372   :  { %8126 = vmatpush1.bf16.msra.mxu0 %v9278_v26  ;;  %8249 = vmatpush1.bf16.msra.mxu1 %v9280_v27  ;;  %v9447_v26 = vcombine.high %v666_v19, %v678_v20  ;;  %v9449_v27 = vcombine.high %v667_v21, %v679_v22  ;;  %v811_v19 = vld [vmem:[#allocation2 + $0x1788] sm:$0xff]  ;;  %v9568_v22 = vcombine.low %v787_v11, %v799_v12 }
 0x373   :  { %8127 = vmatprep.subr.bf16.mxu0 %v9303_v29  ;;  %8250 = vmatprep.subr.bf16.mxu1 %v9305_v30  ;;  %v690_v29 = vld [vmem:[#allocation2 + $0x13c0] sm:$0xff]  ;;  %v823_v20 = vld [vmem:[#allocation2 + $0x17e8] sm:$0xff] }
 0x374   :  { %v702_v30 = vld [vmem:[#allocation2 + $0x1420] sm:$0xff] }
 0x375   :  { %v9470_v43 = vcombine.low %v690_v29, %v702_v30 }
 0x376   :  { %8128 = vmatpush1.bf16.msra.mxu0 %v9302_v35  ;;  %8251 = vmatpush1.bf16.msra.mxu1 %v9304_v36  ;;  %v9471_v35 = vcombine.high %v690_v29, %v702_v30  ;;  %v9473_v36 = vcombine.high %v691_v31, %v703_v32  ;;  %v835_v29 = vld [vmem:[#allocation2 + $0x1848] sm:$0xff]  ;;  %v9592_v32 = vcombine.low %v811_v19, %v823_v20 }
 0x377   :  { %8129 = vmatprep.subr.bf16.mxu0 %v9327_v38  ;;  %8252 = vmatprep.subr.bf16.mxu1 %v9329_v39  ;;  %v714_v38 = vld [vmem:[#allocation2 + $0x1480] sm:$0xff]  ;;  %v847_v30 = vld [vmem:[#allocation2 + $0x18a8] sm:$0xff] }
 0x378   :  { %v726_v39 = vld [vmem:[#allocation2 + $0x14e0] sm:$0xff] }
 0x379   :  { %v9494_v52 = vcombine.low %v714_v38, %v726_v39 }
 0x37a   :  { %8130 = vmatpush1.bf16.msra.mxu0 %v9326_v45  ;;  %8253 = vmatpush1.bf16.msra.mxu1 %v9328_v46  ;;  %v9495_v45 = vcombine.high %v714_v38, %v726_v39  ;;  %v9497_v46 = vcombine.high %v715_v40, %v727_v41  ;;  %v859_v38 = vld [vmem:[#allocation2 + $0x1908] sm:$0xff]  ;;  %v9616_v41 = vcombine.low %v835_v29, %v847_v30 }
 0x37b   :  { %8131 = vmatprep.subr.bf16.mxu0 %v9351_v47  ;;  %8254 = vmatprep.subr.bf16.mxu1 %v9353_v49  ;;  %v738_v47 = vld [vmem:[#allocation2 + $0x1540] sm:$0xff]  ;;  %v871_v39 = vld [vmem:[#allocation2 + $0x1968] sm:$0xff] }
 0x37c   :  { %v750_v49 = vld [vmem:[#allocation2 + $0x15a0] sm:$0xff] }
 0x37d   :  { %v9518_v5 = vcombine.low %v738_v47, %v750_v49 }
 0x37e   :  { %8132 = vmatpush1.bf16.msra.mxu0 %v9350_v56  ;;  %8255 = vmatpush1.bf16.msra.mxu1 %v9352_v57  ;;  %v9519_v56 = vcombine.high %v738_v47, %v750_v49  ;;  %v9521_v57 = vcombine.high %v739_v50, %v751_v51  ;;  %v883_v47 = vld [vmem:[#allocation2 + $0x19c8] sm:$0xff]  ;;  %v9640_v51 = vcombine.low %v859_v38, %v871_v39 }
 0x37f   :  { %8133 = vmatprep.subr.bf16.mxu0 %v9375_v58  ;;  %8256 = vmatprep.subr.bf16.mxu1 %v9377_v1  ;;  %v762_v58 = vld [vmem:[#allocation2 + $0x1600] sm:$0xff]  ;;  %v895_v49 = vld [vmem:[#allocation2 + $0x1a28] sm:$0xff] }
 0x380   :  { %v774_v1 = vld [vmem:[#allocation2 + $0x1660] sm:$0xff] }
 0x381   :  { %v9542_v13 = vcombine.low %v762_v58, %v774_v1 }
 0x382   :  { %8134 = vmatpush1.bf16.msra.mxu0 %v9374_v7  ;;  %8257 = vmatpush1.bf16.msra.mxu1 %v9376_v8  ;;  %v9543_v7 = vcombine.high %v762_v58, %v774_v1  ;;  %v9545_v8 = vcombine.high %v763_v3, %v775_v4  ;;  %v907_v58 = vld [vmem:[#allocation2 + $0x1a88] sm:$0xff]  ;;  %v9664_v4 = vcombine.low %v883_v47, %v895_v49 }
 0x383   :  { %8135 = vmatprep.subr.bf16.mxu0 %v9399_v9  ;;  %8258 = vmatprep.subr.bf16.mxu1 %v9401_v10  ;;  %v786_v9 = vld [vmem:[#allocation2 + $0x16c0] sm:$0xff]  ;;  %v919_v1 = vld [vmem:[#allocation2 + $0x1ae8] sm:$0xff] }
 0x384   :  { %v798_v10 = vld [vmem:[#allocation2 + $0x1720] sm:$0xff] }
 0x385   :  { %v9566_v21 = vcombine.low %v786_v9, %v798_v10 }
 0x386   :  { %8136 = vmatpush1.bf16.msra.mxu0 %v9398_v14  ;;  %8259 = vmatpush1.bf16.msra.mxu1 %v9400_v15  ;;  %v9567_v14 = vcombine.high %v786_v9, %v798_v10  ;;  %v9569_v15 = vcombine.high %v787_v11, %v799_v12  ;;  %v931_v9 = vld [vmem:[#allocation2 + $0x1b48] sm:$0xff]  ;;  %v9688_v12 = vcombine.low %v907_v58, %v919_v1 }
 0x387   :  { %8137 = vmatprep.subr.bf16.mxu0 %v9423_v17  ;;  %8260 = vmatprep.subr.bf16.mxu1 %v9425_v18  ;;  %v810_v17 = vld [vmem:[#allocation2 + $0x1780] sm:$0xff]  ;;  %v943_v10 = vld [vmem:[#allocation2 + $0x1ba8] sm:$0xff] }
 0x388   :  { %v822_v18 = vld [vmem:[#allocation2 + $0x17e0] sm:$0xff] }
 0x389   :  { %v9590_v31 = vcombine.low %v810_v17, %v822_v18 }
 0x38a   :  { %8138 = vmatpush1.bf16.msra.mxu0 %v9422_v23  ;;  %8261 = vmatpush1.bf16.msra.mxu1 %v9424_v24  ;;  %v9591_v23 = vcombine.high %v810_v17, %v822_v18  ;;  %v9593_v24 = vcombine.high %v811_v19, %v823_v20  ;;  %v955_v17 = vld [vmem:[#allocation2 + $0x1c08] sm:$0xff]  ;;  %v9712_v20 = vcombine.low %v931_v9, %v943_v10 }
 0x38b   :  { %8139 = vmatprep.subr.bf16.mxu0 %v9447_v26  ;;  %8262 = vmatprep.subr.bf16.mxu1 %v9449_v27  ;;  %v834_v26 = vld [vmem:[#allocation2 + $0x1840] sm:$0xff]  ;;  %v967_v18 = vld [vmem:[#allocation2 + $0x1c68] sm:$0xff] }
 0x38c   :  { %v846_v27 = vld [vmem:[#allocation2 + $0x18a0] sm:$0xff] }
 0x38d   :  { %v9614_v40 = vcombine.low %v834_v26, %v846_v27 }
 0x38e   :  { %8140 = vmatpush1.bf16.msra.mxu0 %v9446_v33  ;;  %8263 = vmatpush1.bf16.msra.mxu1 %v9448_v34  ;;  %v9615_v33 = vcombine.high %v834_v26, %v846_v27  ;;  %v9617_v34 = vcombine.high %v835_v29, %v847_v30  ;;  %v979_v26 = vld [vmem:[#allocation2 + $0x1cc8] sm:$0xff]  ;;  %v9736_v30 = vcombine.low %v955_v17, %v967_v18 }
 0x38f   :  { %8141 = vmatprep.subr.bf16.mxu0 %v9471_v35  ;;  %8264 = vmatprep.subr.bf16.mxu1 %v9473_v36  ;;  %v858_v35 = vld [vmem:[#allocation2 + $0x1900] sm:$0xff]  ;;  %v991_v27 = vld [vmem:[#allocation2 + $0x1d28] sm:$0xff] }
 0x390   :  { %v870_v36 = vld [vmem:[#allocation2 + $0x1960] sm:$0xff] }
 0x391   :  { %v9638_v50 = vcombine.low %v858_v35, %v870_v36 }
 0x392   :  { %8142 = vmatpush1.bf16.msra.mxu0 %v9470_v43  ;;  %8265 = vmatpush1.bf16.msra.mxu1 %v9472_v44  ;;  %v9639_v43 = vcombine.high %v858_v35, %v870_v36  ;;  %v9641_v44 = vcombine.high %v859_v38, %v871_v39  ;;  %v1003_v35 = vld [vmem:[#allocation2 + $0x1d88] sm:$0xff]  ;;  %v9760_v39 = vcombine.low %v979_v26, %v991_v27 }
 0x393   :  { %8143 = vmatprep.subr.bf16.mxu0 %v9495_v45  ;;  %8266 = vmatprep.subr.bf16.mxu1 %v9497_v46  ;;  %v882_v45 = vld [vmem:[#allocation2 + $0x19c0] sm:$0xff]  ;;  %v1015_v36 = vld [vmem:[#allocation2 + $0x1de8] sm:$0xff] }
 0x394   :  { %v894_v46 = vld [vmem:[#allocation2 + $0x1a20] sm:$0xff] }
 0x395   :  { %v9662_v3 = vcombine.low %v882_v45, %v894_v46 }
 0x396   :  { %8144 = vmatpush1.bf16.msra.mxu0 %v9494_v52  ;;  %8267 = vmatpush1.bf16.msra.mxu1 %v9496_v53  ;;  %v9663_v52 = vcombine.high %v882_v45, %v894_v46  ;;  %v9665_v53 = vcombine.high %v883_v47, %v895_v49  ;;  %v1027_v45 = vld [vmem:[#allocation2 + $0x1e48] sm:$0xff]  ;;  %v9784_v49 = vcombine.low %v1003_v35, %v1015_v36 }
 0x397   :  { %8145 = vmatprep.subr.bf16.mxu0 %v9519_v56  ;;  %8268 = vmatprep.subr.bf16.mxu1 %v9521_v57  ;;  %v906_v56 = vld [vmem:[#allocation2 + $0x1a80] sm:$0xff]  ;;  %v1039_v46 = vld [vmem:[#allocation2 + $0x1ea8] sm:$0xff] }
 0x398   :  { %v918_v57 = vld [vmem:[#allocation2 + $0x1ae0] sm:$0xff] }
 0x399   :  { %v9686_v11 = vcombine.low %v906_v56, %v918_v57 }
 0x39a   :  { %8146 = vmatpush1.bf16.msra.mxu0 %v9518_v5  ;;  %8269 = vmatpush1.bf16.msra.mxu1 %v9520_v6  ;;  %v9687_v5 = vcombine.high %v906_v56, %v918_v57  ;;  %v9689_v6 = vcombine.high %v907_v58, %v919_v1  ;;  %v1051_v56 = vld [vmem:[#allocation2 + $0x1f08] sm:$0xff]  ;;  %v9808_v1 = vcombine.low %v1027_v45, %v1039_v46 }
 0x39b   :  { %8147 = vmatprep.subr.bf16.mxu0 %v9543_v7  ;;  %8270 = vmatprep.subr.bf16.mxu1 %v9545_v8  ;;  %v930_v7 = vld [vmem:[#allocation2 + $0x1b40] sm:$0xff]  ;;  %v1063_v57 = vld [vmem:[#allocation2 + $0x1f68] sm:$0xff] }
 0x39c   :  { %v942_v8 = vld [vmem:[#allocation2 + $0x1ba0] sm:$0xff] }
 0x39d   :  { %v9710_v19 = vcombine.low %v930_v7, %v942_v8 }
 0x39e   :  { %8148 = vmatpush1.bf16.msra.mxu0 %v9542_v13  ;;  %8271 = vmatpush1.bf16.msra.mxu1 %v9544_v48  ;;  %v9711_v13 = vcombine.high %v930_v7, %v942_v8  ;;  %v9713_v48 = vcombine.high %v931_v9, %v943_v10  ;;  %v1075_v7 = vld [vmem:[#allocation2 + $0x1fc8] sm:$0xff]  ;;  %v9832_v10 = vcombine.low %v1051_v56, %v1063_v57 }
 0x39f   :  { %8149 = vmatprep.subr.bf16.mxu0 %v9567_v14  ;;  %8272 = vmatprep.subr.bf16.mxu1 %v9569_v15  ;;  %v954_v14 = vld [vmem:[#allocation2 + $0x1c00] sm:$0xff]  ;;  %v1087_v8 = vld [vmem:[#allocation2 + $0x2028] sm:$0xff] }
 0x3a0   :  { %v966_v15 = vld [vmem:[#allocation2 + $0x1c60] sm:$0xff] }
 0x3a1   :  { %v9734_v29 = vcombine.low %v954_v14, %v966_v15 }
 0x3a2   :  { %8150 = vmatpush1.bf16.msra.mxu0 %v9566_v21  ;;  %8273 = vmatpush1.bf16.msra.mxu1 %v9568_v22  ;;  %v9735_v21 = vcombine.high %v954_v14, %v966_v15  ;;  %v9737_v22 = vcombine.high %v955_v17, %v967_v18  ;;  %v1099_v14 = vld [vmem:[#allocation2 + $0x2088] sm:$0xff]  ;;  %v9856_v18 = vcombine.low %v1075_v7, %v1087_v8 }
 0x3a3   :  { %8151 = vmatprep.subr.bf16.mxu0 %v9591_v23  ;;  %8274 = vmatprep.subr.bf16.mxu1 %v9593_v24  ;;  %v978_v23 = vld [vmem:[#allocation2 + $0x1cc0] sm:$0xff]  ;;  %v1111_v15 = vld [vmem:[#allocation2 + $0x20e8] sm:$0xff] }
 0x3a4   :  { %v990_v24 = vld [vmem:[#allocation2 + $0x1d20] sm:$0xff] }
 0x3a5   :  { %v9758_v38 = vcombine.low %v978_v23, %v990_v24 }
 0x3a6   :  { %8152 = vmatpush1.bf16.msra.mxu0 %v9590_v31  ;;  %8275 = vmatpush1.bf16.msra.mxu1 %v9592_v32  ;;  %v9759_v31 = vcombine.high %v978_v23, %v990_v24  ;;  %v9761_v32 = vcombine.high %v979_v26, %v991_v27  ;;  %v1123_v23 = vld [vmem:[#allocation2 + $0x2148] sm:$0xff]  ;;  %v9880_v27 = vcombine.low %v1099_v14, %v1111_v15 }
 0x3a7   :  { %8162 = vmatprep.subr.bf16.mxu0 %v9615_v33  ;;  %8285 = vmatprep.subr.bf16.mxu1 %v9617_v34  ;;  %v1002_v33 = vld [vmem:[#allocation2 + $0x1d80] sm:$0xff]  ;;  %v1135_v24 = vld [vmem:[#allocation2 + $0x21a8] sm:$0xff] }
 0x3a8   :  { %v1014_v34 = vld [vmem:[#allocation2 + $0x1de0] sm:$0xff] }
 0x3a9   :  { %8154 = vmatmul.mubr.bf16.vlgmr.msra.gmra.mrb[16].mxu0 %v10351_v28  ;;  %8277 = vmatmul.mubr.bf16.vlgmr.msra.gmra.mrb[16].mxu1 %v10351_v28  ;;  %v9782_v47 = vcombine.low %v1002_v33, %v1014_v34 }
 0x3aa   :  { %8163 = vmatpush1.bf16.msra.mxu0 %v9614_v40  ;;  %8286 = vmatpush1.bf16.msra.mxu1 %v9616_v41  ;;  %v9783_v40 = vcombine.high %v1002_v33, %v1014_v34  ;;  %v9785_v41 = vcombine.high %v1003_v35, %v1015_v36  ;;  %v1147_v33 = vld [vmem:[#allocation2 + $0x2208] sm:$0xff]  ;;  %v9904_v36 = vcombine.low %v1123_v23, %v1135_v24 }
 0x3ab   :  { %8164 = vmatprep.subr.bf16.mxu0 %v9639_v43  ;;  %8287 = vmatprep.subr.bf16.mxu1 %v9641_v44  ;;  %v1026_v43 = vld [vmem:[#allocation2 + $0x1e40] sm:$0xff]  ;;  %v1159_v34 = vld [vmem:[#allocation2 + $0x2268] sm:$0xff] }
 0x3ac   :  { %8194 = vmatprep.mubr.bf16.mxu0 %v10353_v37  ;;  %8317 = vmatprep.mubr.bf16.mxu1 %v10353_v37  ;;  %v1038_v44 = vld [vmem:[#allocation2 + $0x1ea0] sm:$0xff] }
 0x3ad   :  { %v9806_v58 = vcombine.low %v1026_v43, %v1038_v44 }
 0x3ae   :  { %8165 = vmatpush1.bf16.msra.mxu0 %v9638_v50  ;;  %8288 = vmatpush1.bf16.msra.mxu1 %v9640_v51  ;;  %v9807_v50 = vcombine.high %v1026_v43, %v1038_v44  ;;  %v9809_v51 = vcombine.high %v1027_v45, %v1039_v46  ;;  %v1171_v43 = vld [vmem:[#allocation2 + $0x22c8] sm:$0xff]  ;;  %v9928_v46 = vcombine.low %v1147_v33, %v1159_v34 }
 0x3af   :  { %8166 = vmatprep.subr.bf16.mxu0 %v9663_v52  ;;  %8289 = vmatprep.subr.bf16.mxu1 %v9665_v53  ;;  %v1050_v52 = vld [vmem:[#allocation2 + $0x1f00] sm:$0xff]  ;;  %v1183_v44 = vld [vmem:[#allocation2 + $0x2328] sm:$0xff] }
 0x3b0   :  { %v1062_v53 = vld [vmem:[#allocation2 + $0x1f60] sm:$0xff] }
 0x3b1   :  { %v9830_v9 = vcombine.low %v1050_v52, %v1062_v53 }
 0x3b2   :  { %8167 = vmatpush1.bf16.msra.mxu0 %v9662_v3  ;;  %8290 = vmatpush1.bf16.msra.mxu1 %v9664_v4  ;;  %v9831_v3 = vcombine.high %v1050_v52, %v1062_v53  ;;  %v9833_v4 = vcombine.high %v1051_v56, %v1063_v57  ;;  %v1195_v52 = vld [vmem:[#allocation2 + $0x2388] sm:$0xff]  ;;  %v9952_v57 = vcombine.low %v1171_v43, %v1183_v44 }
 0x3b3   :  { %8168 = vmatprep.subr.bf16.mxu0 %v9687_v5  ;;  %8291 = vmatprep.subr.bf16.mxu1 %v9689_v6  ;;  %v1074_v5 = vld [vmem:[#allocation2 + $0x1fc0] sm:$0xff]  ;;  %v1207_v53 = vld [vmem:[#allocation2 + $0x23e8] sm:$0xff] }
 0x3b4   :  { %v1086_v6 = vld [vmem:[#allocation2 + $0x2020] sm:$0xff] }
 0x3b5   :  { %v9854_v17 = vcombine.low %v1074_v5, %v1086_v6 }
 0x3b6   :  { %8169 = vmatpush1.bf16.msra.mxu0 %v9686_v11  ;;  %8292 = vmatpush1.bf16.msra.mxu1 %v9688_v12  ;;  %v9855_v11 = vcombine.high %v1074_v5, %v1086_v6  ;;  %v9857_v12 = vcombine.high %v1075_v7, %v1087_v8  ;;  %v69_v5 = vld [vmem:[#allocation2 + $0x58] sm:$0xff]  ;;  %v9976_v8 = vcombine.low %v1195_v52, %v1207_v53 }
 0x3b7   :  { %8170 = vmatprep.subr.bf16.mxu0 %v9711_v13  ;;  %8293 = vmatprep.subr.bf16.mxu1 %v9713_v48  ;;  %v1098_v13 = vld [vmem:[#allocation2 + $0x2080] sm:$0xff]  ;;  %v81_v6 = vld [vmem:[#allocation2 + $0xb8] sm:$0xff] }
 0x3b8   :  { %v1110_v48 = vld [vmem:[#allocation2 + $0x20e0] sm:$0xff] }
 0x3b9   :  { %v9878_v26 = vcombine.low %v1098_v13, %v1110_v48 }
 0x3ba   :  { %8171 = vmatpush1.bf16.msra.mxu0 %v9710_v19  ;;  %8294 = vmatpush1.bf16.msra.mxu1 %v9712_v20  ;;  %v9879_v19 = vcombine.high %v1098_v13, %v1110_v48  ;;  %v9881_v20 = vcombine.high %v1099_v14, %v1111_v15  ;;  %v93_v13 = vld [vmem:[#allocation2 + $0x118] sm:$0xff]  ;;  %v8852_v15 = vcombine.low %v69_v5, %v81_v6 }
 0x3bb   :  { %8172 = vmatprep.subr.bf16.mxu0 %v9735_v21  ;;  %8295 = vmatprep.subr.bf16.mxu1 %v9737_v22  ;;  %v1122_v21 = vld [vmem:[#allocation2 + $0x2140] sm:$0xff]  ;;  %v105_v48 = vld [vmem:[#allocation2 + $0x178] sm:$0xff] }
 0x3bc   :  { %v1134_v22 = vld [vmem:[#allocation2 + $0x21a0] sm:$0xff] }
 0x3bd   :  { %v9902_v35 = vcombine.low %v1122_v21, %v1134_v22 }
 0x3be   :  { %8173 = vmatpush1.bf16.msra.mxu0 %v9734_v29  ;;  %8296 = vmatpush1.bf16.msra.mxu1 %v9736_v30  ;;  %v9903_v29 = vcombine.high %v1122_v21, %v1134_v22  ;;  %v9905_v30 = vcombine.high %v1123_v23, %v1135_v24  ;;  %v117_v21 = vld [vmem:[#allocation2 + $0x1d8] sm:$0xff]  ;;  %v8876_v24 = vcombine.low %v93_v13, %v105_v48 }
 0x3bf   :  { %8174 = vmatprep.subr.bf16.mxu0 %v9759_v31  ;;  %8297 = vmatprep.subr.bf16.mxu1 %v9761_v32  ;;  %v1146_v31 = vld [vmem:[#allocation2 + $0x2200] sm:$0xff]  ;;  %v129_v22 = vld [vmem:[#allocation2 + $0x238] sm:$0xff] }
 0x3c0   :  { %v1158_v32 = vld [vmem:[#allocation2 + $0x2260] sm:$0xff] }
 0x3c1   :  { %v9926_v45 = vcombine.low %v1146_v31, %v1158_v32 }
 0x3c2   :  { %8175 = vmatpush1.bf16.msra.mxu0 %v9758_v38  ;;  %8298 = vmatpush1.bf16.msra.mxu1 %v9760_v39  ;;  %v9927_v38 = vcombine.high %v1146_v31, %v1158_v32  ;;  %v9929_v39 = vcombine.high %v1147_v33, %v1159_v34  ;;  %v141_v31 = vld [vmem:[#allocation2 + $0x298] sm:$0xff]  ;;  %v8900_v34 = vcombine.low %v117_v21, %v129_v22 }
 0x3c3   :  { %8176 = vmatprep.subr.bf16.mxu0 %v9783_v40  ;;  %8299 = vmatprep.subr.bf16.mxu1 %v9785_v41  ;;  %v1170_v40 = vld [vmem:[#allocation2 + $0x22c0] sm:$0xff]  ;;  %v153_v32 = vld [vmem:[#allocation2 + $0x2f8] sm:$0xff] }
 0x3c4   :  { %v1182_v41 = vld [vmem:[#allocation2 + $0x2320] sm:$0xff] }
 0x3c5   :  { %v9950_v56 = vcombine.low %v1170_v40, %v1182_v41 }
 0x3c6   :  { %8177 = vmatpush1.bf16.msra.mxu0 %v9782_v47  ;;  %8300 = vmatpush1.bf16.msra.mxu1 %v9784_v49  ;;  %v9951_v47 = vcombine.high %v1170_v40, %v1182_v41  ;;  %v9953_v49 = vcombine.high %v1171_v43, %v1183_v44  ;;  %v165_v40 = vld [vmem:[#allocation2 + $0x358] sm:$0xff]  ;;  %v8924_v44 = vcombine.low %v141_v31, %v153_v32 }
 0x3c7   :  { %8178 = vmatprep.subr.bf16.mxu0 %v9807_v50  ;;  %8301 = vmatprep.subr.bf16.mxu1 %v9809_v51  ;;  %v1194_v50 = vld [vmem:[#allocation2 + $0x2380] sm:$0xff]  ;;  %v177_v41 = vld [vmem:[#allocation2 + $0x3b8] sm:$0xff] }
 0x3c8   :  { %v1206_v51 = vld [vmem:[#allocation2 + $0x23e0] sm:$0xff] }
 0x3c9   :  { %v9974_v7 = vcombine.low %v1194_v50, %v1206_v51 }
 0x3ca   :  { %8179 = vmatpush1.bf16.msra.mxu0 %v9806_v58  ;;  %8302 = vmatpush1.bf16.msra.mxu1 %v9808_v1  ;;  %v9975_v58 = vcombine.high %v1194_v50, %v1206_v51  ;;  %v9977_v1 = vcombine.high %v1195_v52, %v1207_v53  ;;  %v201_v50 = vld [vmem:[#allocation2 + $0x478] sm:$0xff]  ;;  %v8948_v52 = vcombine.low %v165_v40, %v177_v41 }
 0x3cb   :  { %8180 = vmatprep.subr.bf16.mxu0 %v9831_v3  ;;  %8303 = vmatprep.subr.bf16.mxu1 %v9833_v4  ;;  %v68_v3 = vld [vmem:[#allocation2 + $0x50] sm:$0xff] }
 0x3cc   :  { %v80_v4 = vld [vmem:[#allocation2 + $0xb0] sm:$0xff] }
 0x3cd   :  { %v8850_v14 = vcombine.low %v68_v3, %v80_v4 }
 0x3ce   :  { %8181 = vmatpush1.bf16.msra.mxu0 %v9830_v9  ;;  %8304 = vmatpush1.bf16.msra.mxu1 %v9832_v10  ;;  %v8851_v9 = vcombine.high %v68_v3, %v80_v4  ;;  %v8853_v10 = vcombine.high %v69_v5, %v81_v6  ;;  %v213_v4 = vld [vmem:[#allocation2 + $0x4d8] sm:$0xff] }
 0x3cf   :  { %8182 = vmatprep.subr.bf16.mxu0 %v9855_v11  ;;  %8305 = vmatprep.subr.bf16.mxu1 %v9857_v12  ;;  %v92_v11 = vld [vmem:[#allocation2 + $0x110] sm:$0xff]  ;;  %v225_v5 = vld [vmem:[#allocation2 + $0x538] sm:$0xff] }
 0x3d0   :  { %v104_v12 = vld [vmem:[#allocation2 + $0x170] sm:$0xff] }
 0x3d1   :  { %v8874_v23 = vcombine.low %v92_v11, %v104_v12 }
 0x3d2   :  { %8183 = vmatpush1.bf16.msra.mxu0 %v9854_v17  ;;  %8306 = vmatpush1.bf16.msra.mxu1 %v9856_v18  ;;  %v8875_v17 = vcombine.high %v92_v11, %v104_v12  ;;  %v8877_v18 = vcombine.high %v93_v13, %v105_v48  ;;  %v8997_v13 = vcombine.high %v213_v4, %v225_v5  ;;  %v236_v48 = vld [vmem:[#allocation2 + $0x590] sm:$0xff] }
 0x3d3   :  { %8184 = vmatprep.subr.bf16.mxu0 %v9879_v19  ;;  %8307 = vmatprep.subr.bf16.mxu1 %v9881_v20  ;;  %v116_v19 = vld [vmem:[#allocation2 + $0x1d0] sm:$0xff] }
 0x3d4   :  { %v128_v20 = vld [vmem:[#allocation2 + $0x230] sm:$0xff] }
 0x3d5   :  { %v8898_v33 = vcombine.low %v116_v19, %v128_v20 }
 0x3d6   :  { %8185 = vmatpush1.bf16.msra.mxu0 %v9878_v26  ;;  %8308 = vmatpush1.bf16.msra.mxu1 %v9880_v27  ;;  %v8899_v26 = vcombine.high %v116_v19, %v128_v20  ;;  %v8901_v27 = vcombine.high %v117_v21, %v129_v22  ;;  %v237_v19 = vld [vmem:[#allocation2 + $0x598] sm:$0xff] }
 0x3d7   :  { %8186 = vmatprep.subr.bf16.mxu0 %v9903_v29  ;;  %8309 = vmatprep.subr.bf16.mxu1 %v9905_v30  ;;  %v140_v29 = vld [vmem:[#allocation2 + $0x290] sm:$0xff]  ;;  %v249_v20 = vld [vmem:[#allocation2 + $0x5f8] sm:$0xff] }
 0x3d8   :  { %v152_v30 = vld [vmem:[#allocation2 + $0x2f0] sm:$0xff] }
 0x3d9   :  { %v8922_v43 = vcombine.low %v140_v29, %v152_v30 }
 0x3da   :  { %8187 = vmatpush1.bf16.msra.mxu0 %v9902_v35  ;;  %8310 = vmatpush1.bf16.msra.mxu1 %v9904_v36  ;;  %v8923_v35 = vcombine.high %v140_v29, %v152_v30  ;;  %v8925_v36 = vcombine.high %v141_v31, %v153_v32  ;;  %v8996_v32 = vcombine.low %v213_v4, %v225_v5 }
 0x3db   :  { %8188 = vmatprep.subr.bf16.mxu0 %v9927_v38  ;;  %8311 = vmatprep.subr.bf16.mxu1 %v9929_v39  ;;  %v164_v38 = vld [vmem:[#allocation2 + $0x350] sm:$0xff] }
 0x3dc   :  { %v176_v39 = vld [vmem:[#allocation2 + $0x3b0] sm:$0xff] }
 0x3dd   :  { %v8946_v51 = vcombine.low %v164_v38, %v176_v39 }
 0x3de   :  { %8189 = vmatpush1.bf16.msra.mxu0 %v9926_v45  ;;  %8312 = vmatpush1.bf16.msra.mxu1 %v9928_v46  ;;  %v8947_v45 = vcombine.high %v164_v38, %v176_v39  ;;  %v188_v46 = vld [vmem:[#allocation2 + $0x410] sm:$0xff]  ;;  %v9021_v38 = vcombine.high %v237_v19, %v249_v20 }
 0x3df   :  { %8190 = vmatprep.subr.bf16.mxu0 %v9951_v47  ;;  %8313 = vmatprep.subr.bf16.mxu1 %v9953_v49  ;;  %v200_v47 = vld [vmem:[#allocation2 + $0x470] sm:$0xff]  ;;  %v189_v49 = vld [vmem:[#allocation2 + $0x418] sm:$0xff] }
 0x3e0   :  { %v8971_v53 = vcombine.high %v188_v46, %v200_v47  ;;  %v260_v39 = vld [vmem:[#allocation2 + $0x650] sm:$0xff] }
 0x3e2   :  { %8191 = vmatpush1.bf16.msra.mxu0 %v9950_v56  ;;  %8314 = vmatpush1.bf16.msra.mxu1 %v9952_v57  ;;  %v8973_v56 = vcombine.high %v189_v49, %v201_v50  ;;  %v212_v57 = vld [vmem:[#allocation2 + $0x4d0] sm:$0xff] }
 0x3e3   :  { %8192 = vmatprep.subr.bf16.mxu0 %v9975_v58  ;;  %8315 = vmatprep.subr.bf16.mxu1 %v9977_v1  ;;  %v224_v58 = vld [vmem:[#allocation2 + $0x530] sm:$0xff]  ;;  %v10227_v1 = vld [vmem:[#allocation4 + $0x8] sm:$0xff] }
 0x3e4   :  { %v1267_v3 = vrot.slane %v10227_v1, %v10417_v54  ;;  %v1275_v6 = vrot.slane %v10227_v1, %v10420_v59  ;;  %v8995_v11 = vcombine.high %v212_v57, %v224_v58 }
 0x3e6   :  { %8193 = vmatpush1.bf16.msra.mxu0 %v9974_v7  ;;  %8316 = vmatpush1.bf16.msra.mxu1 %v9976_v8  ;;  %v1271_v7 = vrot.slane %v10227_v1, %v10423_v63  ;;  %v8970_v8 = vcombine.low %v188_v46, %v200_v47 }
 0x3e7   :  { %8326 = vmatprep.subr.bf16.mxu0 %v8851_v9  ;;  %8449 = vmatprep.subr.bf16.mxu1 %v8853_v10  ;;  %v1279_v9 = vrot.slane %v10227_v1, %v10426_v2  ;;  %v8972_v10 = vcombine.low %v189_v49, %v201_v50  ;;  %v9020_v50 = vcombine.low %v237_v19, %v249_v20 }
 0x3e9   :  { %8195 = vmatmul.mubr.bf16.vlgmr.msra.gmra.mrb[16].mxu0 %v10362_v42  ;;  %8318 = vmatmul.mubr.bf16.vlgmr.msra.gmra.mrb[16].mxu1 %v10362_v42 }
 0x3ea   :  { %8327 = vmatpush1.bf16.msra.mxu0 %v8850_v14  ;;  %8450 = vmatpush1.bf16.msra.mxu1 %v8852_v15  ;;  %v248_v14 = vld [vmem:[#allocation2 + $0x5f0] sm:$0xff] }
 0x3eb   :  { %8328 = vmatprep.subr.bf16.mxu0 %v8875_v17  ;;  %8451 = vmatprep.subr.bf16.mxu1 %v8877_v18  ;;  %v9018_v47 = vcombine.low %v236_v48, %v248_v14 }
 0x3ec   :  { %8358 = vmatprep.mubr.bf16.mxu0 %v10327_v61  ;;  %8481 = vmatprep.mubr.bf16.mxu1 %v10327_v61  ;;  %v8949_v61 = vcombine.high %v165_v40, %v177_v41  ;;  %v272_v40 = vld [vmem:[#allocation2 + $0x6b0] sm:$0xff] }
 0x3ed   :  { %v9042_v1 = vcombine.low %v260_v39, %v272_v40 }
 0x3ee   :  { %8329 = vmatpush1.bf16.msra.mxu0 %v8874_v23  ;;  %8452 = vmatpush1.bf16.msra.mxu1 %v8876_v24 }
 0x3ef   :  { %8330 = vmatprep.subr.bf16.mxu0 %v8899_v26  ;;  %8453 = vmatprep.subr.bf16.mxu1 %v8901_v27  ;;  %v8994_v26 = vcombine.low %v212_v57, %v224_v58  ;;  %v285_v57 = vld [vmem:[#allocation2 + $0x718] sm:$0xff] }
 0x3f0   :  { %v297_v58 = vld [vmem:[#allocation2 + $0x778] sm:$0xff] }
 0x3f1   :  { %v9069_v5 = vcombine.high %v285_v57, %v297_v58 }
 0x3f2   :  { %8331 = vmatpush1.bf16.msra.mxu0 %v8898_v33  ;;  %8454 = vmatpush1.bf16.msra.mxu1 %v8900_v34  ;;  %v9019_v33 = vcombine.high %v236_v48, %v248_v14  ;;  %v332_v48 = vld [vmem:[#allocation2 + $0x890] sm:$0xff] }
 0x3f3   :  { %8332 = vmatprep.subr.bf16.mxu0 %v8923_v35  ;;  %8455 = vmatprep.subr.bf16.mxu1 %v8925_v36  ;;  %v344_v14 = vld [vmem:[#allocation2 + $0x8f0] sm:$0xff] }
 0x3f6   :  { %8333 = vmatpush1.bf16.msra.mxu0 %v8922_v43  ;;  %8456 = vmatpush1.bf16.msra.mxu1 %v8924_v44  ;;  %v261_v44 = vld [vmem:[#allocation2 + $0x658] sm:$0xff] }
 0x3f7   :  { %8334 = vmatprep.subr.bf16.mxu0 %v8947_v45  ;;  %8457 = vmatprep.subr.bf16.mxu1 %v8949_v61  ;;  %v273_v45 = vld [vmem:[#allocation2 + $0x6b8] sm:$0xff] }
 0x3fa   :  { %8335 = vmatpush1.bf16.msra.mxu0 %v8946_v51  ;;  %8458 = vmatpush1.bf16.msra.mxu1 %v8948_v52  ;;  %v9043_v51 = vcombine.high %v260_v39, %v272_v40  ;;  %v9045_v52 = vcombine.high %v261_v44, %v273_v45 }
 0x3fb   :  { %8336 = vmatprep.subr.bf16.mxu0 %v8971_v53  ;;  %8459 = vmatprep.subr.bf16.mxu1 %v8973_v56  ;;  %v284_v53 = vld [vmem:[#allocation2 + $0x710] sm:$0xff] }
 0x3fc   :  { %v7950_v12 = vpop.f32.mrb[12].mxu0  ;;  %v8073_v17 = vpop.f32.mrb[12].mxu1  ;;  %v296_v56 = vld [vmem:[#allocation2 + $0x770] sm:$0xff] }
 0x3fd   :  { %v10018_v15 = vadd.f32 %v7950_v12, %v1267_v3  ;;  %v7952_v18 = vpop.f32.mrb[13].mxu0  ;;  %v10020_v21 = vadd.f32 %v8073_v17, %v1275_v6  ;;  %v8075_v23 = vpop.f32.mrb[13].mxu1  ;;  %v9044_v3 = vcombine.low %v261_v44, %v273_v45  ;;  %v9067_v4 = vcombine.high %v284_v53, %v296_v56  ;;  %v308_v6 = vld [vmem:[#allocation2 + $0x7d0] sm:$0xff]  ;;  %v333_v17 = vld [vmem:[#allocation2 + $0x898] sm:$0xff] }
 0x3fe   :  { %v10019_v22 = vadd.f32 %v7952_v18, %v1271_v7  ;;  %v7954_v24 = vpop.f32.mrb[14].mxu0  ;;  %8337 = vmatpush1.bf16.msra.mxu0 %v8970_v8  ;;  %v10021_v29 = vadd.f32 %v8075_v23, %v1279_v9  ;;  %v8077_v30 = vpop.f32.mrb[14].mxu1  ;;  %8460 = vmatpush1.bf16.msra.mxu1 %v8972_v10  ;;  %v320_v7 = vld [vmem:[#allocation2 + $0x830] sm:$0xff]  ;;  %v309_v8 = vld [vmem:[#allocation2 + $0x7d8] sm:$0xff]  ;;  %v9066_v10 = vcombine.low %v284_v53, %v296_v56 }
 0x3ff   :  { %v8584_v27 = vsub.f32 0.0, %v10018_v15  ;;  %v7955_v31 = vpop.f32.mrb[15].mxu0  ;;  %8338 = vmatprep.subr.bf16.mxu0 %v8995_v11  ;;  %v8586_v34 = vsub.f32 0.0, %v10020_v21  ;;  %v8078_v36 = vpop.f32.mrb[15].mxu1  ;;  %8461 = vmatprep.subr.bf16.mxu1 %v8997_v13  ;;  %v321_v9 = vld [vmem:[#allocation2 + $0x838] sm:$0xff]  ;;  %v9068_v11 = vcombine.low %v285_v57, %v297_v58  ;;  %v9091_v12 = vcombine.high %v308_v6, %v320_v7 }
 0x400   :  { %v8585_v35 = vsub.f32 0.0, %v10019_v22  ;;  %v8587_v43 = vsub.f32 0.0, %v10021_v29  ;;  %v9093_v13 = vcombine.high %v309_v8, %v321_v9  ;;  %v345_v18 = vld [vmem:[#allocation2 + $0x8f8] sm:$0xff]  ;;  %v9090_v21 = vcombine.low %v308_v6, %v320_v7  ;;  %v356_v31 = vld [vmem:[#allocation2 + $0x950] sm:$0xff] }
 0x401   :  { %v8620_v41 = vmul.f32 1.442695, %v8584_v27  ;;  %v8624_v61 = vmul.f32 1.442695, %v8586_v34  ;;  %v9092_v24 = vcombine.low %v309_v8, %v321_v9  ;;  %v9117_v30 = vcombine.high %v333_v17, %v345_v18  ;;  %v357_v34 = vld [vmem:[#allocation2 + $0x958] sm:$0xff]  ;;  %v428_v6 = vld [vmem:[#allocation2 + $0xb90] sm:$0xff] }
 0x402   :  { %v8622_v46 = vmul.f32 1.442695, %v8585_v35  ;;  %8339 = vmatpush1.bf16.msra.mxu0 %v8994_v26  ;;  %v8626_v49 = vmul.f32 1.442695, %v8587_v43  ;;  %8462 = vmatpush1.bf16.msra.mxu1 %v8996_v32  ;;  %v9115_v26 = vcombine.high %v332_v48, %v344_v14  ;;  %v368_v32 = vld [vmem:[#allocation2 + $0x9b0] sm:$0xff]  ;;  %v369_v35 = vld [vmem:[#allocation2 + $0x9b8] sm:$0xff]  ;;  %v9114_v36 = vcombine.low %v332_v48, %v344_v14 }
 0x403   :  { %10178 = vpow2.f32 %v8620_v41  ;;  %8340 = vmatprep.subr.bf16.mxu0 %v9019_v33  ;;  %8463 = vmatprep.subr.bf16.mxu1 %v9021_v38  ;;  %v9116_v38 = vcombine.low %v333_v17, %v345_v18  ;;  %v9139_v39 = vcombine.high %v356_v31, %v368_v32  ;;  %v9141_v40 = vcombine.high %v357_v34, %v369_v35  ;;  %v380_v41 = vld [vmem:[#allocation2 + $0xa10] sm:$0xff]  ;;  %v381_v44 = vld [vmem:[#allocation2 + $0xa18] sm:$0xff] }
 0x404   :  { %10180 = vpow2.f32 %v8624_v61  ;;  %v392_v43 = vld [vmem:[#allocation2 + $0xa70] sm:$0xff]  ;;  %v393_v45 = vld [vmem:[#allocation2 + $0xa78] sm:$0xff]  ;;  %v9138_v61 = vcombine.low %v356_v31, %v368_v32 }
 0x405   :  { %10182 = vpow2.f32 %v8622_v46  ;;  %v9140_v46 = vcombine.low %v357_v34, %v369_v35  ;;  %v417_v53 = vld [vmem:[#allocation2 + $0xb38] sm:$0xff]  ;;  %v9162_v57 = vcombine.low %v380_v41, %v392_v43  ;;  %v440_v7 = vld [vmem:[#allocation2 + $0xbf0] sm:$0xff] }
 0x406   :  { %10184 = vpow2.f32 %v8626_v49  ;;  %8341 = vmatpush1.bf16.msra.mxu0 %v9018_v47  ;;  %8464 = vmatpush1.bf16.msra.mxu1 %v9020_v50  ;;  %v9163_v47 = vcombine.high %v380_v41, %v392_v43  ;;  %v9165_v49 = vcombine.high %v381_v44, %v393_v45  ;;  %v404_v50 = vld [vmem:[#allocation2 + $0xad0] sm:$0xff]  ;;  %v9211_v14 = vcombine.high %v428_v6, %v440_v7 }
 0x407   :  { %8342 = vmatprep.subr.bf16.mxu0 %v9043_v51  ;;  %8465 = vmatprep.subr.bf16.mxu1 %v9045_v52  ;;  %v416_v51 = vld [vmem:[#allocation2 + $0xb30] sm:$0xff]  ;;  %v405_v52 = vld [vmem:[#allocation2 + $0xad8] sm:$0xff] }
 0x408   :  { %v9188_v48 = vcombine.low %v405_v52, %v417_v53  ;;  %v452_v17 = vld [vmem:[#allocation2 + $0xc50] sm:$0xff] }
 0x409   :  { %v464_v18 = vld [vmem:[#allocation2 + $0xcb0] sm:$0xff] }
 0x40a   :  { %8343 = vmatpush1.bf16.msra.mxu0 %v9042_v1  ;;  %8466 = vmatpush1.bf16.msra.mxu1 %v9044_v3  ;;  %v9164_v1 = vcombine.low %v381_v44, %v393_v45  ;;  %v9187_v3 = vcombine.high %v404_v50, %v416_v51  ;;  %v9234_v31 = vcombine.low %v452_v17, %v464_v18  ;;  %v500_v35 = vld [vmem:[#allocation2 + $0xdd0] sm:$0xff] }
 0x40b   :  { %8344 = vmatprep.subr.bf16.mxu0 %v9067_v4  ;;  %8467 = vmatprep.subr.bf16.mxu1 %v9069_v5  ;;  %v9189_v5 = vcombine.high %v405_v52, %v417_v53  ;;  %v524_v45 = vld [vmem:[#allocation2 + $0xe90] sm:$0xff] }
 0x40c   :  { %v548_v52 = vld [vmem:[#allocation2 + $0xf50] sm:$0xff] }
 0x40d   :  { %v10179_v15 = vpop.eup %10178  ;;  %v560_v53 = vld [vmem:[#allocation2 + $0xfb0] sm:$0xff] }
 0x40e   :  { %v10181_v19 = vpop.eup %10180  ;;  %v8656_v20 = vadd.f32 1.0, %v10179_v15  ;;  %8345 = vmatpush1.bf16.msra.mxu0 %v9066_v10  ;;  %8468 = vmatpush1.bf16.msra.mxu1 %v9068_v11  ;;  %v429_v10 = vld [vmem:[#allocation2 + $0xb98] sm:$0xff] }
 0x40f   :  { %v10183_v22 = vpop.eup %10182  ;;  %v8658_v23 = vadd.f32 1.0, %v10181_v19  ;;  %8346 = vmatprep.subr.bf16.mxu0 %v9091_v12  ;;  %8469 = vmatprep.subr.bf16.mxu1 %v9093_v13  ;;  %v441_v11 = vld [vmem:[#allocation2 + $0xbf8] sm:$0xff]  ;;  %v9186_v13 = vcombine.low %v404_v50, %v416_v51 }
 0x410   :  { %v10185_v27 = vpop.eup %10184  ;;  %10186 = vrcp.f32 %v8656_v20  ;;  %v8657_v29 = vadd.f32 1.0, %v10183_v22  ;;  %v9213_v15 = vcombine.high %v429_v10, %v441_v11  ;;  %v453_v19 = vld [vmem:[#allocation2 + $0xc58] sm:$0xff]  ;;  %v9212_v22 = vcombine.low %v429_v10, %v441_v11 }
 0x411   :  { %10188 = vrcp.f32 %v8658_v23  ;;  %v8659_v33 = vadd.f32 1.0, %v10185_v27  ;;  %v465_v20 = vld [vmem:[#allocation2 + $0xcb8] sm:$0xff]  ;;  %v9235_v23 = vcombine.high %v452_v17, %v464_v18  ;;  %v488_v27 = vld [vmem:[#allocation2 + $0xd70] sm:$0xff] }
 0x412   :  { %10190 = vrcp.f32 %v8657_v29  ;;  %8347 = vmatpush1.bf16.msra.mxu0 %v9090_v21  ;;  %8470 = vmatpush1.bf16.msra.mxu1 %v9092_v24  ;;  %v9210_v21 = vcombine.low %v428_v6, %v440_v7  ;;  %v9237_v24 = vcombine.high %v453_v19, %v465_v20  ;;  %v477_v29 = vld [vmem:[#allocation2 + $0xd18] sm:$0xff]  ;;  %v9236_v32 = vcombine.low %v453_v19, %v465_v20  ;;  %v620_v20 = vld [vmem:[#allocation2 + $0x1190] sm:$0xff] }
 0x413   :  { %10192 = vrcp.f32 %v8659_v33  ;;  %8348 = vmatprep.subr.bf16.mxu0 %v9115_v26  ;;  %8471 = vmatprep.subr.bf16.mxu1 %v9117_v30  ;;  %v476_v26 = vld [vmem:[#allocation2 + $0xd10] sm:$0xff]  ;;  %v489_v30 = vld [vmem:[#allocation2 + $0xd78] sm:$0xff] }
 0x414   :  { %v9259_v33 = vcombine.high %v476_v26, %v488_v27  ;;  %v9261_v34 = vcombine.high %v477_v29, %v489_v30  ;;  %v9260_v41 = vcombine.low %v477_v29, %v489_v30  ;;  %v573_v6 = vld [vmem:[#allocation2 + $0x1018] sm:$0xff]  ;;  %v644_v30 = vld [vmem:[#allocation2 + $0x1250] sm:$0xff] }
 0x415   :  { %v585_v7 = vld [vmem:[#allocation2 + $0x1078] sm:$0xff] }
 0x416   :  { %8349 = vmatpush1.bf16.msra.mxu0 %v9114_v36  ;;  %8472 = vmatpush1.bf16.msra.mxu1 %v9116_v38  ;;  %v512_v36 = vld [vmem:[#allocation2 + $0xe30] sm:$0xff]  ;;  %v501_v38 = vld [vmem:[#allocation2 + $0xdd8] sm:$0xff]  ;;  %v9357_v11 = vcombine.high %v573_v6, %v585_v7  ;;  %v9356_v17 = vcombine.low %v573_v6, %v585_v7 }
 0x417   :  { %8350 = vmatprep.subr.bf16.mxu0 %v9139_v39  ;;  %8473 = vmatprep.subr.bf16.mxu1 %v9141_v40  ;;  %v513_v39 = vld [vmem:[#allocation2 + $0xe38] sm:$0xff]  ;;  %v9258_v40 = vcombine.low %v476_v26, %v488_v27  ;;  %v9283_v43 = vcombine.high %v500_v35, %v512_v36  ;;  %v740_v7 = vld [vmem:[#allocation2 + $0x1550] sm:$0xff] }
 0x418   :  { %v9285_v44 = vcombine.high %v501_v38, %v513_v39 }
 0x41a   :  { %v10187_v56 = vpop.eup %10186  ;;  %8351 = vmatpush1.bf16.msra.mxu0 %v9138_v61  ;;  %8474 = vmatpush1.bf16.msra.mxu1 %v9140_v46  ;;  %v536_v61 = vld [vmem:[#allocation2 + $0xef0] sm:$0xff]  ;;  %v525_v46 = vld [vmem:[#allocation2 + $0xe98] sm:$0xff] }
 0x41b   :  { %v10189_v58 = vpop.eup %10188  ;;  %8352 = vmatprep.subr.bf16.mxu0 %v9163_v47  ;;  %8475 = vmatprep.subr.bf16.mxu1 %v9165_v49  ;;  %v537_v47 = vld [vmem:[#allocation2 + $0xef8] sm:$0xff]  ;;  %v9282_v49 = vcombine.low %v500_v35, %v512_v36  ;;  %v9307_v50 = vcombine.high %v524_v45, %v536_v61 }
 0x41c   :  { %v10191_v4 = vpop.eup %10190  ;;  %v9309_v51 = vcombine.high %v525_v46, %v537_v47 }
 0x41d   :  { %v10193_v8 = vpop.eup %10192  ;;  %v10000_v9 = vpack.c.bf16 %v10191_v4, %v10187_v56  ;;  %v549_v56 = vld [vmem:[#allocation2 + $0xf58] sm:$0xff]  ;;  %v572_v4 = vld [vmem:[#allocation2 + $0x1010] sm:$0xff] }
 0x41e   :  { %v10001_v12 = vpack.c.bf16 %v10193_v8, %v10189_v58  ;;  %8353 = vmatpush1.bf16.msra.mxu0 %v9162_v57  ;;  %8476 = vmatpush1.bf16.msra.mxu1 %v9164_v1  ;;  %v561_v57 = vld [vmem:[#allocation2 + $0xfb8] sm:$0xff]  ;;  %v9306_v58 = vcombine.low %v524_v45, %v536_v61  ;;  %v9308_v1 = vcombine.low %v525_v46, %v537_v47  ;;  %v692_v47 = vld [vmem:[#allocation2 + $0x13d0] sm:$0xff] }
 0x41f   :  { %8818 = vst [vmem:[%s10525_s3 + $0x30] sm:$0xff] %v10000_v9  ;;  %8354 = vmatprep.subr.bf16.mxu0 %v9187_v3  ;;  %8477 = vmatprep.subr.bf16.mxu1 %v9189_v5  ;;  %v9331_v3 = vcombine.high %v548_v52, %v560_v53  ;;  %v584_v5 = vld [vmem:[#allocation2 + $0x1070] sm:$0xff]  ;;  %v9330_v8 = vcombine.low %v548_v52, %v560_v53 }
 0x420   :  { %8819 = vst [vmem:[%s10525_s3 + $0x38] sm:$0xff] %v10001_v12  ;;  %v9332_v9 = vcombine.low %v549_v56, %v561_v57  ;;  %v9355_v10 = vcombine.high %v572_v4, %v584_v5  ;;  %v596_v12 = vld [vmem:[#allocation2 + $0x10d0] sm:$0xff] }
 0x422   :  { %8355 = vmatpush1.bf16.msra.mxu0 %v9186_v13  ;;  %8478 = vmatpush1.bf16.msra.mxu1 %v9188_v48  ;;  %v608_v13 = vld [vmem:[#allocation2 + $0x1130] sm:$0xff]  ;;  %v597_v48 = vld [vmem:[#allocation2 + $0x10d8] sm:$0xff] }
 0x423   :  { %8356 = vmatprep.subr.bf16.mxu0 %v9211_v14  ;;  %8479 = vmatprep.subr.bf16.mxu1 %v9213_v15  ;;  %v609_v14 = vld [vmem:[#allocation2 + $0x1138] sm:$0xff]  ;;  %v9354_v15 = vcombine.low %v572_v4, %v584_v5  ;;  %v9379_v18 = vcombine.high %v596_v12, %v608_v13 }
 0x424   :  { %v9381_v19 = vcombine.high %v597_v48, %v609_v14  ;;  %v9380_v26 = vcombine.low %v597_v48, %v609_v14  ;;  %v764_v14 = vld [vmem:[#allocation2 + $0x1610] sm:$0xff] }
 0x426   :  { %8357 = vmatpush1.bf16.msra.mxu0 %v9210_v21  ;;  %8480 = vmatpush1.bf16.msra.mxu1 %v9212_v22  ;;  %v632_v21 = vld [vmem:[#allocation2 + $0x11f0] sm:$0xff]  ;;  %v621_v22 = vld [vmem:[#allocation2 + $0x1198] sm:$0xff] }
 0x427   :  { %8367 = vmatprep.subr.bf16.mxu0 %v9235_v23  ;;  %8490 = vmatprep.subr.bf16.mxu1 %v9237_v24  ;;  %v633_v23 = vld [vmem:[#allocation2 + $0x11f8] sm:$0xff]  ;;  %v9378_v24 = vcombine.low %v596_v12, %v608_v13  ;;  %v9403_v27 = vcombine.high %v620_v20, %v632_v21 }
 0x428   :  { %v9405_v29 = vcombine.high %v621_v22, %v633_v23  ;;  %v9404_v35 = vcombine.low %v621_v22, %v633_v23  ;;  %v788_v23 = vld [vmem:[#allocation2 + $0x16d0] sm:$0xff] }
 0x429   :  { %8359 = vmatmul.mubr.bf16.vlgmr.msra.gmra.mrb[20].mxu0 %v10337_v16  ;;  %8482 = vmatmul.mubr.bf16.vlgmr.msra.gmra.mrb[20].mxu1 %v10337_v16  ;;  %v9284_v16 = vcombine.low %v501_v38, %v513_v39  ;;  %v668_v39 = vld [vmem:[#allocation2 + $0x1310] sm:$0xff] }
 0x42a   :  { %8368 = vmatpush1.bf16.msra.mxu0 %v9234_v31  ;;  %8491 = vmatpush1.bf16.msra.mxu1 %v9236_v32  ;;  %v656_v31 = vld [vmem:[#allocation2 + $0x12b0] sm:$0xff]  ;;  %v645_v32 = vld [vmem:[#allocation2 + $0x1258] sm:$0xff] }
 0x42b   :  { %8369 = vmatprep.subr.bf16.mxu0 %v9259_v33  ;;  %8492 = vmatprep.subr.bf16.mxu1 %v9261_v34  ;;  %v657_v33 = vld [vmem:[#allocation2 + $0x12b8] sm:$0xff]  ;;  %v9402_v34 = vcombine.low %v620_v20, %v632_v21  ;;  %v9427_v36 = vcombine.high %v644_v30, %v656_v31 }
 0x42c   :  { %8399 = vmatprep.mubr.bf16.mxu0 %v10339_v25  ;;  %8522 = vmatprep.mubr.bf16.mxu1 %v10339_v25  ;;  %v9333_v25 = vcombine.high %v549_v56, %v561_v57  ;;  %v9429_v38 = vcombine.high %v645_v32, %v657_v33  ;;  %v9428_v45 = vcombine.low %v645_v32, %v657_v33  ;;  %v716_v57 = vld [vmem:[#allocation2 + $0x1490] sm:$0xff] }
 0x42d   :  { %v812_v33 = vld [vmem:[#allocation2 + $0x1790] sm:$0xff] }
 0x42e   :  { %8370 = vmatpush1.bf16.msra.mxu0 %v9258_v40  ;;  %8493 = vmatpush1.bf16.msra.mxu1 %v9260_v41  ;;  %v680_v40 = vld [vmem:[#allocation2 + $0x1370] sm:$0xff]  ;;  %v669_v41 = vld [vmem:[#allocation2 + $0x1318] sm:$0xff] }
 0x42f   :  { %8371 = vmatprep.subr.bf16.mxu0 %v9283_v43  ;;  %8494 = vmatprep.subr.bf16.mxu1 %v9285_v44  ;;  %v681_v43 = vld [vmem:[#allocation2 + $0x1378] sm:$0xff]  ;;  %v9426_v44 = vcombine.low %v644_v30, %v656_v31  ;;  %v9451_v61 = vcombine.high %v668_v39, %v680_v40 }
 0x430   :  { %v9453_v46 = vcombine.high %v669_v41, %v681_v43  ;;  %v9452_v52 = vcombine.low %v669_v41, %v681_v43  ;;  %v836_v43 = vld [vmem:[#allocation2 + $0x1850] sm:$0xff] }
 0x432   :  { %8372 = vmatpush1.bf16.msra.mxu0 %v9282_v49  ;;  %8495 = vmatpush1.bf16.msra.mxu1 %v9284_v16  ;;  %v704_v49 = vld [vmem:[#allocation2 + $0x1430] sm:$0xff]  ;;  %v693_v16 = vld [vmem:[#allocation2 + $0x13d8] sm:$0xff] }
 0x433   :  { %8373 = vmatprep.subr.bf16.mxu0 %v9307_v50  ;;  %8496 = vmatprep.subr.bf16.mxu1 %v9309_v51  ;;  %v705_v50 = vld [vmem:[#allocation2 + $0x1438] sm:$0xff]  ;;  %v9450_v51 = vcombine.low %v668_v39, %v680_v40  ;;  %v9475_v53 = vcombine.high %v692_v47, %v704_v49 }
 0x434   :  { %v9477_v56 = vcombine.high %v693_v16, %v705_v50  ;;  %v9476_v4 = vcombine.low %v693_v16, %v705_v50  ;;  %v860_v50 = vld [vmem:[#allocation2 + $0x1910] sm:$0xff] }
 0x436   :  { %8374 = vmatpush1.bf16.msra.mxu0 %v9306_v58  ;;  %8497 = vmatpush1.bf16.msra.mxu1 %v9308_v1  ;;  %v728_v58 = vld [vmem:[#allocation2 + $0x14f0] sm:$0xff]  ;;  %v717_v1 = vld [vmem:[#allocation2 + $0x1498] sm:$0xff] }
 0x437   :  { %8375 = vmatprep.subr.bf16.mxu0 %v9331_v3  ;;  %8498 = vmatprep.subr.bf16.mxu1 %v9333_v25  ;;  %v729_v3 = vld [vmem:[#allocation2 + $0x14f8] sm:$0xff]  ;;  %v9474_v25 = vcombine.low %v692_v47, %v704_v49  ;;  %v9499_v5 = vcombine.high %v716_v57, %v728_v58 }
 0x438   :  { %v9501_v6 = vcombine.high %v717_v1, %v729_v3  ;;  %v9500_v12 = vcombine.low %v717_v1, %v729_v3  ;;  %v884_v3 = vld [vmem:[#allocation2 + $0x19d0] sm:$0xff] }
 0x43a   :  { %8376 = vmatpush1.bf16.msra.mxu0 %v9330_v8  ;;  %8499 = vmatpush1.bf16.msra.mxu1 %v9332_v9  ;;  %v752_v8 = vld [vmem:[#allocation2 + $0x15b0] sm:$0xff]  ;;  %v741_v9 = vld [vmem:[#allocation2 + $0x1558] sm:$0xff] }
 0x43b   :  { %8377 = vmatprep.subr.bf16.mxu0 %v9355_v10  ;;  %8500 = vmatprep.subr.bf16.mxu1 %v9357_v11  ;;  %v753_v10 = vld [vmem:[#allocation2 + $0x15b8] sm:$0xff]  ;;  %v9498_v11 = vcombine.low %v716_v57, %v728_v58  ;;  %v9523_v13 = vcombine.high %v740_v7, %v752_v8 }
 0x43c   :  { %v9525_v48 = vcombine.high %v741_v9, %v753_v10  ;;  %v9524_v20 = vcombine.low %v741_v9, %v753_v10  ;;  %v908_v10 = vld [vmem:[#allocation2 + $0x1a90] sm:$0xff] }
 0x43e   :  { %8378 = vmatpush1.bf16.msra.mxu0 %v9354_v15  ;;  %8501 = vmatpush1.bf16.msra.mxu1 %v9356_v17  ;;  %v776_v15 = vld [vmem:[#allocation2 + $0x1670] sm:$0xff]  ;;  %v765_v17 = vld [vmem:[#allocation2 + $0x1618] sm:$0xff] }
 0x43f   :  { %8379 = vmatprep.subr.bf16.mxu0 %v9379_v18  ;;  %8502 = vmatprep.subr.bf16.mxu1 %v9381_v19  ;;  %v777_v18 = vld [vmem:[#allocation2 + $0x1678] sm:$0xff]  ;;  %v9522_v19 = vcombine.low %v740_v7, %v752_v8  ;;  %v9547_v21 = vcombine.high %v764_v14, %v776_v15 }
 0x440   :  { %v9549_v22 = vcombine.high %v765_v17, %v777_v18  ;;  %v9548_v30 = vcombine.low %v765_v17, %v777_v18  ;;  %v932_v17 = vld [vmem:[#allocation2 + $0x1b50] sm:$0xff] }
 0x441   :  { %v944_v18 = vld [vmem:[#allocation2 + $0x1bb0] sm:$0xff] }
 0x442   :  { %8380 = vmatpush1.bf16.msra.mxu0 %v9378_v24  ;;  %8503 = vmatpush1.bf16.msra.mxu1 %v9380_v26  ;;  %v800_v24 = vld [vmem:[#allocation2 + $0x1730] sm:$0xff]  ;;  %v789_v26 = vld [vmem:[#allocation2 + $0x16d8] sm:$0xff] }
 0x443   :  { %8381 = vmatprep.subr.bf16.mxu0 %v9403_v27  ;;  %8504 = vmatprep.subr.bf16.mxu1 %v9405_v29  ;;  %v801_v27 = vld [vmem:[#allocation2 + $0x1738] sm:$0xff]  ;;  %v9546_v29 = vcombine.low %v764_v14, %v776_v15  ;;  %v9571_v31 = vcombine.high %v788_v23, %v800_v24 }
 0x444   :  { %v9573_v32 = vcombine.high %v789_v26, %v801_v27  ;;  %v9572_v39 = vcombine.low %v789_v26, %v801_v27  ;;  %v968_v26 = vld [vmem:[#allocation2 + $0x1c70] sm:$0xff]  ;;  %v957_v27 = vld [vmem:[#allocation2 + $0x1c18] sm:$0xff] }
 0x446   :  { %8382 = vmatpush1.bf16.msra.mxu0 %v9402_v34  ;;  %8505 = vmatpush1.bf16.msra.mxu1 %v9404_v35  ;;  %v824_v34 = vld [vmem:[#allocation2 + $0x17f0] sm:$0xff]  ;;  %v813_v35 = vld [vmem:[#allocation2 + $0x1798] sm:$0xff] }
 0x447   :  { %8383 = vmatprep.subr.bf16.mxu0 %v9427_v36  ;;  %8506 = vmatprep.subr.bf16.mxu1 %v9429_v38  ;;  %v825_v36 = vld [vmem:[#allocation2 + $0x17f8] sm:$0xff]  ;;  %v9570_v38 = vcombine.low %v788_v23, %v800_v24  ;;  %v9595_v40 = vcombine.high %v812_v33, %v824_v34  ;;  %v9715_v23 = vcombine.high %v932_v17, %v944_v18  ;;  %v956_v24 = vld [vmem:[#allocation2 + $0x1c10] sm:$0xff] }
 0x448   :  { %v9597_v41 = vcombine.high %v813_v35, %v825_v36  ;;  %v9596_v47 = vcombine.low %v813_v35, %v825_v36  ;;  %v992_v35 = vld [vmem:[#allocation2 + $0x1d30] sm:$0xff]  ;;  %v981_v36 = vld [vmem:[#allocation2 + $0x1cd8] sm:$0xff] }
 0x44a   :  { %8384 = vmatpush1.bf16.msra.mxu0 %v9426_v44  ;;  %8507 = vmatpush1.bf16.msra.mxu1 %v9428_v45  ;;  %v848_v44 = vld [vmem:[#allocation2 + $0x18b0] sm:$0xff]  ;;  %v837_v45 = vld [vmem:[#allocation2 + $0x1858] sm:$0xff] }
 0x44b   :  { %8385 = vmatprep.subr.bf16.mxu0 %v9451_v61  ;;  %8508 = vmatprep.subr.bf16.mxu1 %v9453_v46  ;;  %v849_v61 = vld [vmem:[#allocation2 + $0x18b8] sm:$0xff]  ;;  %v9594_v46 = vcombine.low %v812_v33, %v824_v34  ;;  %v9619_v49 = vcombine.high %v836_v43, %v848_v44  ;;  %v980_v34 = vld [vmem:[#allocation2 + $0x1cd0] sm:$0xff] }
 0x44c   :  { %v9621_v16 = vcombine.high %v837_v45, %v849_v61  ;;  %v9620_v57 = vcombine.low %v837_v45, %v849_v61  ;;  %v1016_v45 = vld [vmem:[#allocation2 + $0x1df0] sm:$0xff]  ;;  %v1005_v61 = vld [vmem:[#allocation2 + $0x1d98] sm:$0xff] }
 0x44e   :  { %8386 = vmatpush1.bf16.msra.mxu0 %v9450_v51  ;;  %8509 = vmatpush1.bf16.msra.mxu1 %v9452_v52  ;;  %v872_v51 = vld [vmem:[#allocation2 + $0x1970] sm:$0xff]  ;;  %v861_v52 = vld [vmem:[#allocation2 + $0x1918] sm:$0xff] }
 0x44f   :  { %8387 = vmatprep.subr.bf16.mxu0 %v9475_v53  ;;  %8510 = vmatprep.subr.bf16.mxu1 %v9477_v56  ;;  %v873_v53 = vld [vmem:[#allocation2 + $0x1978] sm:$0xff]  ;;  %v9618_v56 = vcombine.low %v836_v43, %v848_v44  ;;  %v9643_v58 = vcombine.high %v860_v50, %v872_v51  ;;  %v1004_v44 = vld [vmem:[#allocation2 + $0x1d90] sm:$0xff] }
 0x450   :  { %v9645_v1 = vcombine.high %v861_v52, %v873_v53  ;;  %v9644_v7 = vcombine.low %v861_v52, %v873_v53  ;;  %v1040_v52 = vld [vmem:[#allocation2 + $0x1eb0] sm:$0xff]  ;;  %v1029_v53 = vld [vmem:[#allocation2 + $0x1e58] sm:$0xff] }
 0x452   :  { %8388 = vmatpush1.bf16.msra.mxu0 %v9474_v25  ;;  %8511 = vmatpush1.bf16.msra.mxu1 %v9476_v4  ;;  %v896_v25 = vld [vmem:[#allocation2 + $0x1a30] sm:$0xff]  ;;  %v885_v4 = vld [vmem:[#allocation2 + $0x19d8] sm:$0xff] }
 0x453   :  { %8389 = vmatprep.subr.bf16.mxu0 %v9499_v5  ;;  %8512 = vmatprep.subr.bf16.mxu1 %v9501_v6  ;;  %v897_v5 = vld [vmem:[#allocation2 + $0x1a38] sm:$0xff]  ;;  %v9642_v6 = vcombine.low %v860_v50, %v872_v51  ;;  %v9667_v8 = vcombine.high %v884_v3, %v896_v25  ;;  %v1028_v51 = vld [vmem:[#allocation2 + $0x1e50] sm:$0xff] }
 0x454   :  { %v9669_v9 = vcombine.high %v885_v4, %v897_v5 }
 0x456   :  { %8390 = vmatpush1.bf16.msra.mxu0 %v9498_v11  ;;  %8513 = vmatpush1.bf16.msra.mxu1 %v9500_v12  ;;  %v920_v11 = vld [vmem:[#allocation2 + $0x1af0] sm:$0xff]  ;;  %v909_v12 = vld [vmem:[#allocation2 + $0x1a98] sm:$0xff] }
 0x457   :  { %8391 = vmatprep.subr.bf16.mxu0 %v9523_v13  ;;  %8514 = vmatprep.subr.bf16.mxu1 %v9525_v48  ;;  %v921_v13 = vld [vmem:[#allocation2 + $0x1af8] sm:$0xff]  ;;  %v9666_v48 = vcombine.low %v884_v3, %v896_v25  ;;  %v9691_v14 = vcombine.high %v908_v10, %v920_v11  ;;  %v1052_v25 = vld [vmem:[#allocation2 + $0x1f10] sm:$0xff] }
 0x458   :  { %v9693_v15 = vcombine.high %v909_v12, %v921_v13 }
 0x45a   :  { %8392 = vmatpush1.bf16.msra.mxu0 %v9522_v19  ;;  %8515 = vmatpush1.bf16.msra.mxu1 %v9524_v20  ;;  %v933_v19 = vld [vmem:[#allocation2 + $0x1b58] sm:$0xff] }
 0x45b   :  { %8393 = vmatprep.subr.bf16.mxu0 %v9547_v21  ;;  %8516 = vmatprep.subr.bf16.mxu1 %v9549_v22  ;;  %v945_v20 = vld [vmem:[#allocation2 + $0x1bb8] sm:$0xff]  ;;  %v9690_v21 = vcombine.low %v908_v10, %v920_v11  ;;  %v9692_v22 = vcombine.low %v909_v12, %v921_v13  ;;  %v1076_v11 = vld [vmem:[#allocation2 + $0x1fd0] sm:$0xff] }
 0x45c   :  { %v1088_v12 = vld [vmem:[#allocation2 + $0x2030] sm:$0xff]  ;;  %v1077_v13 = vld [vmem:[#allocation2 + $0x1fd8] sm:$0xff] }
 0x45e   :  { %8394 = vmatpush1.bf16.msra.mxu0 %v9546_v29  ;;  %8517 = vmatpush1.bf16.msra.mxu1 %v9548_v30  ;;  %v969_v29 = vld [vmem:[#allocation2 + $0x1c78] sm:$0xff]  ;;  %v9714_v30 = vcombine.low %v932_v17, %v944_v18  ;;  %v1100_v18 = vld [vmem:[#allocation2 + $0x2090] sm:$0xff] }
 0x45f   :  { %8395 = vmatprep.subr.bf16.mxu0 %v9571_v31  ;;  %8518 = vmatprep.subr.bf16.mxu1 %v9573_v32  ;;  %v9716_v31 = vcombine.low %v933_v19, %v945_v20  ;;  %v9739_v32 = vcombine.high %v956_v24, %v968_v26  ;;  %v9741_v33 = vcombine.high %v957_v27, %v969_v29 }
 0x462   :  { %8396 = vmatpush1.bf16.msra.mxu0 %v9570_v38  ;;  %8519 = vmatpush1.bf16.msra.mxu1 %v9572_v39  ;;  %v993_v38 = vld [vmem:[#allocation2 + $0x1d38] sm:$0xff]  ;;  %v9738_v39 = vcombine.low %v956_v24, %v968_v26  ;;  %v1124_v26 = vld [vmem:[#allocation2 + $0x2150] sm:$0xff] }
 0x463   :  { %8397 = vmatprep.subr.bf16.mxu0 %v9595_v40  ;;  %8520 = vmatprep.subr.bf16.mxu1 %v9597_v41  ;;  %v9740_v40 = vcombine.low %v957_v27, %v969_v29  ;;  %v9763_v41 = vcombine.high %v980_v34, %v992_v35  ;;  %v9765_v43 = vcombine.high %v981_v36, %v993_v38  ;;  %v1136_v27 = vld [vmem:[#allocation2 + $0x21b0] sm:$0xff]  ;;  %v1125_v29 = vld [vmem:[#allocation2 + $0x2158] sm:$0xff] }
 0x466   :  { %8398 = vmatpush1.bf16.msra.mxu0 %v9594_v46  ;;  %8521 = vmatpush1.bf16.msra.mxu1 %v9596_v47  ;;  %v1017_v46 = vld [vmem:[#allocation2 + $0x1df8] sm:$0xff]  ;;  %v9762_v47 = vcombine.low %v980_v34, %v992_v35  ;;  %v1148_v35 = vld [vmem:[#allocation2 + $0x2210] sm:$0xff] }
 0x467   :  { %8408 = vmatprep.subr.bf16.mxu0 %v9619_v49  ;;  %8531 = vmatprep.subr.bf16.mxu1 %v9621_v16  ;;  %v9764_v49 = vcombine.low %v981_v36, %v993_v38  ;;  %v9787_v16 = vcombine.high %v1004_v44, %v1016_v45  ;;  %v9789_v50 = vcombine.high %v1005_v61, %v1017_v46  ;;  %v1160_v36 = vld [vmem:[#allocation2 + $0x2270] sm:$0xff]  ;;  %v1149_v38 = vld [vmem:[#allocation2 + $0x2218] sm:$0xff] }
 0x469   :  { %8400 = vmatmul.mubr.bf16.vlgmr.msra.gmra.mrb[20].mxu0 %v10351_v28  ;;  %8523 = vmatmul.mubr.bf16.vlgmr.msra.gmra.mrb[20].mxu1 %v10351_v28  ;;  %v9668_v28 = vcombine.low %v885_v4, %v897_v5  ;;  %v1064_v4 = vld [vmem:[#allocation2 + $0x1f70] sm:$0xff]  ;;  %v1053_v5 = vld [vmem:[#allocation2 + $0x1f18] sm:$0xff] }
 0x46a   :  { %8409 = vmatpush1.bf16.msra.mxu0 %v9618_v56  ;;  %8532 = vmatpush1.bf16.msra.mxu1 %v9620_v57  ;;  %v1041_v56 = vld [vmem:[#allocation2 + $0x1eb8] sm:$0xff]  ;;  %v9786_v57 = vcombine.low %v1004_v44, %v1016_v45  ;;  %v1172_v45 = vld [vmem:[#allocation2 + $0x22d0] sm:$0xff] }
 0x46b   :  { %8410 = vmatprep.subr.bf16.mxu0 %v9643_v58  ;;  %8533 = vmatprep.subr.bf16.mxu1 %v9645_v1  ;;  %v9788_v58 = vcombine.low %v1005_v61, %v1017_v46  ;;  %v9811_v1 = vcombine.high %v1028_v51, %v1040_v52  ;;  %v9813_v3 = vcombine.high %v1029_v53, %v1041_v56  ;;  %v1184_v61 = vld [vmem:[#allocation2 + $0x2330] sm:$0xff]  ;;  %v1173_v46 = vld [vmem:[#allocation2 + $0x22d8] sm:$0xff] }
 0x46c   :  { %8440 = vmatprep.mubr.bf16.mxu0 %v10353_v37  ;;  %8563 = vmatprep.mubr.bf16.mxu1 %v10353_v37  ;;  %v9717_v37 = vcombine.high %v933_v19, %v945_v20  ;;  %v1112_v19 = vld [vmem:[#allocation2 + $0x20f0] sm:$0xff]  ;;  %v1101_v20 = vld [vmem:[#allocation2 + $0x2098] sm:$0xff] }
 0x46e   :  { %8411 = vmatpush1.bf16.msra.mxu0 %v9642_v6  ;;  %8534 = vmatpush1.bf16.msra.mxu1 %v9644_v7  ;;  %v1065_v6 = vld [vmem:[#allocation2 + $0x1f78] sm:$0xff]  ;;  %v9810_v7 = vcombine.low %v1028_v51, %v1040_v52  ;;  %v1196_v52 = vld [vmem:[#allocation2 + $0x2390] sm:$0xff] }
 0x46f   :  { %8412 = vmatprep.subr.bf16.mxu0 %v9667_v8  ;;  %8535 = vmatprep.subr.bf16.mxu1 %v9669_v9  ;;  %v9812_v8 = vcombine.low %v1029_v53, %v1041_v56  ;;  %v9835_v9 = vcombine.high %v1052_v25, %v1064_v4  ;;  %v9837_v10 = vcombine.high %v1053_v5, %v1065_v6  ;;  %v1208_v53 = vld [vmem:[#allocation2 + $0x23f0] sm:$0xff]  ;;  %v1197_v56 = vld [vmem:[#allocation2 + $0x2398] sm:$0xff] }
 0x472   :  { %8413 = vmatpush1.bf16.msra.mxu0 %v9666_v48  ;;  %8536 = vmatpush1.bf16.msra.mxu1 %v9668_v28  ;;  %v1089_v48 = vld [vmem:[#allocation2 + $0x2038] sm:$0xff]  ;;  %v9834_v28 = vcombine.low %v1052_v25, %v1064_v4  ;;  %v9978_v4 = vcombine.low %v1196_v52, %v1208_v53 }
 0x473   :  { %8414 = vmatprep.subr.bf16.mxu0 %v9691_v14  ;;  %8537 = vmatprep.subr.bf16.mxu1 %v9693_v15  ;;  %v9836_v14 = vcombine.low %v1053_v5, %v1065_v6  ;;  %v9859_v15 = vcombine.high %v1076_v11, %v1088_v12  ;;  %v9861_v17 = vcombine.high %v1077_v13, %v1089_v48  ;;  %v10492_v6 = vld [vmem:[#allocation4 + $0x10] sm:$0xff] }
 0x476   :  { %8415 = vmatpush1.bf16.msra.mxu0 %v9690_v21  ;;  %8538 = vmatpush1.bf16.msra.mxu1 %v9692_v22  ;;  %v1113_v21 = vld [vmem:[#allocation2 + $0x20f8] sm:$0xff]  ;;  %v9858_v22 = vcombine.low %v1076_v11, %v1088_v12 }
 0x477   :  { %8416 = vmatprep.subr.bf16.mxu0 %v9715_v23  ;;  %8539 = vmatprep.subr.bf16.mxu1 %v9717_v37  ;;  %v9860_v23 = vcombine.low %v1077_v13, %v1089_v48  ;;  %v9883_v37 = vcombine.high %v1100_v18, %v1112_v19  ;;  %v9885_v24 = vcombine.high %v1101_v20, %v1113_v21 }
 0x47a   :  { %8417 = vmatpush1.bf16.msra.mxu0 %v9714_v30  ;;  %8540 = vmatpush1.bf16.msra.mxu1 %v9716_v31  ;;  %v1137_v30 = vld [vmem:[#allocation2 + $0x21b8] sm:$0xff]  ;;  %v9882_v31 = vcombine.low %v1100_v18, %v1112_v19 }
 0x47b   :  { %8418 = vmatprep.subr.bf16.mxu0 %v9739_v32  ;;  %8541 = vmatprep.subr.bf16.mxu1 %v9741_v33  ;;  %v9884_v32 = vcombine.low %v1101_v20, %v1113_v21  ;;  %v9907_v33 = vcombine.high %v1124_v26, %v1136_v27  ;;  %v9909_v34 = vcombine.high %v1125_v29, %v1137_v30 }
 0x47e   :  { %8419 = vmatpush1.bf16.msra.mxu0 %v9738_v39  ;;  %8542 = vmatpush1.bf16.msra.mxu1 %v9740_v40  ;;  %v1161_v39 = vld [vmem:[#allocation2 + $0x2278] sm:$0xff]  ;;  %v9906_v40 = vcombine.low %v1124_v26, %v1136_v27 }
 0x47f   :  { %8420 = vmatprep.subr.bf16.mxu0 %v9763_v41  ;;  %8543 = vmatprep.subr.bf16.mxu1 %v9765_v43  ;;  %v9908_v41 = vcombine.low %v1125_v29, %v1137_v30  ;;  %v9931_v43 = vcombine.high %v1148_v35, %v1160_v36  ;;  %v9933_v44 = vcombine.high %v1149_v38, %v1161_v39 }
 0x482   :  { %8421 = vmatpush1.bf16.msra.mxu0 %v9762_v47  ;;  %8544 = vmatpush1.bf16.msra.mxu1 %v9764_v49  ;;  %v1185_v47 = vld [vmem:[#allocation2 + $0x2338] sm:$0xff]  ;;  %v9930_v49 = vcombine.low %v1148_v35, %v1160_v36 }
 0x483   :  { %8422 = vmatprep.subr.bf16.mxu0 %v9787_v16  ;;  %8545 = vmatprep.subr.bf16.mxu1 %v9789_v50  ;;  %v9932_v16 = vcombine.low %v1149_v38, %v1161_v39  ;;  %v9955_v50 = vcombine.high %v1172_v45, %v1184_v61  ;;  %v9957_v51 = vcombine.high %v1173_v46, %v1185_v47 }
 0x486   :  { %8423 = vmatpush1.bf16.msra.mxu0 %v9786_v57  ;;  %8546 = vmatpush1.bf16.msra.mxu1 %v9788_v58  ;;  %v1209_v57 = vld [vmem:[#allocation2 + $0x23f8] sm:$0xff]  ;;  %v9954_v58 = vcombine.low %v1172_v45, %v1184_v61  ;;  %v1311_v45 = vrot.slane %v10492_v6, %v10426_v2 }
 0x487   :  { %8424 = vmatprep.subr.bf16.mxu0 %v9811_v1  ;;  %8547 = vmatprep.subr.bf16.mxu1 %v9813_v3  ;;  %v9956_v1 = vcombine.low %v1173_v46, %v1185_v47  ;;  %v9979_v3 = vcombine.high %v1196_v52, %v1208_v53  ;;  %v9981_v25 = vcombine.high %v1197_v56, %v1209_v57 }
 0x488   :  { %v9980_v5 = vcombine.low %v1197_v56, %v1209_v57 }
 0x48a   :  { %8425 = vmatpush1.bf16.msra.mxu0 %v9810_v7  ;;  %8548 = vmatpush1.bf16.msra.mxu1 %v9812_v8  ;;  %v1283_v7 = vrot.slane %v10492_v6, %v10383_v55  ;;  %v1291_v8 = vrot.slane %v10492_v6, %v10386_v60 }
 0x48b   :  { %8426 = vmatprep.subr.bf16.mxu0 %v9835_v9  ;;  %8549 = vmatprep.subr.bf16.mxu1 %v9837_v10  ;;  %v1287_v9 = vrot.slane %v10492_v6, %v10389_v62  ;;  %v1295_v10 = vrot.slane %v10492_v6, %v10392_v0 }
 0x48e   :  { %8427 = vmatpush1.bf16.msra.mxu0 %v9834_v28  ;;  %8550 = vmatpush1.bf16.msra.mxu1 %v9836_v14 }
 0x48f   :  { %8428 = vmatprep.subr.bf16.mxu0 %v9859_v15  ;;  %8551 = vmatprep.subr.bf16.mxu1 %v9861_v17 }
 0x492   :  { %8429 = vmatpush1.bf16.msra.mxu0 %v9858_v22  ;;  %8552 = vmatpush1.bf16.msra.mxu1 %v9860_v23 }
 0x493   :  { %8430 = vmatprep.subr.bf16.mxu0 %v9883_v37  ;;  %8553 = vmatprep.subr.bf16.mxu1 %v9885_v24 }
 0x496   :  { %8431 = vmatpush1.bf16.msra.mxu0 %v9882_v31  ;;  %8554 = vmatpush1.bf16.msra.mxu1 %v9884_v32 }
 0x497   :  { %8432 = vmatprep.subr.bf16.mxu0 %v9907_v33  ;;  %8555 = vmatprep.subr.bf16.mxu1 %v9909_v34 }
 0x49a   :  { %8433 = vmatpush1.bf16.msra.mxu0 %v9906_v40  ;;  %8556 = vmatpush1.bf16.msra.mxu1 %v9908_v41  ;;  %v1299_v41 = vrot.slane %v10492_v6, %v10417_v54 }
 0x49b   :  { %8434 = vmatprep.subr.bf16.mxu0 %v9931_v43  ;;  %8557 = vmatprep.subr.bf16.mxu1 %v9933_v44  ;;  %v1307_v43 = vrot.slane %v10492_v6, %v10420_v59  ;;  %v1303_v44 = vrot.slane %v10492_v6, %v10423_v63 }
 0x49e   :  { %8435 = vmatpush1.bf16.msra.mxu0 %v9930_v49  ;;  %8558 = vmatpush1.bf16.msra.mxu1 %v9932_v16 }
 0x49f   :  { %8436 = vmatprep.subr.bf16.mxu0 %v9955_v50  ;;  %8559 = vmatprep.subr.bf16.mxu1 %v9957_v51 }
 0x4a2   :  { %8437 = vmatpush1.bf16.msra.mxu0 %v9954_v58  ;;  %8560 = vmatpush1.bf16.msra.mxu1 %v9956_v1 }
 0x4a3   :  { %8438 = vmatprep.subr.bf16.mxu0 %v9979_v3  ;;  %8561 = vmatprep.subr.bf16.mxu1 %v9981_v25 }
 0x4a6   :  { %8439 = vmatpush1.bf16.msra.mxu0 %v9978_v4  ;;  %8562 = vmatpush1.bf16.msra.mxu1 %v9980_v5 }
 0x4a9   :  { %8441 = vmatmul.mubr.bf16.vlgmr.msra.gmra.mrb[20].mxu0 %v10362_v42  ;;  %8564 = vmatmul.mubr.bf16.vlgmr.msra.gmra.mrb[20].mxu1 %v10362_v42 }
 0x4bc   :  { %v8196_v11 = vpop.f32.mrb[16].mxu0  ;;  %v8319_v13 = vpop.f32.mrb[16].mxu1 }
 0x4bd   :  { %v10022_v12 = vadd.f32 %v8196_v11, %v1283_v7  ;;  %v8198_v48 = vpop.f32.mrb[17].mxu0  ;;  %v10024_v28 = vadd.f32 %v8319_v13, %v1291_v8  ;;  %v8321_v14 = vpop.f32.mrb[17].mxu1 }
 0x4be   :  { %v10023_v42 = vadd.f32 %v8198_v48, %v1287_v9  ;;  %v8200_v15 = vpop.f32.mrb[18].mxu0  ;;  %v10025_v18 = vadd.f32 %v8321_v14, %v1295_v10  ;;  %v8323_v55 = vpop.f32.mrb[18].mxu1 }
 0x4bf   :  { %v8588_v17 = vsub.f32 0.0, %v10022_v12  ;;  %v8201_v19 = vpop.f32.mrb[19].mxu0  ;;  %v8590_v20 = vsub.f32 0.0, %v10024_v28  ;;  %v8324_v21 = vpop.f32.mrb[19].mxu1 }
 0x4c0   :  { %v8589_v60 = vsub.f32 0.0, %v10023_v42  ;;  %v8591_v62 = vsub.f32 0.0, %v10025_v18 }
 0x4c1   :  { %v8628_v22 = vmul.f32 1.442695, %v8588_v17  ;;  %v8632_v23 = vmul.f32 1.442695, %v8590_v20 }
 0x4c2   :  { %v8630_v37 = vmul.f32 1.442695, %v8589_v60  ;;  %v8634_v0 = vmul.f32 1.442695, %v8591_v62 }
 0x4c3   :  { %10194 = vpow2.f32 %v8628_v22 }
 0x4c4   :  { %10196 = vpow2.f32 %v8632_v23 }
 0x4c5   :  { %10198 = vpow2.f32 %v8630_v37 }
 0x4c6   :  { %10200 = vpow2.f32 %v8634_v0 }
 0x4cd   :  { %v10195_v24 = vpop.eup %10194 }
 0x4ce   :  { %v10197_v26 = vpop.eup %10196  ;;  %v8660_v27 = vadd.f32 1.0, %v10195_v24 }
 0x4cf   :  { %v10199_v29 = vpop.eup %10198  ;;  %v8662_v30 = vadd.f32 1.0, %v10197_v26 }
 0x4d0   :  { %v10201_v31 = vpop.eup %10200  ;;  %10202 = vrcp.f32 %v8660_v27  ;;  %v8661_v32 = vadd.f32 1.0, %v10199_v29 }
 0x4d1   :  { %10204 = vrcp.f32 %v8662_v30  ;;  %v8663_v33 = vadd.f32 1.0, %v10201_v31 }
 0x4d2   :  { %10206 = vrcp.f32 %v8661_v32 }
 0x4d3   :  { %10208 = vrcp.f32 %v8663_v33 }
 0x4da   :  { %v10203_v34 = vpop.eup %10202 }
 0x4db   :  { %v10205_v35 = vpop.eup %10204 }
 0x4dc   :  { %v10207_v36 = vpop.eup %10206 }
 0x4dd   :  { %v10209_v38 = vpop.eup %10208  ;;  %v10002_v39 = vpack.c.bf16 %v10207_v36, %v10203_v34 }
 0x4de   :  { %v10003_v40 = vpack.c.bf16 %v10209_v38, %v10205_v35 }
 0x4df   :  { %8820 = vst [vmem:[%s10525_s3 + $0x40] sm:$0xff] %v10002_v39 }
 0x4e0   :  { %8821 = vst [vmem:[%s10525_s3 + $0x48] sm:$0xff] %v10003_v40 }
 0x57c   :  { %v8442_v61 = vpop.f32.mrb[20].mxu0  ;;  %v8565_v47 = vpop.f32.mrb[20].mxu1 }
 0x57d   :  { %v10026_v46 = vadd.f32 %v8442_v61, %v1299_v41  ;;  %v8444_v49 = vpop.f32.mrb[21].mxu0  ;;  %v10028_v16 = vadd.f32 %v8565_v47, %v1307_v43  ;;  %v8567_v51 = vpop.f32.mrb[21].mxu1 }
 0x57e   :  { %v10027_v50 = vadd.f32 %v8444_v49, %v1303_v44  ;;  %v8446_v52 = vpop.f32.mrb[22].mxu0  ;;  %v10029_v56 = vadd.f32 %v8567_v51, %v1311_v45  ;;  %v8569_v54 = vpop.f32.mrb[22].mxu1 }
 0x57f   :  { %v8592_v53 = vsub.f32 0.0, %v10026_v46  ;;  %v8447_v57 = vpop.f32.mrb[23].mxu0  ;;  %v8594_v58 = vsub.f32 0.0, %v10028_v16  ;;  %v8570_v1 = vpop.f32.mrb[23].mxu1 }
 0x580   :  { %v8593_v59 = vsub.f32 0.0, %v10027_v50  ;;  %v8595_v63 = vsub.f32 0.0, %v10029_v56 }
 0x581   :  { %v8636_v3 = vmul.f32 1.442695, %v8592_v53  ;;  %v8640_v25 = vmul.f32 1.442695, %v8594_v58 }
 0x582   :  { %v8638_v4 = vmul.f32 1.442695, %v8593_v59  ;;  %v8642_v2 = vmul.f32 1.442695, %v8595_v63 }
 0x583   :  { %10210 = vpow2.f32 %v8636_v3 }
 0x584   :  { %10212 = vpow2.f32 %v8640_v25 }
 0x585   :  { %10214 = vpow2.f32 %v8638_v4 }
 0x586   :  { %10216 = vpow2.f32 %v8642_v2 }
 0x58d   :  { %v10211_v5 = vpop.eup %10210 }
 0x58e   :  { %v10213_v6 = vpop.eup %10212  ;;  %v8664_v7 = vadd.f32 1.0, %v10211_v5 }
 0x58f   :  { %v10215_v8 = vpop.eup %10214  ;;  %v8666_v9 = vadd.f32 1.0, %v10213_v6 }
 0x590   :  { %v10217_v10 = vpop.eup %10216  ;;  %10218 = vrcp.f32 %v8664_v7  ;;  %v8665_v11 = vadd.f32 1.0, %v10215_v8 }
 0x591   :  { %10220 = vrcp.f32 %v8666_v9  ;;  %v8667_v12 = vadd.f32 1.0, %v10217_v10 }
 0x592   :  { %10222 = vrcp.f32 %v8665_v11 }
 0x593   :  { %10224 = vrcp.f32 %v8667_v12 }
 0x59a   :  { %v10219_v13 = vpop.eup %10218 }
 0x59b   :  { %v10221_v48 = vpop.eup %10220 }
 0x59c   :  { %v10223_v28 = vpop.eup %10222 }
 0x59d   :  { %v10225_v42 = vpop.eup %10224  ;;  %v10004_v14 = vpack.c.bf16 %v10223_v28, %v10219_v13 }
 0x59e   :  { %v10005_v15 = vpack.c.bf16 %v10225_v42, %v10221_v48 }
 0x59f   :  { %8822 = vst [vmem:[%s10525_s3 + $0x50] sm:$0xff] %v10004_v14 }
 0x5a0   :  { %8823 = vst [vmem:[%s10525_s3 + $0x58] sm:$0xff] %v10005_v15 }
 0x5a1   :  { %8828 = vsyncpa [#allocation3], 1 }
 0x5a2   :  { %8829 = vsyncpa [#allocation5], 1 }

</bundles_post_ra>
